<compile_context>
chip_gen: v6e
topology: v6e:2x2x1
jax: 0.10.0
libtpu: 0.0.40
codegen_flags: <defaults>
</compile_context>

<pallas_src>
import functools

import jax
import jax.numpy as jnp
from jax import lax
from jax.experimental import pallas as pl
from jax.experimental.pallas import tpu as pltpu

# ---------------- model dims (small but structurally consistent with the module) ----
QUERY_DIM = 256      # query_dim
Q_LSTM1   = 128      # q_lstm1_dim  (must equal 2*Q_LSTM2 for the module's dims to line up)
Q_LSTM2   = 64       # q_lstm2_dim
NODE_DIM  = 256      # node_dim
NODE_FC1  = 128      # node_fc1_dim (= 2*Q_LSTM2 so the concat dims line up)
QNODE_FC1 = 256      # qnode_fc1_dim
QNODE_FC2 = 128      # qnode_fc2_dim == hidden_in
HIDDEN    = 128      # hidden_in == hidden_out
OUT_H1    = 128
OUT_H2    = 128
OUT_H3    = 1
N_NODES   = 64
RELATIONS = ("rel_a", "rel_b", "rel_c")
N_LAYERS  = 3        # layer_weightshare=True -> one shared RGCNLayer applied 3x


# ---------------- the single fused Pallas kernel (one graph per grid step) -----------
def _rgcn_fused_kernel(
    q_ref, nodes_ref, a_ref,
    lstm1_w_ref, lstm1_b_ref, lstm2_w_ref, lstm2_b_ref,
    nfc1_w_ref, nfc1_b_ref,
    qn1_wq_ref, qn1_wh_ref, qn1_b_ref,
    qn2_w_ref, qn2_b_ref,
    w_upd_ref, w_gate_u_ref, w_gate_h_ref,
    out1_wq_ref, out1_wh_ref, out1_b_ref,
    out2_w_ref, out2_b_ref,
    out3_w_ref, out3_b_ref,
    o_ref,
    *, n_rel, n_layers, n_nodes, hidden,
):
    f32, bf16 = jnp.float32, jnp.bfloat16
    D = hidden

    def mm(x, w):
        # weights arrive pre-cast to bf16 from the host; activations cast in-register
        return jnp.dot(x.astype(bf16), w, preferred_element_type=f32)

    # ---- bidirectional LSTM on a length-1 sequence with zero initial (h, c) ----
    # fwd|bwd gate matmuls packed as one (in, 8*hid) matmul; gate order per dir: i,f,g,o
    def bilstm(x, w_ref, b_ref):
        gates = mm(x, w_ref[...]) + b_ref[...]           # (1, 8*hid) f32
        hid = gates.shape[-1] // 8

        def one_dir(g):                                  # g: (1, 4*hid)
            i = jax.nn.sigmoid(g[:, 0 * hid:1 * hid])
            gg = jnp.tanh(g[:, 2 * hid:3 * hid])
            o = jax.nn.sigmoid(g[:, 3 * hid:4 * hid])
            return o * jnp.tanh(i * gg)                  # c0 = 0 -> forget term vanishes

        return jnp.concatenate(
            [one_dir(gates[:, :4 * hid]), one_dir(gates[:, 4 * hid:])], axis=-1)

    q = bilstm(q_ref[0], lstm1_w_ref, lstm1_b_ref)       # (1, 2*Q_LSTM1)
    q = bilstm(q, lstm2_w_ref, lstm2_b_ref)              # (1, 2*Q_LSTM2)

    # ---- node encoder + query-aware node encoder (split-weight concat trick) ----
    h = jnp.maximum(mm(nodes_ref[0], nfc1_w_ref[...]) + nfc1_b_ref[...], 0.0)
    h = jnp.maximum(mm(h, qn1_wh_ref[...]) + mm(q, qn1_wq_ref[...]) + qn1_b_ref[...], 0.0)
    h = jnp.maximum(mm(h, qn2_w_ref[...]) + qn2_b_ref[...], 0.0)        # (N, D) f32

    # ---- weight-shared gated RGCN layers (all weights VMEM-resident, bf16) ----
    a = a_ref[0]                                  # (R*N, N) bf16, stacked 0/1 adjacency
    w_upd = w_upd_ref[...]                        # ((1+R)*D, D) bf16 = [W0; Wr/(N-1)...]
    w_gate_u = w_gate_u_ref[...]                  # (D, D) bf16
    w_gate_h = w_gate_h_ref[...]                  # (D, D) bf16

    def layer(_, H):                              # H: (N, D) f32
        Hb = H.astype(bf16)
        # one MXU issue for all relations' messages: (R*N, N) @ (N, D)
        msg = jnp.dot(a, Hb, preferred_element_type=f32)               # (R*N, D) f32
        # accumulate update = H@W0 + sum_r (A_r H / (N-1)) @ W_r  (no concatenates)
        update = jnp.dot(Hb, w_upd[0:D], preferred_element_type=f32)
        for r in range(n_rel):
            update = update + jnp.dot(
                msg[r * n_nodes:(r + 1) * n_nodes].astype(bf16),
                w_upd[(r + 1) * D:(r + 2) * D],
                preferred_element_type=f32)
        # gate = sigmoid(cat((update, H)) @ Wg) via split weights
        gate = jax.nn.sigmoid(
            jnp.dot(update.astype(bf16), w_gate_u, preferred_element_type=f32)
            + jnp.dot(Hb, w_gate_h, preferred_element_type=f32))
        return H + gate * (jnp.tanh(update) - H)  # == tanh(u)*g + H*(1-g)

    h = lax.fori_loop(0, n_layers, layer, h, unroll=True)

    # ---- output MLP; out3 emitted as a lane-dense (1, N) row (q@k.T-style contraction) ----
    y = jnp.maximum(mm(h, out1_wh_ref[...]) + mm(q, out1_wq_ref[...]) + out1_b_ref[...], 0.0)
    y = jnp.maximum(mm(y, out2_w_ref[...]) + out2_b_ref[...], 0.0)      # (N, OUT_H2) f32
    logits = lax.dot_general(
        out3_w_ref[...], y.astype(bf16),
        dimension_numbers=(((1,), (1,)), ((), ())),
        preferred_element_type=f32) + out3_b_ref[...]                   # (1, N)
    o_ref[0] = logits.astype(o_ref.dtype)


# ---------------- host-side weight packing (done once) --------------------------------
def pack_weights(params):
    bf16 = jnp.bfloat16
    qdim = 2 * Q_LSTM2
    D = HIDDEN

    def pack_bilstm(p):  # pack fwd|bwd LSTM weights into one (in, 8*hid) bf16 matmul
        (wf, bfv), (wb, bbv) = p["fwd"], p["bwd"]
        w = jnp.concatenate([wf, wb], axis=-1).astype(bf16)
        b = jnp.concatenate([bfv, bbv])[None, :].astype(jnp.float32)
        return w, b

    lstm1_w, lstm1_b = pack_bilstm(params["lstm1"])
    lstm2_w, lstm2_b = pack_bilstm(params["lstm2"])

    # split-weight decomposition of cat([q_tiled, h]) @ W
    qn1_wq = params["qnode_fc1_w"][:qdim].astype(bf16)
    qn1_wh = params["qnode_fc1_w"][qdim:].astype(bf16)
    out1_wq = params["out1_w"][:qdim].astype(bf16)
    out1_wh = params["out1_w"][qdim:].astype(bf16)

    # stacked [W0; W_rel...] with the 1/(N-1) message norm folded into relation blocks
    w_upd = jnp.concatenate(
        [params["rgcn_w0"][None], params["rgcn_wrel"] / (N_NODES - 1)], axis=0
    ).reshape((1 + len(RELATIONS)) * D, D).astype(bf16)
    # split gate weight: cat((update, H)) @ Wg == update@Wg[:D] + H@Wg[D:]
    w_gate_u = params["rgcn_wgate"][:D].astype(bf16)
    w_gate_h = params["rgcn_wgate"][D:].astype(bf16)

    return (
        lstm1_w, lstm1_b, lstm2_w, lstm2_b,
        params["node_fc1_w"].astype(bf16), params["node_fc1_b"][None, :],
        qn1_wq, qn1_wh, params["qnode_fc1_b"][None, :],
        params["qnode_fc2_w"].astype(bf16), params["qnode_fc2_b"][None, :],
        w_upd, w_gate_u, w_gate_h,
        out1_wq, out1_wh, params["out1_b"][None, :],
        params["out2_w"].astype(bf16), params["out2_b"][None, :],
        params["out3_w"].reshape(1, OUT_H2).astype(bf16),
        params["out3_b"].reshape(1, 1).astype(jnp.float32),
    )


# ---------------- batched forward: one pallas_call, grid over graphs ------------------
@jax.jit
def rgcn_logits(packed, nodes, q, A):
    """nodes: (B, N, NODE_DIM) f32; q: (B, 1, QUERY_DIM) f32; A: (B, R, N, N) f32 0/1.
    Returns per-node logits, shape (B, N)."""
    B, N, node_dim = nodes.shape
    R = A.shape[1]
    query_dim = q.shape[-1]
    bf16 = jnp.bfloat16

    # per-graph inputs shipped to the kernel in bf16 (numerically identical: the first
    # thing the kernel does with them is a bf16 MXU matmul anyway)
    q_b = q.astype(bf16)
    nodes_b = nodes.astype(bf16)
    a_b = A.reshape(B, R * N, N).astype(bf16)           # pre-stacked adjacency

    args = (q_b, nodes_b, a_b) + tuple(packed)

    batch3 = lambda b: (b, 0, 0)

    def const_spec(shape):
        nd = len(shape)
        return pl.BlockSpec(shape, lambda b, nd=nd: (0,) * nd)

    in_specs = [
        pl.BlockSpec((1, 1, query_dim), batch3),        # q
        pl.BlockSpec((1, N, node_dim), batch3),          # nodes
        pl.BlockSpec((1, R * N, N), batch3),             # stacked adjacency
    ] + [const_spec(w.shape) for w in packed]            # weights: resident across grid

    # advisory cost estimate (per batch)
    D = HIDDEN
    flops_graph = 2 * (
        query_dim * 8 * Q_LSTM1
        + (2 * Q_LSTM1) * 8 * Q_LSTM2
        + N * node_dim * NODE_FC1
        + N * 2 * NODE_FC1 * QNODE_FC1
        + N * QNODE_FC1 * QNODE_FC2
        + N_LAYERS * (R * N * N * D + (1 + R) * N * D * D + 2 * N * D * D)
        + N * (D + 2 * Q_LSTM2) * OUT_H1
        + N * OUT_H1 * OUT_H2
        + N * OUT_H2)
    trans_graph = N_LAYERS * 3 * N * D + 12 * (4 * Q_LSTM1 + 4 * Q_LSTM2)
    bytes_accessed = sum(int(v.size) * v.dtype.itemsize for v in args) + B * N * 4

    out = pl.pallas_call(
        functools.partial(_rgcn_fused_kernel, n_rel=R, n_layers=N_LAYERS,
                          n_nodes=N, hidden=HIDDEN),
        grid=(B,),
        out_shape=jax.ShapeDtypeStruct((B, 1, N), jnp.float32),
        in_specs=in_specs,
        out_specs=pl.BlockSpec((1, 1, N), batch3),
        compiler_params=pltpu.CompilerParams(
            dimension_semantics=("parallel",)),          # megacore / 2nd TC on v7x
        cost_estimate=pl.CostEstimate(
            flops=int(B * flops_graph),
            transcendentals=int(B * trans_graph),
            bytes_accessed=int(bytes_accessed)),
    )(*args)
    # TODO(synk): on v6e/v7x, stacking several graphs along M within one grid step
    # (block-diagonal adjacency) would raise MXU row utilization above M=64.
    return out[:, 0, :]                                   # (B, N)


# ---------------- ragged per-candidate max pooling (static lists -> JAX glue) ---------
# TODO(synk): could be folded into the kernel via PrefetchScalarGridSpec with padded
# candidate-index arrays + lengths in SMEM; kept in host JAX for the ragged lists.
def pool_candidates(logits_row, cand_lists):
    pieces = []
    for cands in cand_lists:
        if len(cands) == 0:
            pieces.append(jnp.zeros((1,), jnp.float32))
        else:
            pieces.append(jnp.max(logits_row[jnp.asarray(cands)], axis=0, keepdims=True))
    return jnp.concatenate(pieces)


# ---------------- deterministic parameter init ---------------------------------------
def init_params(key):
    keys = iter(jax.random.split(key, 32))

    def u(shape, fan_in):
        bound = (1.0 / fan_in) ** 0.5
        return jax.random.uniform(next(keys), shape, jnp.float32, -bound, bound)

    def lstm_dir(in_dim, hid):
        return (u((in_dim, 4 * hid), in_dim), u((4 * hid,), in_dim))

    return {
        "lstm1": {"fwd": lstm_dir(QUERY_DIM, Q_LSTM1), "bwd": lstm_dir(QUERY_DIM, Q_LSTM1)},
        "lstm2": {"fwd": lstm_dir(2 * Q_LSTM1, Q_LSTM2), "bwd": lstm_dir(2 * Q_LSTM1, Q_LSTM2)},
        "node_fc1_w": u((NODE_DIM, NODE_FC1), NODE_DIM),
        "node_fc1_b": u((NODE_FC1,), NODE_DIM),
        "qnode_fc1_w": u((2 * NODE_FC1, QNODE_FC1), 2 * NODE_FC1),
        "qnode_fc1_b": u((QNODE_FC1,), 2 * NODE_FC1),
        "qnode_fc2_w": u((QNODE_FC1, QNODE_FC2), QNODE_FC1),
        "qnode_fc2_b": u((QNODE_FC2,), QNODE_FC1),
        # RGCNLayer uses raw nn.Parameter matrices -> no bias terms, matching the reference
        "rgcn_w0":    u((HIDDEN, HIDDEN), HIDDEN),
        "rgcn_wrel":  u((len(RELATIONS), HIDDEN, HIDDEN), HIDDEN),
        "rgcn_wgate": u((2 * HIDDEN, HIDDEN), 2 * HIDDEN),
        "out1_w": u((HIDDEN + Q_LSTM1, OUT_H1), HIDDEN + Q_LSTM1),
        "out1_b": u((OUT_H1,), HIDDEN + Q_LSTM1),
        "out2_w": u((OUT_H1, OUT_H2), OUT_H1),
        "out2_b": u((OUT_H2,), OUT_H1),
        "out3_w": u((OUT_H2, OUT_H3), OUT_H2),
        "out3_b": u((OUT_H3,), OUT_H2),
    }


if __name__ == "__main__":
    key = jax.random.PRNGKey(0)
    kp, kn, kq, ka = jax.random.split(key, 4)

    params = init_params(kp)
    packed = pack_weights(params)

    B = 4  # batch of independent graphs/queries processed by one pallas_call
    nodes = jax.random.normal(kn, (B, N_NODES, NODE_DIM), jnp.float32)
    q = jax.random.normal(kq, (B, 1, QUERY_DIM), jnp.float32)
    # stacked dense 0/1 adjacency matrices per relation (torch.spmm == dense matmul here)
    A = (jax.random.uniform(ka, (B, len(RELATIONS), N_NODES, N_NODES)) < 0.1
         ).astype(jnp.float32)
    cand_nodes = {"query0": [0, 3, 5, 17], "query1": [2, 9, 40], "query2": []}
    cand_lists = list(cand_nodes.values())

    logits = rgcn_logits(packed, nodes, q, A)             # (B, N) per-node logits
    jax.block_until_ready(logits)
    assert logits.shape == (B, N_NODES)

    outs = jnp.stack([pool_candidates(logits[b], cand_lists) for b in range(B)])
    jax.block_until_ready(outs)
    assert outs.shape == (B, len(cand_nodes))
    print("KERNEL_OK")
</pallas_src>

<mosaic_0001>
module attributes {stable_mosaic.version = 11 : i64} {
  func.func @_rgcn_fused_kernel(%arg0: i32, %arg1: memref<1x1x256xbf16, #tpu.memory_space<vmem>>, %arg2: memref<1x64x256xbf16, #tpu.memory_space<vmem>>, %arg3: memref<1x192x64xbf16, #tpu.memory_space<vmem>>, %arg4: memref<256x1024xbf16, #tpu.memory_space<vmem>>, %arg5: memref<1x1024xf32, #tpu.memory_space<vmem>>, %arg6: memref<256x512xbf16, #tpu.memory_space<vmem>>, %arg7: memref<1x512xf32, #tpu.memory_space<vmem>>, %arg8: memref<256x128xbf16, #tpu.memory_space<vmem>>, %arg9: memref<1x128xf32, #tpu.memory_space<vmem>>, %arg10: memref<128x256xbf16, #tpu.memory_space<vmem>>, %arg11: memref<128x256xbf16, #tpu.memory_space<vmem>>, %arg12: memref<1x256xf32, #tpu.memory_space<vmem>>, %arg13: memref<256x128xbf16, #tpu.memory_space<vmem>>, %arg14: memref<1x128xf32, #tpu.memory_space<vmem>>, %arg15: memref<512x128xbf16, #tpu.memory_space<vmem>>, %arg16: memref<128x128xbf16, #tpu.memory_space<vmem>>, %arg17: memref<128x128xbf16, #tpu.memory_space<vmem>>, %arg18: memref<128x128xbf16, #tpu.memory_space<vmem>>, %arg19: memref<128x128xbf16, #tpu.memory_space<vmem>>, %arg20: memref<1x128xf32, #tpu.memory_space<vmem>>, %arg21: memref<128x128xbf16, #tpu.memory_space<vmem>>, %arg22: memref<1x128xf32, #tpu.memory_space<vmem>>, %arg23: memref<1x128xbf16, #tpu.memory_space<vmem>>, %arg24: memref<1x1xf32, #tpu.memory_space<vmem>>, %arg25: memref<1x1x64xf32, #tpu.memory_space<vmem>>) attributes {dimension_semantics = [#tpu.dimension_semantics<parallel>], iteration_bounds = array<i64: 4>, scalar_prefetch = 0 : i64, scratch_operands = 0 : i64, tpu.core_type = #tpu.core_type<tc>, window_params = [{transform_indices = @transform_0, window_bounds = array<i64: 1, 1, 256>}, {transform_indices = @transform_1, window_bounds = array<i64: 1, 64, 256>}, {transform_indices = @transform_2, window_bounds = array<i64: 1, 192, 64>}, {pipeline_mode = #tpu.pipeline_mode<synchronous>, transform_indices = @transform_3, window_bounds = array<i64: 256, 1024>}, {pipeline_mode = #tpu.pipeline_mode<synchronous>, transform_indices = @transform_4, window_bounds = array<i64: 1, 1024>}, {pipeline_mode = #tpu.pipeline_mode<synchronous>, transform_indices = @transform_5, window_bounds = array<i64: 256, 512>}, {pipeline_mode = #tpu.pipeline_mode<synchronous>, transform_indices = @transform_6, window_bounds = array<i64: 1, 512>}, {pipeline_mode = #tpu.pipeline_mode<synchronous>, transform_indices = @transform_7, window_bounds = array<i64: 256, 128>}, {pipeline_mode = #tpu.pipeline_mode<synchronous>, transform_indices = @transform_8, window_bounds = array<i64: 1, 128>}, {pipeline_mode = #tpu.pipeline_mode<synchronous>, transform_indices = @transform_9, window_bounds = array<i64: 128, 256>}, {pipeline_mode = #tpu.pipeline_mode<synchronous>, transform_indices = @transform_10, window_bounds = array<i64: 128, 256>}, {pipeline_mode = #tpu.pipeline_mode<synchronous>, transform_indices = @transform_11, window_bounds = array<i64: 1, 256>}, {pipeline_mode = #tpu.pipeline_mode<synchronous>, transform_indices = @transform_12, window_bounds = array<i64: 256, 128>}, {pipeline_mode = #tpu.pipeline_mode<synchronous>, transform_indices = @transform_13, window_bounds = array<i64: 1, 128>}, {pipeline_mode = #tpu.pipeline_mode<synchronous>, transform_indices = @transform_14, window_bounds = array<i64: 512, 128>}, {pipeline_mode = #tpu.pipeline_mode<synchronous>, transform_indices = @transform_15, window_bounds = array<i64: 128, 128>}, {pipeline_mode = #tpu.pipeline_mode<synchronous>, transform_indices = @transform_16, window_bounds = array<i64: 128, 128>}, {pipeline_mode = #tpu.pipeline_mode<synchronous>, transform_indices = @transform_17, window_bounds = array<i64: 128, 128>}, {pipeline_mode = #tpu.pipeline_mode<synchronous>, transform_indices = @transform_18, window_bounds = array<i64: 128, 128>}, {pipeline_mode = #tpu.pipeline_mode<synchronous>, transform_indices = @transform_19, window_bounds = array<i64: 1, 128>}, {pipeline_mode = #tpu.pipeline_mode<synchronous>, transform_indices = @transform_20, window_bounds = array<i64: 128, 128>}, {pipeline_mode = #tpu.pipeline_mode<synchronous>, transform_indices = @transform_21, window_bounds = array<i64: 1, 128>}, {pipeline_mode = #tpu.pipeline_mode<synchronous>, transform_indices = @transform_22, window_bounds = array<i64: 1, 128>}, {pipeline_mode = #tpu.pipeline_mode<synchronous>, transform_indices = @transform_23, window_bounds = array<i64: 1, 1>}, {transform_indices = @transform_24, window_bounds = array<i64: 1, 1, 64>}]} {
    %c0 = arith.constant 0 : index
    %c0_0 = arith.constant 0 : index
    %c0_1 = arith.constant 0 : index
    %0 = vector.load %arg1[%c0, %c0_0, %c0_1] : memref<1x1x256xbf16, #tpu.memory_space<vmem>>, vector<1x1x256xbf16>
    %1 = vector.shape_cast %0 : vector<1x1x256xbf16> to vector<1x256xbf16>
    %c0_2 = arith.constant 0 : index
    %c0_3 = arith.constant 0 : index
    %2 = vector.load %arg4[%c0_2, %c0_3] : memref<256x1024xbf16, #tpu.memory_space<vmem>>, vector<256x1024xbf16>
    %cst = arith.constant dense<0.000000e+00> : vector<1x1024xf32>
    %3 = tpu.matmul %1, %2, %cst {dimension_numbers = #tpu.dot_dimension_numbers<[1], [0], [0], [1], [0, 0, 1, 1], [], []>} : vector<1x256xbf16>, vector<256x1024xbf16>, vector<1x1024xf32> -> vector<1x1024xf32>
    %c0_4 = arith.constant 0 : index
    %c0_5 = arith.constant 0 : index
    %4 = vector.load %arg5[%c0_4, %c0_5] : memref<1x1024xf32, #tpu.memory_space<vmem>>, vector<1x1024xf32>
    %5 = arith.addf %3, %4 : vector<1x1024xf32>
    %6 = vector.extract_strided_slice %5 {offsets = [0, 0], sizes = [1, 512], strides = [1, 1]} : vector<1x1024xf32> to vector<1x512xf32>
    %7 = vector.extract_strided_slice %6 {offsets = [0, 0], sizes = [1, 128], strides = [1, 1]} : vector<1x512xf32> to vector<1x128xf32>
    %8 = arith.negf %7 : vector<1x128xf32>
    %9 = math.exp %8 : vector<1x128xf32>
    %cst_6 = arith.constant 1.000000e+00 : f32
    %10 = vector.broadcast %cst_6 : f32 to vector<1x128xf32>
    %11 = arith.addf %10, %9 : vector<1x128xf32>
    %12 = arith.divf %10, %11 : vector<1x128xf32>
    %13 = vector.extract_strided_slice %6 {offsets = [0, 256], sizes = [1, 128], strides = [1, 1]} : vector<1x512xf32> to vector<1x128xf32>
    %14 = math.tanh %13 : vector<1x128xf32>
    %15 = vector.extract_strided_slice %6 {offsets = [0, 384], sizes = [1, 128], strides = [1, 1]} : vector<1x512xf32> to vector<1x128xf32>
    %16 = arith.negf %15 : vector<1x128xf32>
    %17 = math.exp %16 : vector<1x128xf32>
    %cst_7 = arith.constant 1.000000e+00 : f32
    %18 = vector.broadcast %cst_7 : f32 to vector<1x128xf32>
    %19 = arith.addf %18, %17 : vector<1x128xf32>
    %20 = arith.divf %18, %19 : vector<1x128xf32>
    %21 = arith.mulf %12, %14 : vector<1x128xf32>
    %22 = math.tanh %21 : vector<1x128xf32>
    %23 = arith.mulf %20, %22 : vector<1x128xf32>
    %24 = vector.extract_strided_slice %5 {offsets = [0, 512], sizes = [1, 512], strides = [1, 1]} : vector<1x1024xf32> to vector<1x512xf32>
    %25 = vector.extract_strided_slice %24 {offsets = [0, 0], sizes = [1, 128], strides = [1, 1]} : vector<1x512xf32> to vector<1x128xf32>
    %26 = arith.negf %25 : vector<1x128xf32>
    %27 = math.exp %26 : vector<1x128xf32>
    %cst_8 = arith.constant 1.000000e+00 : f32
    %28 = vector.broadcast %cst_8 : f32 to vector<1x128xf32>
    %29 = arith.addf %28, %27 : vector<1x128xf32>
    %30 = arith.divf %28, %29 : vector<1x128xf32>
    %31 = vector.extract_strided_slice %24 {offsets = [0, 256], sizes = [1, 128], strides = [1, 1]} : vector<1x512xf32> to vector<1x128xf32>
    %32 = math.tanh %31 : vector<1x128xf32>
    %33 = vector.extract_strided_slice %24 {offsets = [0, 384], sizes = [1, 128], strides = [1, 1]} : vector<1x512xf32> to vector<1x128xf32>
    %34 = arith.negf %33 : vector<1x128xf32>
    %35 = math.exp %34 : vector<1x128xf32>
    %cst_9 = arith.constant 1.000000e+00 : f32
    %36 = vector.broadcast %cst_9 : f32 to vector<1x128xf32>
    %37 = arith.addf %36, %35 : vector<1x128xf32>
    %38 = arith.divf %36, %37 : vector<1x128xf32>
    %39 = arith.mulf %30, %32 : vector<1x128xf32>
    %40 = math.tanh %39 : vector<1x128xf32>
    %41 = arith.mulf %38, %40 : vector<1x128xf32>
    %42 = tpu.concatenate %23, %41 in 1 : vector<1x128xf32>, vector<1x128xf32> -> vector<1x256xf32>
    %c0_10 = arith.constant 0 : index
    %c0_11 = arith.constant 0 : index
    %43 = vector.load %arg6[%c0_10, %c0_11] : memref<256x512xbf16, #tpu.memory_space<vmem>>, vector<256x512xbf16>
    %44 = arith.truncf %42 : vector<1x256xf32> to vector<1x256xbf16>
    %cst_12 = arith.constant dense<0.000000e+00> : vector<1x512xf32>
    %45 = tpu.matmul %44, %43, %cst_12 {dimension_numbers = #tpu.dot_dimension_numbers<[1], [0], [0], [1], [0, 0, 1, 1], [], []>} : vector<1x256xbf16>, vector<256x512xbf16>, vector<1x512xf32> -> vector<1x512xf32>
    %c0_13 = arith.constant 0 : index
    %c0_14 = arith.constant 0 : index
    %46 = vector.load %arg7[%c0_13, %c0_14] : memref<1x512xf32, #tpu.memory_space<vmem>>, vector<1x512xf32>
    %47 = arith.addf %45, %46 : vector<1x512xf32>
    %48 = vector.extract_strided_slice %47 {offsets = [0, 0], sizes = [1, 256], strides = [1, 1]} : vector<1x512xf32> to vector<1x256xf32>
    %49 = vector.extract_strided_slice %48 {offsets = [0, 0], sizes = [1, 64], strides = [1, 1]} : vector<1x256xf32> to vector<1x64xf32>
    %50 = arith.negf %49 : vector<1x64xf32>
    %51 = math.exp %50 : vector<1x64xf32>
    %cst_15 = arith.constant 1.000000e+00 : f32
    %52 = vector.broadcast %cst_15 : f32 to vector<1x64xf32>
    %53 = arith.addf %52, %51 : vector<1x64xf32>
    %54 = arith.divf %52, %53 : vector<1x64xf32>
    %55 = vector.extract_strided_slice %48 {offsets = [0, 128], sizes = [1, 64], strides = [1, 1]} : vector<1x256xf32> to vector<1x64xf32>
    %56 = math.tanh %55 : vector<1x64xf32>
    %57 = vector.extract_strided_slice %48 {offsets = [0, 192], sizes = [1, 64], strides = [1, 1]} : vector<1x256xf32> to vector<1x64xf32>
    %58 = arith.negf %57 : vector<1x64xf32>
    %59 = math.exp %58 : vector<1x64xf32>
    %cst_16 = arith.constant 1.000000e+00 : f32
    %60 = vector.broadcast %cst_16 : f32 to vector<1x64xf32>
    %61 = arith.addf %60, %59 : vector<1x64xf32>
    %62 = arith.divf %60, %61 : vector<1x64xf32>
    %63 = arith.mulf %54, %56 : vector<1x64xf32>
    %64 = math.tanh %63 : vector<1x64xf32>
    %65 = arith.mulf %62, %64 : vector<1x64xf32>
    %66 = vector.extract_strided_slice %47 {offsets = [0, 256], sizes = [1, 256], strides = [1, 1]} : vector<1x512xf32> to vector<1x256xf32>
    %67 = vector.extract_strided_slice %66 {offsets = [0, 0], sizes = [1, 64], strides = [1, 1]} : vector<1x256xf32> to vector<1x64xf32>
    %68 = arith.negf %67 : vector<1x64xf32>
    %69 = math.exp %68 : vector<1x64xf32>
    %cst_17 = arith.constant 1.000000e+00 : f32
    %70 = vector.broadcast %cst_17 : f32 to vector<1x64xf32>
    %71 = arith.addf %70, %69 : vector<1x64xf32>
    %72 = arith.divf %70, %71 : vector<1x64xf32>
    %73 = vector.extract_strided_slice %66 {offsets = [0, 128], sizes = [1, 64], strides = [1, 1]} : vector<1x256xf32> to vector<1x64xf32>
    %74 = math.tanh %73 : vector<1x64xf32>
    %75 = vector.extract_strided_slice %66 {offsets = [0, 192], sizes = [1, 64], strides = [1, 1]} : vector<1x256xf32> to vector<1x64xf32>
    %76 = arith.negf %75 : vector<1x64xf32>
    %77 = math.exp %76 : vector<1x64xf32>
    %cst_18 = arith.constant 1.000000e+00 : f32
    %78 = vector.broadcast %cst_18 : f32 to vector<1x64xf32>
    %79 = arith.addf %78, %77 : vector<1x64xf32>
    %80 = arith.divf %78, %79 : vector<1x64xf32>
    %81 = arith.mulf %72, %74 : vector<1x64xf32>
    %82 = math.tanh %81 : vector<1x64xf32>
    %83 = arith.mulf %80, %82 : vector<1x64xf32>
    %84 = tpu.concatenate %65, %83 in 1 : vector<1x64xf32>, vector<1x64xf32> -> vector<1x128xf32>
    %c0_19 = arith.constant 0 : index
    %c0_20 = arith.constant 0 : index
    %c0_21 = arith.constant 0 : index
    %85 = vector.load %arg2[%c0_19, %c0_20, %c0_21] : memref<1x64x256xbf16, #tpu.memory_space<vmem>>, vector<1x64x256xbf16>
    %86 = vector.shape_cast %85 : vector<1x64x256xbf16> to vector<64x256xbf16>
    %c0_22 = arith.constant 0 : index
    %c0_23 = arith.constant 0 : index
    %87 = vector.load %arg8[%c0_22, %c0_23] : memref<256x128xbf16, #tpu.memory_space<vmem>>, vector<256x128xbf16>
    %cst_24 = arith.constant dense<0.000000e+00> : vector<64x128xf32>
    %88 = tpu.matmul %86, %87, %cst_24 {dimension_numbers = #tpu.dot_dimension_numbers<[1], [0], [0], [1], [0, 0, 1, 1], [], []>} : vector<64x256xbf16>, vector<256x128xbf16>, vector<64x128xf32> -> vector<64x128xf32>
    %c0_25 = arith.constant 0 : index
    %c0_26 = arith.constant 0 : index
    %89 = vector.load %arg9[%c0_25, %c0_26] : memref<1x128xf32, #tpu.memory_space<vmem>>, vector<1x128xf32>
    %90 = vector.broadcast %89 : vector<1x128xf32> to vector<64x128xf32>
    %91 = arith.addf %88, %90 : vector<64x128xf32>
    %cst_27 = arith.constant 0.000000e+00 : f32
    %92 = vector.broadcast %cst_27 : f32 to vector<64x128xf32>
    %93 = arith.maximumf %91, %92 : vector<64x128xf32>
    %c0_28 = arith.constant 0 : index
    %c0_29 = arith.constant 0 : index
    %94 = vector.load %arg11[%c0_28, %c0_29] : memref<128x256xbf16, #tpu.memory_space<vmem>>, vector<128x256xbf16>
    %95 = arith.truncf %93 : vector<64x128xf32> to vector<64x128xbf16>
    %cst_30 = arith.constant dense<0.000000e+00> : vector<64x256xf32>
    %96 = tpu.matmul %95, %94, %cst_30 {dimension_numbers = #tpu.dot_dimension_numbers<[1], [0], [0], [1], [0, 0, 1, 1], [], []>} : vector<64x128xbf16>, vector<128x256xbf16>, vector<64x256xf32> -> vector<64x256xf32>
    %c0_31 = arith.constant 0 : index
    %c0_32 = arith.constant 0 : index
    %97 = vector.load %arg10[%c0_31, %c0_32] : memref<128x256xbf16, #tpu.memory_space<vmem>>, vector<128x256xbf16>
    %98 = arith.truncf %84 : vector<1x128xf32> to vector<1x128xbf16>
    %cst_33 = arith.constant dense<0.000000e+00> : vector<1x256xf32>
    %99 = tpu.matmul %98, %97, %cst_33 {dimension_numbers = #tpu.dot_dimension_numbers<[1], [0], [0], [1], [0, 0, 1, 1], [], []>} : vector<1x128xbf16>, vector<128x256xbf16>, vector<1x256xf32> -> vector<1x256xf32>
    %100 = vector.broadcast %99 : vector<1x256xf32> to vector<64x256xf32>
    %101 = arith.addf %96, %100 : vector<64x256xf32>
    %c0_34 = arith.constant 0 : index
    %c0_35 = arith.constant 0 : index
    %102 = vector.load %arg12[%c0_34, %c0_35] : memref<1x256xf32, #tpu.memory_space<vmem>>, vector<1x256xf32>
    %103 = vector.broadcast %102 : vector<1x256xf32> to vector<64x256xf32>
    %104 = arith.addf %101, %103 : vector<64x256xf32>
    %cst_36 = arith.constant 0.000000e+00 : f32
    %105 = vector.broadcast %cst_36 : f32 to vector<64x256xf32>
    %106 = arith.maximumf %104, %105 : vector<64x256xf32>
    %c0_37 = arith.constant 0 : index
    %c0_38 = arith.constant 0 : index
    %107 = vector.load %arg13[%c0_37, %c0_38] : memref<256x128xbf16, #tpu.memory_space<vmem>>, vector<256x128xbf16>
    %108 = arith.truncf %106 : vector<64x256xf32> to vector<64x256xbf16>
    %cst_39 = arith.constant dense<0.000000e+00> : vector<64x128xf32>
    %109 = tpu.matmul %108, %107, %cst_39 {dimension_numbers = #tpu.dot_dimension_numbers<[1], [0], [0], [1], [0, 0, 1, 1], [], []>} : vector<64x256xbf16>, vector<256x128xbf16>, vector<64x128xf32> -> vector<64x128xf32>
    %c0_40 = arith.constant 0 : index
    %c0_41 = arith.constant 0 : index
    %110 = vector.load %arg14[%c0_40, %c0_41] : memref<1x128xf32, #tpu.memory_space<vmem>>, vector<1x128xf32>
    %111 = vector.broadcast %110 : vector<1x128xf32> to vector<64x128xf32>
    %112 = arith.addf %109, %111 : vector<64x128xf32>
    %cst_42 = arith.constant 0.000000e+00 : f32
    %113 = vector.broadcast %cst_42 : f32 to vector<64x128xf32>
    %114 = arith.maximumf %112, %113 : vector<64x128xf32>
    %c0_43 = arith.constant 0 : index
    %c0_44 = arith.constant 0 : index
    %c0_45 = arith.constant 0 : index
    %115 = vector.load %arg3[%c0_43, %c0_44, %c0_45] : memref<1x192x64xbf16, #tpu.memory_space<vmem>>, vector<1x192x64xbf16>
    %116 = vector.shape_cast %115 : vector<1x192x64xbf16> to vector<192x64xbf16>
    %c0_46 = arith.constant 0 : index
    %c0_47 = arith.constant 0 : index
    %117 = vector.load %arg15[%c0_46, %c0_47] : memref<512x128xbf16, #tpu.memory_space<vmem>>, vector<512x128xbf16>
    %c0_48 = arith.constant 0 : index
    %c0_49 = arith.constant 0 : index
    %118 = vector.load %arg16[%c0_48, %c0_49] : memref<128x128xbf16, #tpu.memory_space<vmem>>, vector<128x128xbf16>
    %c0_50 = arith.constant 0 : index
    %c0_51 = arith.constant 0 : index
    %119 = vector.load %arg17[%c0_50, %c0_51] : memref<128x128xbf16, #tpu.memory_space<vmem>>, vector<128x128xbf16>
    %c0_i32 = arith.constant 0 : i32
    %120 = arith.truncf %114 : vector<64x128xf32> to vector<64x128xbf16>
    %cst_52 = arith.constant dense<0.000000e+00> : vector<192x128xf32>
    %121 = tpu.matmul %116, %120, %cst_52 {dimension_numbers = #tpu.dot_dimension_numbers<[1], [0], [0], [1], [0, 0, 1, 1], [], []>} : vector<192x64xbf16>, vector<64x128xbf16>, vector<192x128xf32> -> vector<192x128xf32>
    %122 = vector.extract_strided_slice %117 {offsets = [0, 0], sizes = [128, 128], strides = [1, 1]} : vector<512x128xbf16> to vector<128x128xbf16>
    %cst_53 = arith.constant dense<0.000000e+00> : vector<64x128xf32>
    %123 = tpu.matmul %120, %122, %cst_53 {dimension_numbers = #tpu.dot_dimension_numbers<[1], [0], [0], [1], [0, 0, 1, 1], [], []>} : vector<64x128xbf16>, vector<128x128xbf16>, vector<64x128xf32> -> vector<64x128xf32>
    %124 = vector.extract_strided_slice %121 {offsets = [0, 0], sizes = [64, 128], strides = [1, 1]} : vector<192x128xf32> to vector<64x128xf32>
    %125 = arith.truncf %124 : vector<64x128xf32> to vector<64x128xbf16>
    %126 = vector.extract_strided_slice %117 {offsets = [128, 0], sizes = [128, 128], strides = [1, 1]} : vector<512x128xbf16> to vector<128x128xbf16>
    %cst_54 = arith.constant dense<0.000000e+00> : vector<64x128xf32>
    %127 = tpu.matmul %125, %126, %cst_54 {dimension_numbers = #tpu.dot_dimension_numbers<[1], [0], [0], [1], [0, 0, 1, 1], [], []>} : vector<64x128xbf16>, vector<128x128xbf16>, vector<64x128xf32> -> vector<64x128xf32>
    %128 = arith.addf %123, %127 : vector<64x128xf32>
    %129 = vector.extract_strided_slice %121 {offsets = [64, 0], sizes = [64, 128], strides = [1, 1]} : vector<192x128xf32> to vector<64x128xf32>
    %130 = arith.truncf %129 : vector<64x128xf32> to vector<64x128xbf16>
    %131 = vector.extract_strided_slice %117 {offsets = [256, 0], sizes = [128, 128], strides = [1, 1]} : vector<512x128xbf16> to vector<128x128xbf16>
    %cst_55 = arith.constant dense<0.000000e+00> : vector<64x128xf32>
    %132 = tpu.matmul %130, %131, %cst_55 {dimension_numbers = #tpu.dot_dimension_numbers<[1], [0], [0], [1], [0, 0, 1, 1], [], []>} : vector<64x128xbf16>, vector<128x128xbf16>, vector<64x128xf32> -> vector<64x128xf32>
    %133 = arith.addf %128, %132 : vector<64x128xf32>
    %134 = vector.extract_strided_slice %121 {offsets = [128, 0], sizes = [64, 128], strides = [1, 1]} : vector<192x128xf32> to vector<64x128xf32>
    %135 = arith.truncf %134 : vector<64x128xf32> to vector<64x128xbf16>
    %136 = vector.extract_strided_slice %117 {offsets = [384, 0], sizes = [128, 128], strides = [1, 1]} : vector<512x128xbf16> to vector<128x128xbf16>
    %cst_56 = arith.constant dense<0.000000e+00> : vector<64x128xf32>
    %137 = tpu.matmul %135, %136, %cst_56 {dimension_numbers = #tpu.dot_dimension_numbers<[1], [0], [0], [1], [0, 0, 1, 1], [], []>} : vector<64x128xbf16>, vector<128x128xbf16>, vector<64x128xf32> -> vector<64x128xf32>
    %138 = arith.addf %133, %137 : vector<64x128xf32>
    %139 = arith.truncf %138 : vector<64x128xf32> to vector<64x128xbf16>
    %cst_57 = arith.constant dense<0.000000e+00> : vector<64x128xf32>
    %140 = tpu.matmul %139, %118, %cst_57 {dimension_numbers = #tpu.dot_dimension_numbers<[1], [0], [0], [1], [0, 0, 1, 1], [], []>} : vector<64x128xbf16>, vector<128x128xbf16>, vector<64x128xf32> -> vector<64x128xf32>
    %cst_58 = arith.constant dense<0.000000e+00> : vector<64x128xf32>
    %141 = tpu.matmul %120, %119, %cst_58 {dimension_numbers = #tpu.dot_dimension_numbers<[1], [0], [0], [1], [0, 0, 1, 1], [], []>} : vector<64x128xbf16>, vector<128x128xbf16>, vector<64x128xf32> -> vector<64x128xf32>
    %142 = arith.addf %140, %141 : vector<64x128xf32>
    %143 = arith.negf %142 : vector<64x128xf32>
    %144 = math.exp %143 : vector<64x128xf32>
    %cst_59 = arith.constant 1.000000e+00 : f32
    %145 = vector.broadcast %cst_59 : f32 to vector<64x128xf32>
    %146 = arith.addf %145, %144 : vector<64x128xf32>
    %147 = arith.divf %145, %146 : vector<64x128xf32>
    %148 = math.tanh %138 : vector<64x128xf32>
    %149 = arith.subf %148, %114 : vector<64x128xf32>
    %150 = arith.mulf %147, %149 : vector<64x128xf32>
    %151 = arith.addf %114, %150 : vector<64x128xf32>
    %c1_i32 = arith.constant 1 : i32
    %152 = arith.truncf %151 : vector<64x128xf32> to vector<64x128xbf16>
    %cst_60 = arith.constant dense<0.000000e+00> : vector<192x128xf32>
    %153 = tpu.matmul %116, %152, %cst_60 {dimension_numbers = #tpu.dot_dimension_numbers<[1], [0], [0], [1], [0, 0, 1, 1], [], []>} : vector<192x64xbf16>, vector<64x128xbf16>, vector<192x128xf32> -> vector<192x128xf32>
    %154 = vector.extract_strided_slice %117 {offsets = [0, 0], sizes = [128, 128], strides = [1, 1]} : vector<512x128xbf16> to vector<128x128xbf16>
    %cst_61 = arith.constant dense<0.000000e+00> : vector<64x128xf32>
    %155 = tpu.matmul %152, %154, %cst_61 {dimension_numbers = #tpu.dot_dimension_numbers<[1], [0], [0], [1], [0, 0, 1, 1], [], []>} : vector<64x128xbf16>, vector<128x128xbf16>, vector<64x128xf32> -> vector<64x128xf32>
    %156 = vector.extract_strided_slice %153 {offsets = [0, 0], sizes = [64, 128], strides = [1, 1]} : vector<192x128xf32> to vector<64x128xf32>
    %157 = arith.truncf %156 : vector<64x128xf32> to vector<64x128xbf16>
    %158 = vector.extract_strided_slice %117 {offsets = [128, 0], sizes = [128, 128], strides = [1, 1]} : vector<512x128xbf16> to vector<128x128xbf16>
    %cst_62 = arith.constant dense<0.000000e+00> : vector<64x128xf32>
    %159 = tpu.matmul %157, %158, %cst_62 {dimension_numbers = #tpu.dot_dimension_numbers<[1], [0], [0], [1], [0, 0, 1, 1], [], []>} : vector<64x128xbf16>, vector<128x128xbf16>, vector<64x128xf32> -> vector<64x128xf32>
    %160 = arith.addf %155, %159 : vector<64x128xf32>
    %161 = vector.extract_strided_slice %153 {offsets = [64, 0], sizes = [64, 128], strides = [1, 1]} : vector<192x128xf32> to vector<64x128xf32>
    %162 = arith.truncf %161 : vector<64x128xf32> to vector<64x128xbf16>
    %163 = vector.extract_strided_slice %117 {offsets = [256, 0], sizes = [128, 128], strides = [1, 1]} : vector<512x128xbf16> to vector<128x128xbf16>
    %cst_63 = arith.constant dense<0.000000e+00> : vector<64x128xf32>
    %164 = tpu.matmul %162, %163, %cst_63 {dimension_numbers = #tpu.dot_dimension_numbers<[1], [0], [0], [1], [0, 0, 1, 1], [], []>} : vector<64x128xbf16>, vector<128x128xbf16>, vector<64x128xf32> -> vector<64x128xf32>
    %165 = arith.addf %160, %164 : vector<64x128xf32>
    %166 = vector.extract_strided_slice %153 {offsets = [128, 0], sizes = [64, 128], strides = [1, 1]} : vector<192x128xf32> to vector<64x128xf32>
    %167 = arith.truncf %166 : vector<64x128xf32> to vector<64x128xbf16>
    %168 = vector.extract_strided_slice %117 {offsets = [384, 0], sizes = [128, 128], strides = [1, 1]} : vector<512x128xbf16> to vector<128x128xbf16>
    %cst_64 = arith.constant dense<0.000000e+00> : vector<64x128xf32>
    %169 = tpu.matmul %167, %168, %cst_64 {dimension_numbers = #tpu.dot_dimension_numbers<[1], [0], [0], [1], [0, 0, 1, 1], [], []>} : vector<64x128xbf16>, vector<128x128xbf16>, vector<64x128xf32> -> vector<64x128xf32>
    %170 = arith.addf %165, %169 : vector<64x128xf32>
    %171 = arith.truncf %170 : vector<64x128xf32> to vector<64x128xbf16>
    %cst_65 = arith.constant dense<0.000000e+00> : vector<64x128xf32>
    %172 = tpu.matmul %171, %118, %cst_65 {dimension_numbers = #tpu.dot_dimension_numbers<[1], [0], [0], [1], [0, 0, 1, 1], [], []>} : vector<64x128xbf16>, vector<128x128xbf16>, vector<64x128xf32> -> vector<64x128xf32>
    %cst_66 = arith.constant dense<0.000000e+00> : vector<64x128xf32>
    %173 = tpu.matmul %152, %119, %cst_66 {dimension_numbers = #tpu.dot_dimension_numbers<[1], [0], [0], [1], [0, 0, 1, 1], [], []>} : vector<64x128xbf16>, vector<128x128xbf16>, vector<64x128xf32> -> vector<64x128xf32>
    %174 = arith.addf %172, %173 : vector<64x128xf32>
    %175 = arith.negf %174 : vector<64x128xf32>
    %176 = math.exp %175 : vector<64x128xf32>
    %cst_67 = arith.constant 1.000000e+00 : f32
    %177 = vector.broadcast %cst_67 : f32 to vector<64x128xf32>
    %178 = arith.addf %177, %176 : vector<64x128xf32>
    %179 = arith.divf %177, %178 : vector<64x128xf32>
    %180 = math.tanh %170 : vector<64x128xf32>
    %181 = arith.subf %180, %151 : vector<64x128xf32>
    %182 = arith.mulf %179, %181 : vector<64x128xf32>
    %183 = arith.addf %151, %182 : vector<64x128xf32>
    %c2_i32 = arith.constant 2 : i32
    %184 = arith.truncf %183 : vector<64x128xf32> to vector<64x128xbf16>
    %cst_68 = arith.constant dense<0.000000e+00> : vector<192x128xf32>
    %185 = tpu.matmul %116, %184, %cst_68 {dimension_numbers = #tpu.dot_dimension_numbers<[1], [0], [0], [1], [0, 0, 1, 1], [], []>} : vector<192x64xbf16>, vector<64x128xbf16>, vector<192x128xf32> -> vector<192x128xf32>
    %186 = vector.extract_strided_slice %117 {offsets = [0, 0], sizes = [128, 128], strides = [1, 1]} : vector<512x128xbf16> to vector<128x128xbf16>
    %cst_69 = arith.constant dense<0.000000e+00> : vector<64x128xf32>
    %187 = tpu.matmul %184, %186, %cst_69 {dimension_numbers = #tpu.dot_dimension_numbers<[1], [0], [0], [1], [0, 0, 1, 1], [], []>} : vector<64x128xbf16>, vector<128x128xbf16>, vector<64x128xf32> -> vector<64x128xf32>
    %188 = vector.extract_strided_slice %185 {offsets = [0, 0], sizes = [64, 128], strides = [1, 1]} : vector<192x128xf32> to vector<64x128xf32>
    %189 = arith.truncf %188 : vector<64x128xf32> to vector<64x128xbf16>
    %190 = vector.extract_strided_slice %117 {offsets = [128, 0], sizes = [128, 128], strides = [1, 1]} : vector<512x128xbf16> to vector<128x128xbf16>
    %cst_70 = arith.constant dense<0.000000e+00> : vector<64x128xf32>
    %191 = tpu.matmul %189, %190, %cst_70 {dimension_numbers = #tpu.dot_dimension_numbers<[1], [0], [0], [1], [0, 0, 1, 1], [], []>} : vector<64x128xbf16>, vector<128x128xbf16>, vector<64x128xf32> -> vector<64x128xf32>
    %192 = arith.addf %187, %191 : vector<64x128xf32>
    %193 = vector.extract_strided_slice %185 {offsets = [64, 0], sizes = [64, 128], strides = [1, 1]} : vector<192x128xf32> to vector<64x128xf32>
    %194 = arith.truncf %193 : vector<64x128xf32> to vector<64x128xbf16>
    %195 = vector.extract_strided_slice %117 {offsets = [256, 0], sizes = [128, 128], strides = [1, 1]} : vector<512x128xbf16> to vector<128x128xbf16>
    %cst_71 = arith.constant dense<0.000000e+00> : vector<64x128xf32>
    %196 = tpu.matmul %194, %195, %cst_71 {dimension_numbers = #tpu.dot_dimension_numbers<[1], [0], [0], [1], [0, 0, 1, 1], [], []>} : vector<64x128xbf16>, vector<128x128xbf16>, vector<64x128xf32> -> vector<64x128xf32>
    %197 = arith.addf %192, %196 : vector<64x128xf32>
    %198 = vector.extract_strided_slice %185 {offsets = [128, 0], sizes = [64, 128], strides = [1, 1]} : vector<192x128xf32> to vector<64x128xf32>
    %199 = arith.truncf %198 : vector<64x128xf32> to vector<64x128xbf16>
    %200 = vector.extract_strided_slice %117 {offsets = [384, 0], sizes = [128, 128], strides = [1, 1]} : vector<512x128xbf16> to vector<128x128xbf16>
    %cst_72 = arith.constant dense<0.000000e+00> : vector<64x128xf32>
    %201 = tpu.matmul %199, %200, %cst_72 {dimension_numbers = #tpu.dot_dimension_numbers<[1], [0], [0], [1], [0, 0, 1, 1], [], []>} : vector<64x128xbf16>, vector<128x128xbf16>, vector<64x128xf32> -> vector<64x128xf32>
    %202 = arith.addf %197, %201 : vector<64x128xf32>
    %203 = arith.truncf %202 : vector<64x128xf32> to vector<64x128xbf16>
    %cst_73 = arith.constant dense<0.000000e+00> : vector<64x128xf32>
    %204 = tpu.matmul %203, %118, %cst_73 {dimension_numbers = #tpu.dot_dimension_numbers<[1], [0], [0], [1], [0, 0, 1, 1], [], []>} : vector<64x128xbf16>, vector<128x128xbf16>, vector<64x128xf32> -> vector<64x128xf32>
    %cst_74 = arith.constant dense<0.000000e+00> : vector<64x128xf32>
    %205 = tpu.matmul %184, %119, %cst_74 {dimension_numbers = #tpu.dot_dimension_numbers<[1], [0], [0], [1], [0, 0, 1, 1], [], []>} : vector<64x128xbf16>, vector<128x128xbf16>, vector<64x128xf32> -> vector<64x128xf32>
    %206 = arith.addf %204, %205 : vector<64x128xf32>
    %207 = arith.negf %206 : vector<64x128xf32>
    %208 = math.exp %207 : vector<64x128xf32>
    %cst_75 = arith.constant 1.000000e+00 : f32
    %209 = vector.broadcast %cst_75 : f32 to vector<64x128xf32>
    %210 = arith.addf %209, %208 : vector<64x128xf32>
    %211 = arith.divf %209, %210 : vector<64x128xf32>
    %212 = math.tanh %202 : vector<64x128xf32>
    %213 = arith.subf %212, %183 : vector<64x128xf32>
    %214 = arith.mulf %211, %213 : vector<64x128xf32>
    %215 = arith.addf %183, %214 : vector<64x128xf32>
    %c0_76 = arith.constant 0 : index
    %c0_77 = arith.constant 0 : index
    %216 = vector.load %arg19[%c0_76, %c0_77] : memref<128x128xbf16, #tpu.memory_space<vmem>>, vector<128x128xbf16>
    %217 = arith.truncf %215 : vector<64x128xf32> to vector<64x128xbf16>
    %cst_78 = arith.constant dense<0.000000e+00> : vector<64x128xf32>
    %218 = tpu.matmul %217, %216, %cst_78 {dimension_numbers = #tpu.dot_dimension_numbers<[1], [0], [0], [1], [0, 0, 1, 1], [], []>} : vector<64x128xbf16>, vector<128x128xbf16>, vector<64x128xf32> -> vector<64x128xf32>
    %c0_79 = arith.constant 0 : index
    %c0_80 = arith.constant 0 : index
    %219 = vector.load %arg18[%c0_79, %c0_80] : memref<128x128xbf16, #tpu.memory_space<vmem>>, vector<128x128xbf16>
    %220 = arith.truncf %84 : vector<1x128xf32> to vector<1x128xbf16>
    %cst_81 = arith.constant dense<0.000000e+00> : vector<1x128xf32>
    %221 = tpu.matmul %220, %219, %cst_81 {dimension_numbers = #tpu.dot_dimension_numbers<[1], [0], [0], [1], [0, 0, 1, 1], [], []>} : vector<1x128xbf16>, vector<128x128xbf16>, vector<1x128xf32> -> vector<1x128xf32>
    %222 = vector.broadcast %221 : vector<1x128xf32> to vector<64x128xf32>
    %223 = arith.addf %218, %222 : vector<64x128xf32>
    %c0_82 = arith.constant 0 : index
    %c0_83 = arith.constant 0 : index
    %224 = vector.load %arg20[%c0_82, %c0_83] : memref<1x128xf32, #tpu.memory_space<vmem>>, vector<1x128xf32>
    %225 = vector.broadcast %224 : vector<1x128xf32> to vector<64x128xf32>
    %226 = arith.addf %223, %225 : vector<64x128xf32>
    %cst_84 = arith.constant 0.000000e+00 : f32
    %227 = vector.broadcast %cst_84 : f32 to vector<64x128xf32>
    %228 = arith.maximumf %226, %227 : vector<64x128xf32>
    %c0_85 = arith.constant 0 : index
    %c0_86 = arith.constant 0 : index
    %229 = vector.load %arg21[%c0_85, %c0_86] : memref<128x128xbf16, #tpu.memory_space<vmem>>, vector<128x128xbf16>
    %230 = arith.truncf %228 : vector<64x128xf32> to vector<64x128xbf16>
    %cst_87 = arith.constant dense<0.000000e+00> : vector<64x128xf32>
    %231 = tpu.matmul %230, %229, %cst_87 {dimension_numbers = #tpu.dot_dimension_numbers<[1], [0], [0], [1], [0, 0, 1, 1], [], []>} : vector<64x128xbf16>, vector<128x128xbf16>, vector<64x128xf32> -> vector<64x128xf32>
    %c0_88 = arith.constant 0 : index
    %c0_89 = arith.constant 0 : index
    %232 = vector.load %arg22[%c0_88, %c0_89] : memref<1x128xf32, #tpu.memory_space<vmem>>, vector<1x128xf32>
    %233 = vector.broadcast %232 : vector<1x128xf32> to vector<64x128xf32>
    %234 = arith.addf %231, %233 : vector<64x128xf32>
    %cst_90 = arith.constant 0.000000e+00 : f32
    %235 = vector.broadcast %cst_90 : f32 to vector<64x128xf32>
    %236 = arith.maximumf %234, %235 : vector<64x128xf32>
    %c0_91 = arith.constant 0 : index
    %c0_92 = arith.constant 0 : index
    %237 = vector.load %arg23[%c0_91, %c0_92] : memref<1x128xbf16, #tpu.memory_space<vmem>>, vector<1x128xbf16>
    %238 = arith.truncf %236 : vector<64x128xf32> to vector<64x128xbf16>
    %cst_93 = arith.constant dense<0.000000e+00> : vector<1x64xf32>
    %239 = tpu.matmul %237, %238, %cst_93 {dimension_numbers = #tpu.dot_dimension_numbers<[1], [1], [0], [0], [0, 0, 1, 0], [], []>} : vector<1x128xbf16>, vector<64x128xbf16>, vector<1x64xf32> -> vector<1x64xf32>
    %c0_94 = arith.constant 0 : index
    %c0_95 = arith.constant 0 : index
    %240 = vector.load %arg24[%c0_94, %c0_95] : memref<1x1xf32, #tpu.memory_space<vmem>>, vector<1x1xf32>
    %241 = vector.broadcast %240 : vector<1x1xf32> to vector<1x64xf32>
    %242 = arith.addf %239, %241 : vector<1x64xf32>
    %c0_96 = arith.constant 0 : index
    %c0_97 = arith.constant 0 : index
    %c0_98 = arith.constant 0 : index
    %243 = vector.load %arg25[%c0_96, %c0_97, %c0_98] : memref<1x1x64xf32, #tpu.memory_space<vmem>>, vector<1x1x64xf32>
    %244 = vector.shape_cast %243 : vector<1x1x64xf32> to vector<1x64xf32>
    %245 = vector.shape_cast %242 : vector<1x64xf32> to vector<1x1x64xf32>
    tpu.vector_store %arg25[%c0_96, %c0_97, %c0_98], %245 {strides = array<i32>} : memref<1x1x64xf32, #tpu.memory_space<vmem>>, vector<1x1x64xf32>,
    return
  }
  func.func @transform_0(%arg0: i32) -> (i32, i32, i32) {
    %c0_i32 = arith.constant 0 : i32
    %c0_i32_0 = arith.constant 0 : i32
    %c0_i32_1 = arith.constant 0 : i32
    return %arg0, %c0_i32, %c0_i32_0 : i32, i32, i32
  }
  func.func @transform_1(%arg0: i32) -> (i32, i32, i32) {
    %c0_i32 = arith.constant 0 : i32
    %c0_i32_0 = arith.constant 0 : i32
    %c0_i32_1 = arith.constant 0 : i32
    return %arg0, %c0_i32, %c0_i32_0 : i32, i32, i32
  }
  func.func @transform_2(%arg0: i32) -> (i32, i32, i32) {
    %c0_i32 = arith.constant 0 : i32
    %c0_i32_0 = arith.constant 0 : i32
    %c0_i32_1 = arith.constant 0 : i32
    return %arg0, %c0_i32, %c0_i32_0 : i32, i32, i32
  }
  func.func @transform_3(%arg0: i32) -> (i32, i32) {
    %c0_i32 = arith.constant 0 : i32
    %c0_i32_0 = arith.constant 0 : i32
    %c0_i32_1 = arith.constant 0 : i32
    return %c0_i32, %c0_i32_0 : i32, i32
  }
  func.func @transform_4(%arg0: i32) -> (i32, i32) {
    %c0_i32 = arith.constant 0 : i32
    %c0_i32_0 = arith.constant 0 : i32
    %c0_i32_1 = arith.constant 0 : i32
    return %c0_i32, %c0_i32_0 : i32, i32
  }
  func.func @transform_5(%arg0: i32) -> (i32, i32) {
    %c0_i32 = arith.constant 0 : i32
    %c0_i32_0 = arith.constant 0 : i32
    %c0_i32_1 = arith.constant 0 : i32
    return %c0_i32, %c0_i32_0 : i32, i32
  }
  func.func @transform_6(%arg0: i32) -> (i32, i32) {
    %c0_i32 = arith.constant 0 : i32
    %c0_i32_0 = arith.constant 0 : i32
    %c0_i32_1 = arith.constant 0 : i32
    return %c0_i32, %c0_i32_0 : i32, i32
  }
  func.func @transform_7(%arg0: i32) -> (i32, i32) {
    %c0_i32 = arith.constant 0 : i32
    %c0_i32_0 = arith.constant 0 : i32
    %c0_i32_1 = arith.constant 0 : i32
    return %c0_i32, %c0_i32_0 : i32, i32
  }
  func.func @transform_8(%arg0: i32) -> (i32, i32) {
    %c0_i32 = arith.constant 0 : i32
    %c0_i32_0 = arith.constant 0 : i32
    %c0_i32_1 = arith.constant 0 : i32
    return %c0_i32, %c0_i32_0 : i32, i32
  }
  func.func @transform_9(%arg0: i32) -> (i32, i32) {
    %c0_i32 = arith.constant 0 : i32
    %c0_i32_0 = arith.constant 0 : i32
    %c0_i32_1 = arith.constant 0 : i32
    return %c0_i32, %c0_i32_0 : i32, i32
  }
  func.func @transform_10(%arg0: i32) -> (i32, i32) {
    %c0_i32 = arith.constant 0 : i32
    %c0_i32_0 = arith.constant 0 : i32
    %c0_i32_1 = arith.constant 0 : i32
    return %c0_i32, %c0_i32_0 : i32, i32
  }
  func.func @transform_11(%arg0: i32) -> (i32, i32) {
    %c0_i32 = arith.constant 0 : i32
    %c0_i32_0 = arith.constant 0 : i32
    %c0_i32_1 = arith.constant 0 : i32
    return %c0_i32, %c0_i32_0 : i32, i32
  }
  func.func @transform_12(%arg0: i32) -> (i32, i32) {
    %c0_i32 = arith.constant 0 : i32
    %c0_i32_0 = arith.constant 0 : i32
    %c0_i32_1 = arith.constant 0 : i32
    return %c0_i32, %c0_i32_0 : i32, i32
  }
  func.func @transform_13(%arg0: i32) -> (i32, i32) {
    %c0_i32 = arith.constant 0 : i32
    %c0_i32_0 = arith.constant 0 : i32
    %c0_i32_1 = arith.constant 0 : i32
    return %c0_i32, %c0_i32_0 : i32, i32
  }
  func.func @transform_14(%arg0: i32) -> (i32, i32) {
    %c0_i32 = arith.constant 0 : i32
    %c0_i32_0 = arith.constant 0 : i32
    %c0_i32_1 = arith.constant 0 : i32
    return %c0_i32, %c0_i32_0 : i32, i32
  }
  func.func @transform_15(%arg0: i32) -> (i32, i32) {
    %c0_i32 = arith.constant 0 : i32
    %c0_i32_0 = arith.constant 0 : i32
    %c0_i32_1 = arith.constant 0 : i32
    return %c0_i32, %c0_i32_0 : i32, i32
  }
  func.func @transform_16(%arg0: i32) -> (i32, i32) {
    %c0_i32 = arith.constant 0 : i32
    %c0_i32_0 = arith.constant 0 : i32
    %c0_i32_1 = arith.constant 0 : i32
    return %c0_i32, %c0_i32_0 : i32, i32
  }
  func.func @transform_17(%arg0: i32) -> (i32, i32) {
    %c0_i32 = arith.constant 0 : i32
    %c0_i32_0 = arith.constant 0 : i32
    %c0_i32_1 = arith.constant 0 : i32
    return %c0_i32, %c0_i32_0 : i32, i32
  }
  func.func @transform_18(%arg0: i32) -> (i32, i32) {
    %c0_i32 = arith.constant 0 : i32
    %c0_i32_0 = arith.constant 0 : i32
    %c0_i32_1 = arith.constant 0 : i32
    return %c0_i32, %c0_i32_0 : i32, i32
  }
  func.func @transform_19(%arg0: i32) -> (i32, i32) {
    %c0_i32 = arith.constant 0 : i32
    %c0_i32_0 = arith.constant 0 : i32
    %c0_i32_1 = arith.constant 0 : i32
    return %c0_i32, %c0_i32_0 : i32, i32
  }
  func.func @transform_20(%arg0: i32) -> (i32, i32) {
    %c0_i32 = arith.constant 0 : i32
    %c0_i32_0 = arith.constant 0 : i32
    %c0_i32_1 = arith.constant 0 : i32
    return %c0_i32, %c0_i32_0 : i32, i32
  }
  func.func @transform_21(%arg0: i32) -> (i32, i32) {
    %c0_i32 = arith.constant 0 : i32
    %c0_i32_0 = arith.constant 0 : i32
    %c0_i32_1 = arith.constant 0 : i32
    return %c0_i32, %c0_i32_0 : i32, i32
  }
  func.func @transform_22(%arg0: i32) -> (i32, i32) {
    %c0_i32 = arith.constant 0 : i32
    %c0_i32_0 = arith.constant 0 : i32
    %c0_i32_1 = arith.constant 0 : i32
    return %c0_i32, %c0_i32_0 : i32, i32
  }
  func.func @transform_23(%arg0: i32) -> (i32, i32) {
    %c0_i32 = arith.constant 0 : i32
    %c0_i32_0 = arith.constant 0 : i32
    %c0_i32_1 = arith.constant 0 : i32
    return %c0_i32, %c0_i32_0 : i32, i32
  }
  func.func @transform_24(%arg0: i32) -> (i32, i32, i32) {
    %c0_i32 = arith.constant 0 : i32
    %c0_i32_0 = arith.constant 0 : i32
    %c0_i32_1 = arith.constant 0 : i32
    return %arg0, %c0_i32, %c0_i32_0 : i32, i32, i32
  }
}

</mosaic_0001>

<bundles_post_ra>
// kernel: rgcn_logits.1
= control target key start
LH: loop header
LB: loop body
LE: loop exit
PB: predicated region body
PF: predicated region fallthrough
CT: control target
= control target key end

     0   :  { %s10521_s0 = inlined_call_operand.vmem [shape: bf16[4,1,256], index: 0, kind: input, shape index: {}]   ;;  %s10522_s1 = inlined_call_operand.vmem [shape: bf16[4,64,256], index: 1, kind: input, shape index: {}]   ;;  %s10523_s2 = inlined_call_operand.vmem [shape: bf16[4,192,64], index: 2, kind: input, shape index: {}]   ;;  %s10524_s3 = inlined_call_operand.vmem [shape: bf16[256,1024], index: 3, kind: input, shape index: {}]   ;;  %s10525_s4 = inlined_call_operand.vmem [shape: f32[1,1024], index: 4, kind: input, shape index: {}]   ;;  %s10526_s5 = inlined_call_operand.hbm [shape: bf16[256,512], index: 5, kind: input, shape index: {}]   ;;  %s10527_s6 = inlined_call_operand.vmem [shape: f32[1,512], index: 6, kind: input, shape index: {}]   ;;  %s10528_s7 = inlined_call_operand.vmem [shape: bf16[256,128], index: 7, kind: input, shape index: {}]   ;;  %s10529_s8 = inlined_call_operand.vmem [shape: f32[1,128], index: 8, kind: input, shape index: {}]   ;;  %s10530_s9 = inlined_call_operand.hbm [shape: bf16[128,256], index: 9, kind: input, shape index: {}]   ;;  %s10531_s10 = inlined_call_operand.hbm [shape: bf16[128,256], index: 10, kind: input, shape index: {}]   ;;  %s10532_s11 = inlined_call_operand.vmem [shape: f32[1,256], index: 11, kind: input, shape index: {}]   ;;  %s10533_s12 = inlined_call_operand.hbm [shape: bf16[256,128], index: 12, kind: input, shape index: {}]   ;;  %s10534_s13 = inlined_call_operand.vmem [shape: f32[1,128], index: 13, kind: input, shape index: {}]   ;;  %s10535_s14 = inlined_call_operand.hbm [shape: bf16[512,128], index: 14, kind: input, shape index: {}]   ;;  %s10536_s15 = inlined_call_operand.hbm [shape: bf16[128,128], index: 15, kind: input, shape index: {}]   ;;  %s10537_s16 = inlined_call_operand.hbm [shape: bf16[128,128], index: 16, kind: input, shape index: {}]   ;;  %s10538_s17 = inlined_call_operand.hbm [shape: bf16[128,128], index: 17, kind: input, shape index: {}]   ;;  %s10539_s18 = inlined_call_operand.hbm [shape: bf16[128,128], index: 18, kind: input, shape index: {}]   ;;  %s10540_s19 = inlined_call_operand.vmem [shape: f32[1,128], index: 19, kind: input, shape index: {}]   ;;  %s10541_s20 = inlined_call_operand.hbm [shape: bf16[128,128], index: 20, kind: input, shape index: {}]   ;;  %s10542_s21 = inlined_call_operand.vmem [shape: f32[1,128], index: 21, kind: input, shape index: {}]   ;;  %s10543_s22 = inlined_call_operand.vmem [shape: bf16[1,128], index: 22, kind: input, shape index: {}]   ;;  %s10544_s23 = inlined_call_operand.<no memory space> [shape: f32[1,1], index: 23, kind: input, shape index: {}]   ;;  %s10545_s24 = inlined_call_operand.hbm [shape: f32[4,1,64], index: 24, kind: output, shape index: {}]  }
   0x1   :  { %10638 = sst [smem:[#allocation76_spill]] %s10521_s0  ;;  %v29_v0 = vstv %s10544_s23 }
   0x2   :  { %10639 = sst [smem:[#allocation77_spill]] %s10522_s1  ;;  %30 = vst [vmem:[#allocation2] sm:$0x1] %v29_v0 }
   0x3   :  { %10640 = sst [smem:[#allocation78_spill]] %s10523_s2 }
   0x4   :  { %10641 = sst [smem:[#allocation79_spill]] %s10524_s3 }
   0x5   :  { %10642 = sst [smem:[#allocation80_spill]] %s10525_s4 }
   0x6   :  { %10643 = sst [smem:[#allocation81_spill]] %s10526_s5 }
   0x7   :  { %10644 = sst [smem:[#allocation82_spill]] %s10527_s6 }
   0x8   :  { %10645 = sst [smem:[#allocation83_spill]] %s10528_s7 }
   0x9   :  { %10646 = sst [smem:[#allocation84_spill]] %s10529_s8 }
   0xa   :  { %10647 = sst [smem:[#allocation85_spill]] %s10530_s9 }
   0xb   :  { %10648 = sst [smem:[#allocation86_spill]] %s10533_s12 }
   0xc   :  { %10649 = sst [smem:[#allocation87_spill]] %s10536_s15 }
   0xd   :  { %31 = vsyncpa [#allocation4], 0 }
   0xe   :  { %32 = vsyncpa [#allocation7], 0 }
   0xf   :  { %33 = vsyncpa [#allocation10], 0 }
  0x10   :  { %34 = vsyncpa [#allocation13], 0 }
  0x11   :  { %35 = vsyncpa [#allocation16], 0 }
  0x12   :  { %36 = vsyncpa [#allocation19], 0 }
  0x13   :  { %37 = vsyncpa [#allocation5], 0 }
  0x14   :  { %39 = vsyncpa [#allocation5 + $0x1], 0  ;;  %s8997_s27 = smov 0   ;;  %s8999_s28 = smov 0  }
  0x15   :  { %s9001_s6 = smov 0   ;;  %s9003_s2 = smov 0  }
  0x16 LB: > { %10650 = sst [smem:[#allocation28_spill]] %s8833_s27  ;;  %s9018_s23 = sadd.s32 4294967295, %s8845_s2   ;;  %s8845_s2 = sphi %s9003_s2, %s10777_s2   ;;  %s8841_s6 = sphi %s9001_s6, %s10782_s6   ;;  %s8837_s28 = sphi %s8999_s28, %s10781_s28   ;;  %s8833_s27 = sphi %s8997_s27, %s10780_s27  }
  0x17   : > { %10651 = sst [smem:[#allocation29_spill]] %s8841_s6  ;;  %s6380_s29 = sadd.s32 4294967294, %s8845_s2  }
  0x18   : > { %s9022_s0 = sadd.s32 1, %s8845_s2   ;;  %s571_s7 = sadd.s32 1, %s8841_s6 }
  0x19   : > { %10652 = sst [smem:[#allocation30_spill]] %s9022_s0  ;;  %s568_s30 = ssub.s32 %s8845_s2, %s9022_s0 }
  0x1a   : > { %p581_p0 = scmp.ne.s32.totalorder %s8841_s6, %s8837_s28  ;;  %p569_p1 = scmp.eq.s32.totalorder %s568_s30, 0 }
  0x1b   : > { %p582_p2 = scmp.eq.s32.totalorder %s9018_s23, 3  ;;  %p587_p3 = scmp.ne.s32.totalorder %s8837_s28, %s8833_s27 }
  0x1c   : > { %p588_p4 = scmp.eq.s32.totalorder %s6380_s29, 3  ;;  %p6381_p7 = scmp.ge.s32.totalorder %s8845_s2, 1 }
  0x1d   : > { %s9033_s3 = scalar_select %p569_p1, %s8841_s6, %s571_s7  }
  0x1e   : > { %p9035_p5 = por %p582_p2, %p581_p0  ;;  %p9039_p6 = por %p588_p4, %p587_p3 }
  0x1f   : > { %10653 = sst [smem:[#allocation31_spill]] %s9033_s3  ;;  %p595_p8 = scmp.lt.s32.totalorder %s8845_s2, 5 }
  0x20   : > { %s10655_s8 = scalar_select %p9039_p6, 1, 0 }
  0x21   : > { %p10555_p9 = scmp.eq.s32.totalorder %s9018_s23, 0  ;;  %p9046_p10 = pnand %p6381_p7, %p595_p8 }
  0x22   : > { %10656 = sst [smem:[#allocation32_spill]] %s10655_s8  ;;  %s8847_s1 = smov [#allocation6]  }
  0x23   : > { %s635_s5 = sshll.u32 %s8847_s1, 4  ;;  %p7866_p11 = pneg %p9046_p10  ;;  %s636_s5 = int_to_ptr.vmem [resolvable:$true] %s635_s5 }
  0x24   : > { %s8848_s29 = smov [#allocation9]   ;;  %s8512_s3 = scalar_lea.vmem %s636_s5, 2048 }
  0x25   : > { %p9054_p12 = pnand %p10555_p9, %p7866_p11  ;;  %s664_s7 = sshll.u32 %s8848_s29, 4  ;;  %s665_s7 = int_to_ptr.vmem [resolvable:$true] %s664_s7 }
  0x26   : > { %p8513_p0 = scmp.ne.s32.totalorder %s636_s5, %s8512_s3  ;;  %p8520_p3 = scmp.lt.s32.totalorder %s636_s5, %s636_s5 }
  0x27   : > { %p9060_p13 = pneg %p9054_p12  ;;  %p8521_p4 = scmp.lt.s32.totalorder %s8512_s3, %s8512_s3 }
  0x29   : > { %p8515_p1 = pnand %p8513_p0, %p9060_p13  ;;  %p8522_p7 = por %p8521_p4, %p8520_p3 }
  0x2b   : > { %p8516_p2 = pneg %p8515_p1 }
  0x2d   : > { %p8523_p8 = pnand %p8522_p7, %p8516_p2 }
  0x2f   : > { %8526 = shalt.err (!%p8523_p8)
}
  0x30   : > { %s10553_s1 = smov 128   ;;  %s10554_s29 = smov 8  }
  0x31   : > { %s10660_s9 = sld [smem:[#allocation85_spill]]  ;;  %s8538_s8 = scalar_lea.vmem %s665_s7, 2048 }
  0x32   : > { %p8539_p11 = scmp.ne.s32.totalorder %s665_s7, %s8538_s8  ;;  %p8546_p3 = scmp.lt.s32.totalorder %s665_s7, %s665_s7 }
  0x33   : > { %p8547_p2 = scmp.lt.s32.totalorder %s8538_s8, %s8538_s8 }
  0x34   : > { %p8541_p0 = pnand %p8539_p11, %p9060_p13 }
  0x35   : > { %p8548_p4 = por %p8547_p2, %p8546_p3 }
  0x36   : > { %p8542_p1 = pneg %p8541_p0 }
  0x37   : > { %7872 = dma.hbm_to_vmem [thread:$0]  (!%p9054_p12), %s10660_s9, 2048, %s636_s5, [#allocation7], %s10553_s1, %s10553_s1, %s10554_s29  }
  0x38   : > { %p8549_p7 = pnand %p8548_p4, %p8542_p1 }
  0x3a   : > { %8552 = shalt.err (!%p8549_p7)
}
  0x3b   : > { %s10556_s3 = smov 64   ;;  %s10558_s27 = smov 4  }
  0x3c   : > { %s10661_s12 = sld [smem:[#allocation86_spill]]  ;;  %s8853_s5 = smov [#allocation12]  }
  0x3d   : > { %s693_s1 = sshll.u32 %s8853_s5, 4  ;;  %s8854_s29 = smov [#allocation15]   ;;  %s694_s1 = int_to_ptr.vmem [resolvable:$true] %s693_s1 }
  0x3e   : > { %s719_s9 = sshll.u32 %s8854_s29, 4  ;;  %s8564_s8 = scalar_lea.vmem %s694_s1, 1024  ;;  %s720_s9 = int_to_ptr.vmem [resolvable:$true] %s719_s9 }
  0x3f   : > { %p8565_p8 = scmp.ne.s32.totalorder %s694_s1, %s8564_s8  ;;  %p8572_p1 = scmp.lt.s32.totalorder %s694_s1, %s694_s1 }
  0x40   : > { %p8573_p3 = scmp.lt.s32.totalorder %s8564_s8, %s8564_s8 }
  0x41   : > { %p8567_p11 = pnand %p8565_p8, %p9060_p13 }
  0x42   : > { %7878 = dma.hbm_to_vmem [thread:$0]  (!%p9054_p12), %s10661_s12, 2048, %s665_s7, [#allocation10], %s10556_s3, %s10556_s3, %s10558_s27  }
  0x43   : > { %p8568_p0 = pneg %p8567_p11  ;;  %p8574_p2 = por %p8573_p3, %p8572_p1 }
  0x45   : > { %p8575_p4 = pnand %p8574_p2, %p8568_p0 }
  0x47   : > { %8578 = shalt.err (!%p8575_p4)
}
  0x48   : > { %s10662_s15 = sld [smem:[#allocation87_spill]]  ;;  %s8590_s29 = scalar_lea.vmem %s720_s9, 1024 }
  0x49   : > { %p8591_p7 = scmp.ne.s32.totalorder %s720_s9, %s8590_s29  ;;  %p8598_p9 = scmp.lt.s32.totalorder %s720_s9, %s720_s9 }
  0x4a   : > { %p8599_p6 = scmp.lt.s32.totalorder %s8590_s29, %s8590_s29 }
  0x4b   : > { %p8593_p8 = pnand %p8591_p7, %p9060_p13 }
  0x4c   : > { %p8600_p1 = por %p8599_p6, %p8598_p9 }
  0x4d   : > { %p8594_p11 = pneg %p8593_p8 }
  0x4e   : > { %7884 = dma.hbm_to_vmem [thread:$0]  (!%p9054_p12), %s10662_s15, 1024, %s694_s1, [#allocation13], %s10556_s3, %s10556_s3, %s10558_s27  }
  0x4f   : > { %p8601_p0 = pnand %p8600_p1, %p8594_p11 }
  0x51   : > { %8604 = shalt.err (!%p8601_p0)
}
  0x52   : > { %7890 = dma.hbm_to_vmem [thread:$0]  (!%p9054_p12), %s10538_s17, 1024, %s720_s9, [#allocation16], %s10556_s3, %s10556_s3, %s10558_s27  }
  0x53   : > { %s8855_s1 = smov [#allocation3]  }
  0x54   : > { %s613_s8 = sshll.u32 %s8855_s1, 4  ;;  %s614_s8 = int_to_ptr.vmem [resolvable:$true] %s613_s8 }
  0x55   : > { %s8616_s7 = scalar_lea.vmem %s614_s8, 8192  ;;  %p8624_p9 = scmp.lt.s32.totalorder %s614_s8, %s614_s8 }
  0x56   : > { %p8617_p3 = scmp.ne.s32.totalorder %s614_s8, %s8616_s7  ;;  %p8625_p4 = scmp.lt.s32.totalorder %s8616_s7, %s8616_s7 }
  0x58   : > { %p8619_p2 = pnand %p8617_p3, %p9060_p13  ;;  %p8626_p7 = por %p8625_p4, %p8624_p9 }
  0x5a   : > { %p8620_p6 = pneg %p8619_p2 }
  0x5c   : > { %p8627_p8 = pnand %p8626_p7, %p8620_p6 }
  0x5e   : > { %8630 = shalt.err (!%p8627_p8)
}
  0x5f   : > { %s8856_s6 = smov 256   ;;  %s8857_s29 = smov 16  }
  0x60   : > { %s10663_s5 = sld [smem:[#allocation81_spill]]  ;;  %s8858_s1 = smov [#allocation8]  }
  0x61   : > { %s648_s3 = sshll.u32 %s8858_s1, 4  ;;  %s8859_s27 = smov [#allocation11]   ;;  %s649_s3 = int_to_ptr.vmem [resolvable:$true] %s648_s3 }
  0x62   : > { %s680_s12 = sshll.u32 %s8859_s27, 4  ;;  %s8642_s15 = scalar_lea.vmem %s649_s3, 2048  ;;  %s681_s12 = int_to_ptr.vmem [resolvable:$true] %s680_s12 }
  0x63   : > { %p8643_p11 = scmp.ne.s32.totalorder %s649_s3, %s8642_s15  ;;  %p8650_p3 = scmp.lt.s32.totalorder %s649_s3, %s649_s3 }
  0x64   : > { %p8651_p2 = scmp.lt.s32.totalorder %s8642_s15, %s8642_s15 }
  0x65   : > { %p8645_p1 = pnand %p8643_p11, %p9060_p13 }
  0x66   : > { %7869 = dma.hbm_to_vmem [thread:$0]  (!%p9054_p12), %s10663_s5, 8192, %s614_s8, [#allocation4], %s8856_s6, %s8856_s6, %s8857_s29  }
  0x67   : > { %p8646_p0 = pneg %p8645_p1  ;;  %p8652_p6 = por %p8651_p2, %p8650_p3 }
  0x69   : > { %p8653_p9 = pnand %p8652_p6, %p8646_p0 }
  0x6b   : > { %8656 = shalt.err (!%p8653_p9)
}
  0x6c   : > { %s10664_s7 = smov 8   ;;  %s10665_s0 = smov 128  }
  0x6d   : > { %7875 = dma.hbm_to_vmem [thread:$0]  (!%p9054_p12), %s10531_s10, 2048, %s649_s3, [#allocation7], %s10665_s0, %s10665_s0, %s10664_s7  }
  0x6e   : > { %s8668_s27 = scalar_lea.vmem %s681_s12, 4096  ;;  %p8676_p11 = scmp.lt.s32.totalorder %s681_s12, %s681_s12 }
  0x6f   : > { %p8669_p4 = scmp.ne.s32.totalorder %s681_s12, %s8668_s27  ;;  %p8677_p1 = scmp.lt.s32.totalorder %s8668_s27, %s8668_s27 }
  0x71   : > { %p8671_p7 = pnand %p8669_p4, %p9060_p13  ;;  %p8678_p0 = por %p8677_p1, %p8676_p11 }
  0x73   : > { %p8672_p8 = pneg %p8671_p7 }
  0x75   : > { %p8679_p3 = pnand %p8678_p0, %p8672_p8 }
  0x77   : > { %8682 = shalt.err (!%p8679_p3)
}
  0x78   : > { %s10666_s15 = smov 4   ;;  %s10667_s29 = smov 64  }
  0x79   : > { %7881 = dma.hbm_to_vmem [thread:$0]  (!%p9054_p12), %s10535_s14, 4096, %s681_s12, [#allocation10], %s10667_s29, %s10667_s29, %s10666_s15  }
  0x7a   : > { %s8860_s3 = smov [#allocation14]   ;;  %s8861_s7 = smov [#allocation17]  }
  0x7b   : > { %s706_s1 = sshll.u32 %s8860_s3, 4  ;;  %s732_s0 = sshll.u32 %s8861_s7, 4  ;;  %s707_s1 = int_to_ptr.vmem [resolvable:$true] %s706_s1  ;;  %s733_s0 = int_to_ptr.vmem [resolvable:$true] %s732_s0 }
  0x7c   : > { %s8694_s8 = scalar_lea.vmem %s707_s1, 1024  ;;  %p8702_p4 = scmp.lt.s32.totalorder %s707_s1, %s707_s1 }
  0x7d   : > { %p8695_p2 = scmp.ne.s32.totalorder %s707_s1, %s8694_s8  ;;  %p8703_p7 = scmp.lt.s32.totalorder %s8694_s8, %s8694_s8 }
  0x7f   : > { %p8697_p6 = pnand %p8695_p2, %p9060_p13  ;;  %p8704_p8 = por %p8703_p7, %p8702_p4 }
  0x81   : > { %p8698_p9 = pneg %p8697_p6 }
  0x83   : > { %p8705_p11 = pnand %p8704_p8, %p8698_p9 }
  0x85   : > { %8708 = shalt.err (!%p8705_p11)
}
  0x86   : > { %7887 = dma.hbm_to_vmem [thread:$0]  (!%p9054_p12), %s10537_s16, 1024, %s707_s1, [#allocation13], %s10667_s29, %s10667_s29, %s10666_s15  }
  0x87   : > { %s8720_s27 = scalar_lea.vmem %s733_s0, 1024  ;;  %p8728_p2 = scmp.lt.s32.totalorder %s733_s0, %s733_s0 }
  0x88   : > { %p8721_p1 = scmp.ne.s32.totalorder %s733_s0, %s8720_s27  ;;  %p8729_p6 = scmp.lt.s32.totalorder %s8720_s27, %s8720_s27 }
  0x8a   : > { %p8723_p0 = pnand %p8721_p1, %p9060_p13  ;;  %p8730_p9 = por %p8729_p6, %p8728_p2 }
  0x8c   : > { %p8724_p3 = pneg %p8723_p0 }
  0x8e   : > { %p8731_p4 = pnand %p8730_p9, %p8724_p3 }
  0x90   : > { %8734 = shalt.err (!%p8731_p4)
}
  0x91   : > { %7893 = dma.hbm_to_vmem [thread:$0]  (!%p9054_p12), %s10539_s18, 1024, %s733_s0, [#allocation16], %s10667_s29, %s10667_s29, %s10666_s15  }
  0x92   : > { %s8862_s3 = smov [#allocation18]  }
  0x93   : > { %s748_s1 = sshll.u32 %s8862_s3, 4  ;;  %s749_s1 = int_to_ptr.vmem [resolvable:$true] %s748_s1 }
  0x94   : > { %s8746_s7 = scalar_lea.vmem %s749_s1, 1024  ;;  %p8754_p1 = scmp.lt.s32.totalorder %s749_s1, %s749_s1 }
  0x95   : > { %p8747_p7 = scmp.ne.s32.totalorder %s749_s1, %s8746_s7  ;;  %p8755_p0 = scmp.lt.s32.totalorder %s8746_s7, %s8746_s7 }
  0x97   : > { %p8749_p8 = pnand %p8747_p7, %p9060_p13  ;;  %p8756_p3 = por %p8755_p0, %p8754_p1 }
  0x99   : > { %p8750_p11 = pneg %p8749_p8 }
  0x9b   : > { %p8757_p2 = pnand %p8756_p3, %p8750_p11 }
  0x9d   : > { %8760 = shalt.err (!%p8757_p2)
}
  0x9e   : > { %7896 = dma.hbm_to_vmem [thread:$0]  (!%p9054_p12), %s10541_s20, 1024, %s749_s1, [#allocation19], %s10667_s29, %s10667_s29, %s10666_s15  }
  0x9f   : > { %796 = sbr.rel (%p9046_p10) target bundleno = 4271 (0x10af), region = 116 }
  0xa4   : > { %p10668_p13 = scmp.eq.s32.totalorder %s9018_s23, 0 }
  0xa6   : > { %8804 = dma.done.wait (%p10668_p13), [#allocation4], 8192   ;;  %p10669_p6 = pmov %p10668_p13 }
  0xa8   : > { %8806 = vsyncadd (%p10669_p6), [#allocation4], 4294959104  ;;  %p10670_p9 = pmov %p10669_p6 }
  0xa9   : > { %p10671_p4 = pmov %p10669_p6 }
  0xaa   : > { %8808 = dma.done.wait (%p10670_p9), [#allocation7], 4096  }
  0xab   : > { %8810 = vsyncadd (%p10671_p4), [#allocation7], 4294963200  ;;  %p10672_p7 = pmov %p10671_p4 }
  0xac   : > { %p10673_p12 = pmov %p10671_p4 }
  0xad   : > { %8812 = dma.done.wait (%p10672_p7), [#allocation10], 6144  }
  0xae   : > { %8814 = vsyncadd (%p10673_p12), [#allocation10], 4294961152  ;;  %p10674_p10 = pmov %p10671_p4 }
  0xaf   : > { %p10675_p8 = pmov %p10671_p4 }
  0xb0   : > { %8816 = dma.done.wait (%p10674_p10), [#allocation13], 2048  }
  0xb1   : > { %8818 = vsyncadd (%p10675_p8), [#allocation13], 4294965248  ;;  %p10676_p11 = pmov %p10671_p4 }
  0xb2   : > { %p10677_p1 = pmov %p10671_p4 }
  0xb3   : > { %8820 = dma.done.wait (%p10676_p11), [#allocation16], 2048  }
  0xb4   : > { %8822 = vsyncadd (%p10677_p1), [#allocation16], 4294965248  ;;  %p10678_p0 = pmov %p10677_p1 }
  0xb6   : > { %8824 = dma.done.wait (%p10678_p0), [#allocation19], 1024   ;;  %p10679_p3 = pmov %p10678_p0 }
  0xb7   : > { %s10680_s30 = sld [smem:[#allocation79_spill]]  ;;  %p906_p2 = scmp.lt.s32.totalorder %s9018_s23, 3  ;;  %v8863_v33 = vmov 1966171168   ;;  %v1063_v35 = vlaneseq  ;;  %vm2475_vm0 = vcmask 523264   ;;  %vm8867_vm1 = vmmov 0  }
  0xb8   : > { %8826 = vsyncadd (%p10679_p3), [#allocation19], 4294966272  ;;  %v1061_v34 = vunpack.c.l.s4 %v8863_v33  ;;  %s10681_s7 = sld [smem:[#allocation76_spill]]  ;;  %s8864_s27 = smov 64   ;;  %vm6188_vm2 = vcmask 516096  }
  0xb9   : > { %s9243_s5 = scalar_select %p906_p2, %s9018_s23, 3  ;;  %v9258_v45 = vshrl.u32 %v1063_v35, 7 }
  0xba   : > { %v1062_v44 = vunpack.c.0.s8 %v1061_v34  ;;  %s10682_s9 = sld [smem:[#allocation78_spill]] }
  0xbb   : > { %s6404_s29 = sshll.u32 %s9243_s5, 1  ;;  %s7823_s1 = smul.u32 96, %s9243_s5 }
  0xbc   : > { %v9276_v54 = vsub.s32 %v1062_v44, %v9258_v45  ;;  %s10684_s0 = sld [smem:[#allocation80_spill]] }
  0xbd   : > { %v978_v1 = vld [vmem:[%s10680_s30 + $0x1c0] sm:$0xff]  ;;  %v979_v10 = vld [vmem:[%s10680_s30 + $0x1c8] sm:$0xff]  ;;  %s10685_s15 = sld [smem:[#allocation83_spill]] }
  0xbe   : > { %v982_v2 = vld [vmem:[%s10680_s30 + $0x1e0] sm:$0xff]  ;;  %v983_v11 = vld [vmem:[%s10680_s30 + $0x1e8] sm:$0xff]  ;;  %s909_s8 = scalar_lea.vmem %s10681_s7, %s6404_s29  ;;  %s6832_s7 = sshll.u32 %s9243_s5, 6 }
  0xbf   : > { %v970_v3 = vld [vmem:[%s10680_s30 + $0x180] sm:$0xff]  ;;  %v6466_v4 = vcombine.high %v978_v1, %v982_v2  ;;  %v6465_v5 = vcombine.low %v978_v1, %v982_v2  ;;  %v6468_v12 = vcombine.high %v979_v10, %v983_v11  ;;  %v6467_v13 = vcombine.low %v979_v10, %v983_v11  ;;  %v971_v14 = vld [vmem:[%s10680_s30 + $0x188] sm:$0xff]  ;;  %s10687_s29 = sld [smem:[#allocation82_spill]] }
  0xc0   : > { %v974_v6 = vld [vmem:[%s10680_s30 + $0x1a0] sm:$0xff]  ;;  %v975_v15 = vld [vmem:[%s10680_s30 + $0x1a8] sm:$0xff]  ;;  %s9535_s3 = scalar_lea.vmem %s10682_s9, %s7823_s1  ;;  %s10686_s1 = sld [smem:[#allocation77_spill]] }
  0xc1   : > { %v962_v7 = vld [vmem:[%s10680_s30 + $0x140] sm:$0xff]  ;;  %v6458_v8 = vcombine.high %v970_v3, %v974_v6  ;;  %1747 = vmatprep.subr.bf16.mxu0 %v6466_v4  ;;  %v6457_v16 = vcombine.low %v970_v3, %v974_v6  ;;  %v6460_v17 = vcombine.high %v971_v14, %v975_v15  ;;  %v963_v18 = vld [vmem:[%s10680_s30 + $0x148] sm:$0xff]  ;;  %1787 = vmatprep.subr.bf16.mxu1 %v6468_v12  ;;  %s904_s9 = sand.u32 1, %s8837_s28  }
  0xc2   : > { %v966_v9 = vld [vmem:[%s10680_s30 + $0x160] sm:$0xff]  ;;  %1748 = vmatpush1.bf16.msra.mxu0 %v6465_v5  ;;  %v967_v20 = vld [vmem:[%s10680_s30 + $0x168] sm:$0xff]  ;;  %1788 = vmatpush1.bf16.msra.mxu1 %v6467_v13  ;;  %v6459_v23 = vcombine.low %v971_v14, %v975_v15 }
  0xc3   : > { %1749 = vmatprep.subr.bf16.mxu0 %v6458_v8  ;;  %v6450_v19 = vcombine.high %v962_v7, %v966_v9  ;;  %v954_v21 = vld [vmem:[%s10680_s30 + $0x100] sm:$0xff]  ;;  %1789 = vmatprep.subr.bf16.mxu1 %v6460_v17  ;;  %v6452_v24 = vcombine.high %v963_v18, %v967_v20  ;;  %v6449_v25 = vcombine.low %v962_v7, %v966_v9  ;;  %v955_v26 = vld [vmem:[%s10680_s30 + $0x108] sm:$0xff] }
  0xc4   : > { %v958_v22 = vld [vmem:[%s10680_s30 + $0x120] sm:$0xff]  ;;  %v959_v27 = vld [vmem:[%s10680_s30 + $0x128] sm:$0xff]  ;;  %v6451_v31 = vcombine.low %v963_v18, %v967_v20 }
  0xc5   : > { %v6442_v28 = vcombine.high %v954_v21, %v958_v22  ;;  %v946_v29 = vld [vmem:[%s10680_s30 + $0xc0] sm:$0xff]  ;;  %v6444_v32 = vcombine.high %v955_v26, %v959_v27  ;;  %v6441_v36 = vcombine.low %v954_v21, %v958_v22  ;;  %v947_v37 = vld [vmem:[%s10680_s30 + $0xc8] sm:$0xff]  ;;  %v6443_v42 = vcombine.low %v955_v26, %v959_v27 }
  0xc6   : > { %1750 = vmatpush1.bf16.msra.mxu0 %v6457_v16  ;;  %1790 = vmatpush1.bf16.msra.mxu1 %v6459_v23  ;;  %v950_v30 = vld [vmem:[%s10680_s30 + $0xe0] sm:$0xff]  ;;  %v951_v38 = vld [vmem:[%s10680_s30 + $0xe8] sm:$0xff]  ;;  %s914_s12 = scalar_lea.vmem %s10686_s1, %s6832_s7  ;;  %s6829_s7 = sshll.u32 %s9018_s23, 4 }
  0xc7   : > { %1751 = vmatprep.subr.bf16.mxu0 %v6450_v19  ;;  %1791 = vmatprep.subr.bf16.mxu1 %v6452_v24  ;;  %v6434_v39 = vcombine.high %v946_v29, %v950_v30  ;;  %v938_v40 = vld [vmem:[%s10680_s30 + $0x80] sm:$0xff]  ;;  %v6436_v43 = vcombine.high %v947_v37, %v951_v38  ;;  %v6433_v46 = vcombine.low %v946_v29, %v950_v30  ;;  %v939_v47 = vld [vmem:[%s10680_s30 + $0x88] sm:$0xff]  ;;  %s10480_s1 = scalar_lea.hbm %s10545_s24, %s6829_s7 }
  0xc8   : > { %v942_v41 = vld [vmem:[%s10680_s30 + $0xa0] sm:$0xff]  ;;  %v943_v48 = vld [vmem:[%s10680_s30 + $0xa8] sm:$0xff]  ;;  %v6435_v52 = vcombine.low %v947_v37, %v951_v38 }
  0xc9   : > { %v6426_v49 = vcombine.high %v938_v40, %v942_v41  ;;  %v930_v50 = vld [vmem:[%s10680_s30 + $0x40] sm:$0xff]  ;;  %v6428_v53 = vcombine.high %v939_v47, %v943_v48  ;;  %v6425_v55 = vcombine.low %v938_v40, %v942_v41  ;;  %v931_v56 = vld [vmem:[%s10680_s30 + $0x48] sm:$0xff]  ;;  %v6427_v63 = vcombine.low %v939_v47, %v943_v48 }
  0xca   : > { %1752 = vmatpush1.bf16.msra.mxu0 %v6449_v25  ;;  %1792 = vmatpush1.bf16.msra.mxu1 %v6451_v31  ;;  %v934_v51 = vld [vmem:[%s10680_s30 + $0x60] sm:$0xff]  ;;  %v935_v57 = vld [vmem:[%s10680_s30 + $0x68] sm:$0xff] }
  0xcb   : > { %1753 = vmatprep.subr.bf16.mxu0 %v6442_v28  ;;  %1793 = vmatprep.subr.bf16.mxu1 %v6444_v32  ;;  %v9284_v58 = vld.sshfl [vmem:[%s909_s8] sm:$0x11 pattern:$0x75316420]  ;;  %v6418_v59 = vcombine.high %v930_v50, %v934_v51  ;;  %v6420_v0 = vcombine.high %v931_v56, %v935_v57  ;;  %v6417_v2 = vcombine.low %v930_v50, %v934_v51  ;;  %v923_v3 = vld [vmem:[%s10680_s30 + $0x8] sm:$0xff]  ;;  %s10688_s8 = sld [smem:[#allocation84_spill]] }
  0xcc   : > { %v1059_v60 = vcombine.high %v9284_v58, %v9284_v58  ;;  %v922_v61 = vld [vmem:[%s10680_s30] sm:$0xff]  ;;  %v927_v4 = vld [vmem:[%s10680_s30 + $0x28] sm:$0xff]  ;;  %v6419_v8 = vcombine.low %v931_v56, %v935_v57 }
  0xcd   : > { %v926_v62 = vld [vmem:[%s10680_s30 + $0x20] sm:$0xff]  ;;  %v6412_v9 = vcombine.high %v923_v3, %v927_v4  ;;  %v1043_v11 = vld [vmem:[%s10680_s30 + $0x3c8] sm:$0xff]  ;;  %v6411_v16 = vcombine.low %v923_v3, %v927_v4 }
  0xce   : > { %1754 = vmatpush1.bf16.msra.mxu0 %v6441_v36  ;;  %1794 = vmatpush1.bf16.msra.mxu1 %v6443_v42  ;;  %v9295_v1 = vrot.slane %v1059_v60, %v9276_v54  ;;  %v6410_v5 = vcombine.high %v922_v61, %v926_v62  ;;  %v1042_v6 = vld [vmem:[%s10680_s30 + $0x3c0] sm:$0xff]  ;;  %v6409_v10 = vcombine.low %v922_v61, %v926_v62  ;;  %v1047_v12 = vld [vmem:[%s10680_s30 + $0x3e8] sm:$0xff] }
  0xcf   : > { %1755 = vmatprep.subr.bf16.mxu0 %v6434_v39  ;;  %1795 = vmatprep.subr.bf16.mxu1 %v6436_v43  ;;  %v1046_v7 = vld [vmem:[%s10680_s30 + $0x3e0] sm:$0xff]  ;;  %v6532_v17 = vcombine.high %v1043_v11, %v1047_v12  ;;  %v1035_v19 = vld [vmem:[%s10680_s30 + $0x388] sm:$0xff]  ;;  %v6531_v24 = vcombine.low %v1043_v11, %v1047_v12 }
  0xd0   : > { %1779 = vmatprep.mubr.bf16.mxu0 %v9295_v1  ;;  %1819 = vmatprep.mubr.bf16.mxu1 %v9295_v1  ;;  %v6530_v13 = vcombine.high %v1042_v6, %v1046_v7  ;;  %v1034_v14 = vld [vmem:[%s10680_s30 + $0x380] sm:$0xff]  ;;  %v6529_v18 = vcombine.low %v1042_v6, %v1046_v7  ;;  %v1039_v20 = vld [vmem:[%s10680_s30 + $0x3a8] sm:$0xff] }
  0xd1   : > { %v1038_v15 = vld [vmem:[%s10680_s30 + $0x3a0] sm:$0xff]  ;;  %v6524_v25 = vcombine.high %v1035_v19, %v1039_v20  ;;  %v1027_v27 = vld [vmem:[%s10680_s30 + $0x348] sm:$0xff]  ;;  %v6523_v32 = vcombine.low %v1035_v19, %v1039_v20 }
  0xd2   : > { %1756 = vmatpush1.bf16.msra.mxu0 %v6433_v46  ;;  %1796 = vmatpush1.bf16.msra.mxu1 %v6435_v52  ;;  %v6522_v21 = vcombine.high %v1034_v14, %v1038_v15  ;;  %v1026_v22 = vld [vmem:[%s10680_s30 + $0x340] sm:$0xff]  ;;  %v6521_v26 = vcombine.low %v1034_v14, %v1038_v15  ;;  %v1031_v28 = vld [vmem:[%s10680_s30 + $0x368] sm:$0xff]  ;;  %v985_v14 = vld [vmem:[%s10680_s30 + $0x1f8] sm:$0xff] }
  0xd3   : > { %1757 = vmatprep.subr.bf16.mxu0 %v6426_v49  ;;  %1797 = vmatprep.subr.bf16.mxu1 %v6428_v53  ;;  %v1030_v23 = vld [vmem:[%s10680_s30 + $0x360] sm:$0xff]  ;;  %v6516_v33 = vcombine.high %v1027_v27, %v1031_v28  ;;  %v1019_v35 = vld [vmem:[%s10680_s30 + $0x308] sm:$0xff]  ;;  %v6515_v40 = vcombine.low %v1027_v27, %v1031_v28  ;;  %v968_v27 = vld [vmem:[%s10680_s30 + $0x170] sm:$0xff] }
  0xd4   : > { %v6514_v29 = vcombine.high %v1026_v22, %v1030_v23  ;;  %v1018_v30 = vld [vmem:[%s10680_s30 + $0x300] sm:$0xff]  ;;  %v6513_v34 = vcombine.low %v1026_v22, %v1030_v23  ;;  %v1023_v36 = vld [vmem:[%s10680_s30 + $0x328] sm:$0xff]  ;;  %v977_v22 = vld [vmem:[%s10680_s30 + $0x1b8] sm:$0xff]  ;;  %v9427_v23 = vrot.slane %v9284_v58, %v9276_v54 }
  0xd5   : > { %v1022_v31 = vld [vmem:[%s10680_s30 + $0x320] sm:$0xff]  ;;  %v1011_v41 = vld [vmem:[%s10680_s30 + $0x2c8] sm:$0xff]  ;;  %v6508_v42 = vcombine.high %v1019_v35, %v1023_v36  ;;  %v6507_v49 = vcombine.low %v1019_v35, %v1023_v36  ;;  %v965_v54 = vld [vmem:[%s10680_s30 + $0x158] sm:$0xff] }
  0xd6   : > { %1758 = vmatpush1.bf16.msra.mxu0 %v6425_v55  ;;  %1798 = vmatpush1.bf16.msra.mxu1 %v6427_v63  ;;  %v6506_v37 = vcombine.high %v1018_v30, %v1022_v31  ;;  %v1010_v38 = vld [vmem:[%s10680_s30 + $0x2c0] sm:$0xff]  ;;  %v1015_v43 = vld [vmem:[%s10680_s30 + $0x2e8] sm:$0xff]  ;;  %v6505_v44 = vcombine.low %v1018_v30, %v1022_v31  ;;  %v969_v58 = vld [vmem:[%s10680_s30 + $0x178] sm:$0xff] }
  0xd7   : > { %1759 = vmatprep.subr.bf16.mxu0 %v6418_v59  ;;  %1799 = vmatprep.subr.bf16.mxu1 %v6420_v0  ;;  %v1014_v39 = vld [vmem:[%s10680_s30 + $0x2e0] sm:$0xff]  ;;  %v1003_v50 = vld [vmem:[%s10680_s30 + $0x288] sm:$0xff]  ;;  %v6500_v52 = vcombine.high %v1011_v41, %v1015_v43  ;;  %v6499_v59 = vcombine.low %v1011_v41, %v1015_v43  ;;  %v957_v36 = vld [vmem:[%s10680_s30 + $0x118] sm:$0xff]  ;;  %v6455_v43 = vcombine.low %v965_v54, %v969_v58 }
  0xd8   : > { %v1002_v46 = vld [vmem:[%s10680_s30 + $0x280] sm:$0xff]  ;;  %v6498_v48 = vcombine.high %v1010_v38, %v1014_v39  ;;  %v1007_v51 = vld [vmem:[%s10680_s30 + $0x2a8] sm:$0xff]  ;;  %v6497_v53 = vcombine.low %v1010_v38, %v1014_v39  ;;  %v6456_v38 = vcombine.high %v965_v54, %v969_v58  ;;  %v952_v41 = vld [vmem:[%s10680_s30 + $0xf0] sm:$0xff] }
  0xd9   : > { %v1006_v47 = vld [vmem:[%s10680_s30 + $0x2a0] sm:$0xff]  ;;  %v995_v60 = vld [vmem:[%s10680_s30 + $0x248] sm:$0xff]  ;;  %v6492_v62 = vcombine.high %v1003_v50, %v1007_v51  ;;  %v6491_v4 = vcombine.low %v1003_v50, %v1007_v51 }
  0xda   : > { %1760 = vmatpush1.bf16.msra.mxu0 %v6417_v2  ;;  %1800 = vmatpush1.bf16.msra.mxu1 %v6419_v8  ;;  %v994_v55 = vld [vmem:[%s10680_s30 + $0x240] sm:$0xff]  ;;  %v6490_v57 = vcombine.high %v1002_v46, %v1006_v47  ;;  %v999_v61 = vld [vmem:[%s10680_s30 + $0x268] sm:$0xff]  ;;  %v6489_v63 = vcombine.low %v1002_v46, %v1006_v47 }
  0xdb   : > { %1761 = vmatprep.subr.bf16.mxu0 %v6410_v5  ;;  %1801 = vmatprep.subr.bf16.mxu1 %v6412_v9  ;;  %v998_v56 = vld [vmem:[%s10680_s30 + $0x260] sm:$0xff]  ;;  %v987_v5 = vld [vmem:[%s10680_s30 + $0x208] sm:$0xff]  ;;  %v6484_v7 = vcombine.high %v995_v60, %v999_v61  ;;  %v980_v9 = vld [vmem:[%s10680_s30 + $0x1d0] sm:$0xff]  ;;  %v6483_v12 = vcombine.low %v995_v60, %v999_v61 }
  0xdc   : > { %v986_v0 = vld [vmem:[%s10680_s30 + $0x200] sm:$0xff]  ;;  %v6482_v3 = vcombine.high %v994_v55, %v998_v56  ;;  %v991_v6 = vld [vmem:[%s10680_s30 + $0x228] sm:$0xff]  ;;  %v6481_v8 = vcombine.low %v994_v55, %v998_v56 }
  0xdd   : > { %v990_v2 = vld [vmem:[%s10680_s30 + $0x220] sm:$0xff]  ;;  %v6476_v15 = vcombine.high %v987_v5, %v991_v6  ;;  %v6475_v20 = vcombine.low %v987_v5, %v991_v6 }
  0xde   : > { %1762 = vmatpush1.bf16.msra.mxu0 %v6409_v10  ;;  %1802 = vmatpush1.bf16.msra.mxu1 %v6411_v16  ;;  %v984_v10 = vld [vmem:[%s10680_s30 + $0x1f0] sm:$0xff]  ;;  %v6474_v11 = vcombine.high %v986_v0, %v990_v2  ;;  %v6473_v16 = vcombine.low %v986_v0, %v990_v2 }
  0xdf   : > { %1763 = vmatprep.subr.bf16.mxu0 %v6530_v13  ;;  %1803 = vmatprep.subr.bf16.mxu1 %v6532_v17  ;;  %v981_v13 = vld [vmem:[%s10680_s30 + $0x1d8] sm:$0xff]  ;;  %v972_v17 = vld [vmem:[%s10680_s30 + $0x190] sm:$0xff]  ;;  %v6470_v19 = vcombine.high %v980_v9, %v984_v10 }
  0xe2   : > { %1764 = vmatpush2.bf16.msra.mxu0 %v6529_v18  ;;  %1804 = vmatpush2.bf16.msra.mxu1 %v6531_v24  ;;  %v976_v18 = vld [vmem:[%s10680_s30 + $0x1b0] sm:$0xff]  ;;  %v6472_v24 = vcombine.high %v981_v13, %v985_v14 }
  0xe3   : > { %1765 = vmatprep.subr.bf16.mxu0 %v6522_v21  ;;  %1805 = vmatprep.subr.bf16.mxu1 %v6524_v25  ;;  %v973_v21 = vld [vmem:[%s10680_s30 + $0x198] sm:$0xff]  ;;  %v6469_v25 = vcombine.low %v980_v9, %v984_v10  ;;  %v6462_v28 = vcombine.high %v972_v17, %v976_v18  ;;  %v6461_v31 = vcombine.low %v972_v17, %v976_v18 }
  0xe4   : > { %v6464_v30 = vcombine.high %v973_v21, %v977_v22  ;;  %v6463_v35 = vcombine.low %v973_v21, %v977_v22 }
  0xe6   : > { %1766 = vmatpush2.bf16.msra.mxu0 %v6521_v26  ;;  %1806 = vmatpush2.bf16.msra.mxu1 %v6523_v32  ;;  %v964_v26 = vld [vmem:[%s10680_s30 + $0x150] sm:$0xff] }
  0xe7   : > { %1767 = vmatprep.subr.bf16.mxu0 %v6514_v29  ;;  %1807 = vmatprep.subr.bf16.mxu1 %v6516_v33  ;;  %v6471_v29 = vcombine.low %v981_v13, %v985_v14  ;;  %v956_v32 = vld [vmem:[%s10680_s30 + $0x110] sm:$0xff]  ;;  %v6453_v39 = vcombine.low %v964_v26, %v968_v27 }
  0xe8   : > { %v960_v33 = vld [vmem:[%s10680_s30 + $0x130] sm:$0xff] }
  0xe9   : > { %v6445_v47 = vcombine.low %v956_v32, %v960_v33 }
  0xea   : > { %1768 = vmatpush2.bf16.msra.mxu0 %v6513_v34  ;;  %1808 = vmatpush2.bf16.msra.mxu1 %v6515_v40  ;;  %v6454_v34 = vcombine.high %v964_v26, %v968_v27  ;;  %v948_v40 = vld [vmem:[%s10680_s30 + $0xd0] sm:$0xff] }
  0xeb   : > { %1769 = vmatprep.subr.bf16.mxu0 %v6506_v37  ;;  %1809 = vmatprep.subr.bf16.mxu1 %v6508_v42  ;;  %v961_v37 = vld [vmem:[%s10680_s30 + $0x138] sm:$0xff]  ;;  %v6446_v42 = vcombine.high %v956_v32, %v960_v33  ;;  %v6438_v50 = vcombine.high %v948_v40, %v952_v41  ;;  %v6437_v56 = vcombine.low %v948_v40, %v952_v41 }
  0xec   : > { %v6448_v46 = vcombine.high %v957_v36, %v961_v37  ;;  %v6447_v51 = vcombine.low %v957_v36, %v961_v37 }
  0xee   : > { %1770 = vmatpush2.bf16.msra.mxu0 %v6505_v44  ;;  %1810 = vmatpush2.bf16.msra.mxu1 %v6507_v49  ;;  %v953_v44 = vld [vmem:[%s10680_s30 + $0xf8] sm:$0xff]  ;;  %v944_v49 = vld [vmem:[%s10680_s30 + $0xb0] sm:$0xff] }
  0xef   : > { %1771 = vmatprep.subr.bf16.mxu0 %v6498_v48  ;;  %1811 = vmatprep.subr.bf16.mxu1 %v6500_v52  ;;  %v940_v48 = vld [vmem:[%s10680_s30 + $0x90] sm:$0xff]  ;;  %v941_v52 = vld [vmem:[%s10680_s30 + $0x98] sm:$0xff] }
  0xf0   : > { %v6430_v60 = vcombine.high %v940_v48, %v944_v49  ;;  %v6429_v2 = vcombine.low %v940_v48, %v944_v49 }
  0xf2   : > { %1772 = vmatpush2.bf16.msra.mxu0 %v6497_v53  ;;  %1812 = vmatpush2.bf16.msra.mxu1 %v6499_v59  ;;  %v945_v53 = vld [vmem:[%s10680_s30 + $0xb8] sm:$0xff]  ;;  %v936_v59 = vld [vmem:[%s10680_s30 + $0x70] sm:$0xff] }
  0xf3   : > { %1773 = vmatprep.subr.bf16.mxu0 %v6490_v57  ;;  %1813 = vmatprep.subr.bf16.mxu1 %v6492_v62  ;;  %v932_v57 = vld [vmem:[%s10680_s30 + $0x50] sm:$0xff]  ;;  %v933_v62 = vld [vmem:[%s10680_s30 + $0x58] sm:$0xff]  ;;  %v6432_v0 = vcombine.high %v941_v52, %v945_v53  ;;  %v6431_v6 = vcombine.low %v941_v52, %v945_v53 }
  0xf4   : > { %v6422_v5 = vcombine.high %v932_v57, %v936_v59  ;;  %v6421_v10 = vcombine.low %v932_v57, %v936_v59 }
  0xf6   : > { %1774 = vmatpush2.bf16.msra.mxu0 %v6489_v63  ;;  %1814 = vmatpush2.bf16.msra.mxu1 %v6491_v4  ;;  %v937_v63 = vld [vmem:[%s10680_s30 + $0x78] sm:$0xff]  ;;  %v928_v4 = vld [vmem:[%s10680_s30 + $0x30] sm:$0xff] }
  0xf7   : > { %1775 = vmatprep.subr.bf16.mxu0 %v6482_v3  ;;  %1815 = vmatprep.subr.bf16.mxu1 %v6484_v7  ;;  %v924_v3 = vld [vmem:[%s10680_s30 + $0x10] sm:$0xff]  ;;  %v925_v7 = vld [vmem:[%s10680_s30 + $0x18] sm:$0xff]  ;;  %v6424_v9 = vcombine.high %v933_v62, %v937_v63  ;;  %v6423_v14 = vcombine.low %v933_v62, %v937_v63 }
  0xf8   : > { %v6414_v13 = vcombine.high %v924_v3, %v928_v4  ;;  %v6413_v18 = vcombine.low %v924_v3, %v928_v4 }
  0xfa   : > { %1776 = vmatpush2.bf16.msra.mxu0 %v6481_v8  ;;  %1816 = vmatpush2.bf16.msra.mxu1 %v6483_v12  ;;  %v929_v8 = vld [vmem:[%s10680_s30 + $0x38] sm:$0xff]  ;;  %v1048_v12 = vld [vmem:[%s10680_s30 + $0x3f0] sm:$0xff] }
  0xfb   : > { %1777 = vmatprep.subr.bf16.mxu0 %v6474_v11  ;;  %1817 = vmatprep.subr.bf16.mxu1 %v6476_v15  ;;  %v1044_v11 = vld [vmem:[%s10680_s30 + $0x3d0] sm:$0xff]  ;;  %v1045_v15 = vld [vmem:[%s10680_s30 + $0x3d8] sm:$0xff]  ;;  %v6416_v17 = vcombine.high %v925_v7, %v929_v8  ;;  %v6415_v22 = vcombine.low %v925_v7, %v929_v8 }
  0xfc   : > { %v6534_v21 = vcombine.high %v1044_v11, %v1048_v12  ;;  %v6533_v27 = vcombine.low %v1044_v11, %v1048_v12 }
  0xfe   : > { %1778 = vmatpush2.bf16.msra.mxu0 %v6473_v16  ;;  %1818 = vmatpush2.bf16.msra.mxu1 %v6475_v20  ;;  %v1049_v16 = vld [vmem:[%s10680_s30 + $0x3f8] sm:$0xff]  ;;  %v1040_v20 = vld [vmem:[%s10680_s30 + $0x3b0] sm:$0xff] }
  0xff   : > { %1828 = vmatprep.subr.bf16.mxu0 %v6470_v19  ;;  %1868 = vmatprep.subr.bf16.mxu1 %v6472_v24  ;;  %v1036_v19 = vld [vmem:[%s10680_s30 + $0x390] sm:$0xff]  ;;  %v1037_v24 = vld [vmem:[%s10680_s30 + $0x398] sm:$0xff]  ;;  %v6536_v26 = vcombine.high %v1045_v15, %v1049_v16  ;;  %v6535_v58 = vcombine.low %v1045_v15, %v1049_v16 }
 0x100   : > { %v6526_v54 = vcombine.high %v1036_v19, %v1040_v20  ;;  %v6525_v33 = vcombine.low %v1036_v19, %v1040_v20  ;;  %v7979_v19 = vld [vmem:[#allocation3 + $0xe4] ss:$16 sps:$4 sm:$0xff]   ;;  %v7980_v20 = vld [vmem:[#allocation3 + $0xe8] ss:$16 sps:$4 sm:$0xff]  }
 0x101   : > { %1780 = vmatmul.mubr.bf16.vlgmr.msra.gmra.mxu0 %v9427_v23  ;;  %1820 = vmatmul.mubr.bf16.vlgmr.msra.gmra.mxu1 %v9427_v23 }
 0x102   : > { %1829 = vmatpush1.bf16.msra.mxu0 %v6469_v25  ;;  %1860 = vmatprep.mubr.bf16.mxu0 %v9295_v1  ;;  %v1041_v25 = vld [vmem:[%s10680_s30 + $0x3b8] sm:$0xff] }
 0x103   : > { %1830 = vmatprep.subr.bf16.mxu0 %v6462_v28  ;;  %1869 = vmatpush1.bf16.msra.mxu1 %v6471_v29  ;;  %v1028_v28 = vld [vmem:[%s10680_s30 + $0x350] sm:$0xff]  ;;  %v6528_v32 = vcombine.high %v1037_v24, %v1041_v25  ;;  %v6527_v37 = vcombine.low %v1037_v24, %v1041_v25 }
 0x104   : > { %1900 = vmatprep.mubr.bf16.mxu1 %v9295_v1  ;;  %1870 = vmatprep.subr.bf16.mxu1 %v6464_v30  ;;  %v949_v1 = vld [vmem:[%s10680_s30 + $0xd8] sm:$0xff]  ;;  %v1032_v29 = vld [vmem:[%s10680_s30 + $0x370] sm:$0xff] }
 0x105   : > { %v6440_v55 = vcombine.high %v949_v1, %v953_v44  ;;  %v6439_v61 = vcombine.low %v949_v1, %v953_v44  ;;  %v1029_v30 = vld [vmem:[%s10680_s30 + $0x358] sm:$0xff]  ;;  %v6518_v36 = vcombine.high %v1028_v28, %v1032_v29  ;;  %v6517_v41 = vcombine.low %v1028_v28, %v1032_v29  ;;  %v7983_v25 = vld [vmem:[#allocation3 + $0xc0] ss:$16 sps:$4 sm:$0xff]  }
 0x106   : > { %1831 = vmatpush1.bf16.msra.mxu0 %v6461_v31  ;;  %v1033_v31 = vld [vmem:[%s10680_s30 + $0x378] sm:$0xff]  ;;  %v7989_v29 = vld [vmem:[#allocation3 + $0xa0] ss:$16 sps:$4 sm:$0xff]  }
 0x107   : > { %1832 = vmatprep.subr.bf16.mxu0 %v6454_v34  ;;  %1871 = vmatpush1.bf16.msra.mxu1 %v6463_v35  ;;  %v1020_v34 = vld [vmem:[%s10680_s30 + $0x310] sm:$0xff]  ;;  %v6520_v40 = vcombine.high %v1029_v30, %v1033_v31  ;;  %v6519_v44 = vcombine.low %v1029_v30, %v1033_v31  ;;  %v7998_v31 = vld [vmem:[#allocation3 + $0x88] ss:$16 sps:$4 sm:$0xff]  }
 0x108   : > { %1872 = vmatprep.subr.bf16.mxu1 %v6456_v38  ;;  %v1024_v35 = vld [vmem:[%s10680_s30 + $0x330] sm:$0xff]  ;;  %v1021_v38 = vld [vmem:[%s10680_s30 + $0x318] sm:$0xff] }
 0x109   : > { %v6510_v1 = vcombine.high %v1020_v34, %v1024_v35  ;;  %v6509_v49 = vcombine.low %v1020_v34, %v1024_v35  ;;  %v7988_v24 = vld [vmem:[#allocation3 + $0xcc] ss:$16 sps:$4 sm:$0xff]   ;;  %v7995_v30 = vld [vmem:[#allocation3 + $0x80] ss:$16 sps:$4 sm:$0xff]   ;;  %v8004_v35 = vld [vmem:[#allocation3 + $0x68] ss:$16 sps:$4 sm:$0xff]  }
 0x10a   : > { %1833 = vmatpush1.bf16.msra.mxu0 %v6453_v39  ;;  %v1025_v39 = vld [vmem:[%s10680_s30 + $0x338] sm:$0xff]  ;;  %v8001_v34 = vld [vmem:[#allocation3 + $0x60] ss:$16 sps:$4 sm:$0xff]  }
 0x10b   : > { %1834 = vmatprep.subr.bf16.mxu0 %v6446_v42  ;;  %1873 = vmatpush1.bf16.msra.mxu1 %v6455_v43  ;;  %v1012_v42 = vld [vmem:[%s10680_s30 + $0x2d0] sm:$0xff]  ;;  %v6512_v48 = vcombine.high %v1021_v38, %v1025_v39  ;;  %v6511_v53 = vcombine.low %v1021_v38, %v1025_v39  ;;  %v8010_v39 = vld [vmem:[#allocation3 + $0x48] ss:$16 sps:$4 sm:$0xff]  }
 0x10c   : > { %1874 = vmatprep.subr.bf16.mxu1 %v6448_v46  ;;  %v1016_v43 = vld [vmem:[%s10680_s30 + $0x2f0] sm:$0xff]  ;;  %v1013_v46 = vld [vmem:[%s10680_s30 + $0x2d8] sm:$0xff] }
 0x10d   : > { %v6502_v52 = vcombine.high %v1012_v42, %v1016_v43  ;;  %v6501_v59 = vcombine.low %v1012_v42, %v1016_v43  ;;  %v7994_v28 = vld [vmem:[#allocation3 + $0xac] ss:$16 sps:$4 sm:$0xff]   ;;  %v8007_v38 = vld [vmem:[#allocation3 + $0x40] ss:$16 sps:$4 sm:$0xff]   ;;  %v8016_v43 = vld [vmem:[#allocation3 + $0x28] ss:$16 sps:$4 sm:$0xff]  }
 0x10e   : > { %1835 = vmatpush1.bf16.msra.mxu0 %v6445_v47  ;;  %v1017_v47 = vld [vmem:[%s10680_s30 + $0x2f8] sm:$0xff]  ;;  %v8013_v42 = vld [vmem:[#allocation3 + $0x20] ss:$16 sps:$4 sm:$0xff]  }
 0x10f   : > { %1836 = vmatprep.subr.bf16.mxu0 %v6438_v50  ;;  %1875 = vmatpush1.bf16.msra.mxu1 %v6447_v51  ;;  %v1004_v50 = vld [vmem:[%s10680_s30 + $0x290] sm:$0xff]  ;;  %v6504_v57 = vcombine.high %v1013_v46, %v1017_v47  ;;  %v6503_v63 = vcombine.low %v1013_v46, %v1017_v47  ;;  %v8022_v47 = vld [vmem:[#allocation3 + $0x8] ss:$16 sps:$4 sm:$0xff]  }
 0x110   : > { %1876 = vmatprep.subr.bf16.mxu1 %v6440_v55  ;;  %v1008_v51 = vld [vmem:[%s10680_s30 + $0x2b0] sm:$0xff]  ;;  %v1005_v55 = vld [vmem:[%s10680_s30 + $0x298] sm:$0xff] }
 0x111   : > { %v6494_v62 = vcombine.high %v1004_v50, %v1008_v51  ;;  %v6493_v4 = vcombine.low %v1004_v50, %v1008_v51  ;;  %v8019_v46 = vld [vmem:[#allocation3] ss:$16 sps:$4 sm:$0xff]   ;;  %v8028_v51 = vld [vmem:[#allocation3 + $0x1e8] ss:$16 sps:$4 sm:$0xff]  }
 0x112   : > { %1837 = vmatpush1.bf16.msra.mxu0 %v6437_v56  ;;  %v1009_v56 = vld [vmem:[%s10680_s30 + $0x2b8] sm:$0xff]  ;;  %v8025_v50 = vld [vmem:[#allocation3 + $0x1e0] ss:$16 sps:$4 sm:$0xff]  }
 0x113   : > { %1838 = vmatprep.subr.bf16.mxu0 %v6430_v60  ;;  %1877 = vmatpush1.bf16.msra.mxu1 %v6439_v61  ;;  %v996_v60 = vld [vmem:[%s10680_s30 + $0x250] sm:$0xff]  ;;  %v6496_v3 = vcombine.high %v1005_v55, %v1009_v56  ;;  %v6495_v8 = vcombine.low %v1005_v55, %v1009_v56  ;;  %v8034_v56 = vld [vmem:[#allocation3 + $0x1c8] ss:$16 sps:$4 sm:$0xff]  }
 0x114   : > { %1878 = vmatprep.subr.bf16.mxu1 %v6432_v0  ;;  %v1000_v61 = vld [vmem:[%s10680_s30 + $0x270] sm:$0xff]  ;;  %v997_v0 = vld [vmem:[%s10680_s30 + $0x258] sm:$0xff] }
 0x115   : > { %v6486_v7 = vcombine.high %v996_v60, %v1000_v61  ;;  %v6485_v12 = vcombine.low %v996_v60, %v1000_v61  ;;  %v8031_v55 = vld [vmem:[#allocation3 + $0x1c0] ss:$16 sps:$4 sm:$0xff]   ;;  %v8040_v61 = vld [vmem:[#allocation3 + $0x1a8] ss:$16 sps:$4 sm:$0xff]  }
 0x116   : > { %1839 = vmatpush1.bf16.msra.mxu0 %v6429_v2  ;;  %v1001_v2 = vld [vmem:[%s10680_s30 + $0x278] sm:$0xff]  ;;  %v8037_v60 = vld [vmem:[#allocation3 + $0x1a0] ss:$16 sps:$4 sm:$0xff]  }
 0x117   : > { %1840 = vmatprep.subr.bf16.mxu0 %v6422_v5  ;;  %1879 = vmatpush1.bf16.msra.mxu1 %v6431_v6  ;;  %v988_v5 = vld [vmem:[%s10680_s30 + $0x210] sm:$0xff]  ;;  %v6488_v11 = vcombine.high %v997_v0, %v1001_v2 }
 0x118   : > { %1880 = vmatprep.subr.bf16.mxu1 %v6424_v9  ;;  %v992_v6 = vld [vmem:[%s10680_s30 + $0x230] sm:$0xff]  ;;  %v989_v9 = vld [vmem:[%s10680_s30 + $0x218] sm:$0xff] }
 0x119   : > { %v6477_v16 = vcombine.low %v988_v5, %v992_v6 }
 0x11a   : > { %1841 = vmatpush1.bf16.msra.mxu0 %v6421_v10  ;;  %v993_v10 = vld [vmem:[%s10680_s30 + $0x238] sm:$0xff] }
 0x11b   : > { %1842 = vmatprep.subr.bf16.mxu0 %v6414_v13  ;;  %1881 = vmatpush1.bf16.msra.mxu1 %v6423_v14  ;;  %v6478_v13 = vcombine.high %v988_v5, %v992_v6  ;;  %v6487_v14 = vcombine.low %v997_v0, %v1001_v2  ;;  %v6480_v15 = vcombine.high %v989_v9, %v993_v10  ;;  %v8043_v0 = vld [vmem:[#allocation3 + $0x180] ss:$16 sps:$4 sm:$0xff]   ;;  %v8046_v2 = vld [vmem:[#allocation3 + $0x188] ss:$16 sps:$4 sm:$0xff]   ;;  %v8054_v6 = vld [vmem:[#allocation3 + $0x16c] ss:$16 sps:$4 sm:$0xff]  }
 0x11c   : > { %1882 = vmatprep.subr.bf16.mxu1 %v6416_v17  ;;  %v6479_v17 = vcombine.low %v989_v9, %v993_v10  ;;  %v8052_v5 = vld [vmem:[#allocation3 + $0x168] ss:$16 sps:$4 sm:$0xff]   ;;  %v8055_v9 = vld [vmem:[#allocation3 + $0x140] ss:$16 sps:$4 sm:$0xff]  }
 0x11d   : > { %v8058_v10 = vld [vmem:[#allocation3 + $0x148] ss:$16 sps:$4 sm:$0xff]  }
 0x11e   : > { %1843 = vmatpush1.bf16.msra.mxu0 %v6413_v18  ;;  %v7977_v18 = vld [vmem:[#allocation3 + $0xe0] ss:$16 sps:$4 sm:$0xff]  }
 0x11f   : > { %1844 = vmatprep.subr.bf16.mxu0 %v6534_v21  ;;  %1883 = vmatpush1.bf16.msra.mxu1 %v6415_v22  ;;  %v7982_v21 = vld [vmem:[#allocation3 + $0xec] ss:$16 sps:$4 sm:$0xff]   ;;  %v7985_v22 = vld [vmem:[#allocation3 + $0xc4] ss:$16 sps:$4 sm:$0xff]  }
 0x120   : > { %1884 = vmatprep.subr.bf16.mxu1 %v6536_v26  ;;  %v7986_v26 = vld [vmem:[#allocation3 + $0xc8] ss:$16 sps:$4 sm:$0xff]  }
 0x122   : > { %1845 = vmatpush2.bf16.msra.mxu0 %v6533_v27  ;;  %v7991_v27 = vld [vmem:[#allocation3 + $0xa4] ss:$16 sps:$4 sm:$0xff]  }
 0x123   : > { %1846 = vmatprep.subr.bf16.mxu0 %v6526_v54  ;;  %1885 = vmatpush2.bf16.msra.mxu1 %v6535_v58  ;;  %v7997_v54 = vld [vmem:[#allocation3 + $0x84] ss:$16 sps:$4 sm:$0xff]   ;;  %v8000_v58 = vld [vmem:[#allocation3 + $0x8c] ss:$16 sps:$4 sm:$0xff]  }
 0x124   : > { %1886 = vmatprep.subr.bf16.mxu1 %v6528_v32  ;;  %v8003_v32 = vld [vmem:[#allocation3 + $0x64] ss:$16 sps:$4 sm:$0xff]  }
 0x126   : > { %1847 = vmatpush2.bf16.msra.mxu0 %v6525_v33  ;;  %v8006_v33 = vld [vmem:[#allocation3 + $0x6c] ss:$16 sps:$4 sm:$0xff]  }
 0x127   : > { %1848 = vmatprep.subr.bf16.mxu0 %v6518_v36  ;;  %1887 = vmatpush2.bf16.msra.mxu1 %v6527_v37  ;;  %v8009_v36 = vld [vmem:[#allocation3 + $0x44] ss:$16 sps:$4 sm:$0xff]   ;;  %v8012_v37 = vld [vmem:[#allocation3 + $0x4c] ss:$16 sps:$4 sm:$0xff]  }
 0x128   : > { %1888 = vmatprep.subr.bf16.mxu1 %v6520_v40  ;;  %v8015_v40 = vld [vmem:[#allocation3 + $0x24] ss:$16 sps:$4 sm:$0xff]  }
 0x12a   : > { %1849 = vmatpush2.bf16.msra.mxu0 %v6517_v41  ;;  %v8018_v41 = vld [vmem:[#allocation3 + $0x2c] ss:$16 sps:$4 sm:$0xff]  }
 0x12b   : > { %1850 = vmatprep.subr.bf16.mxu0 %v6510_v1  ;;  %1889 = vmatpush2.bf16.msra.mxu1 %v6519_v44  ;;  %v8021_v1 = vld [vmem:[#allocation3 + $0x4] ss:$16 sps:$4 sm:$0xff]   ;;  %v8024_v44 = vld [vmem:[#allocation3 + $0xc] ss:$16 sps:$4 sm:$0xff]  }
 0x12c   : > { %1890 = vmatprep.subr.bf16.mxu1 %v6512_v48  ;;  %v8027_v48 = vld [vmem:[#allocation3 + $0x1e4] ss:$16 sps:$4 sm:$0xff]  }
 0x12e   : > { %1851 = vmatpush2.bf16.msra.mxu0 %v6509_v49  ;;  %v8030_v49 = vld [vmem:[#allocation3 + $0x1ec] ss:$16 sps:$4 sm:$0xff]  }
 0x12f   : > { %1852 = vmatprep.subr.bf16.mxu0 %v6502_v52  ;;  %1891 = vmatpush2.bf16.msra.mxu1 %v6511_v53  ;;  %v8033_v52 = vld [vmem:[#allocation3 + $0x1c4] ss:$16 sps:$4 sm:$0xff]   ;;  %v8036_v53 = vld [vmem:[#allocation3 + $0x1cc] ss:$16 sps:$4 sm:$0xff]  }
 0x130   : > { %1892 = vmatprep.subr.bf16.mxu1 %v6504_v57  ;;  %v8039_v57 = vld [vmem:[#allocation3 + $0x1a4] ss:$16 sps:$4 sm:$0xff]  }
 0x132   : > { %1853 = vmatpush2.bf16.msra.mxu0 %v6501_v59  ;;  %v8042_v59 = vld [vmem:[#allocation3 + $0x1ac] ss:$16 sps:$4 sm:$0xff]  }
 0x133   : > { %1854 = vmatprep.subr.bf16.mxu0 %v6494_v62  ;;  %1893 = vmatpush2.bf16.msra.mxu1 %v6503_v63  ;;  %v8045_v62 = vld [vmem:[#allocation3 + $0x184] ss:$16 sps:$4 sm:$0xff]   ;;  %v8048_v63 = vld [vmem:[#allocation3 + $0x18c] ss:$16 sps:$4 sm:$0xff]  }
 0x134   : > { %1894 = vmatprep.subr.bf16.mxu1 %v6496_v3  ;;  %v8049_v3 = vld [vmem:[#allocation3 + $0x160] ss:$16 sps:$4 sm:$0xff]  }
 0x136   : > { %1855 = vmatpush2.bf16.msra.mxu0 %v6493_v4  ;;  %v8051_v4 = vld [vmem:[#allocation3 + $0x164] ss:$16 sps:$4 sm:$0xff]  }
 0x137   : > { %1856 = vmatprep.subr.bf16.mxu0 %v6486_v7  ;;  %1895 = vmatpush2.bf16.msra.mxu1 %v6495_v8  ;;  %v8057_v7 = vld [vmem:[#allocation3 + $0x144] ss:$16 sps:$4 sm:$0xff]   ;;  %v8060_v8 = vld [vmem:[#allocation3 + $0x14c] ss:$16 sps:$4 sm:$0xff]  }
 0x138   : > { %1896 = vmatprep.subr.bf16.mxu1 %v6488_v11  ;;  %v8063_v11 = vld [vmem:[#allocation3 + $0x124] ss:$16 sps:$4 sm:$0xff]  }
 0x13a   : > { %1857 = vmatpush2.bf16.msra.mxu0 %v6485_v12  ;;  %v8066_v12 = vld [vmem:[#allocation3 + $0x12c] ss:$16 sps:$4 sm:$0xff]  }
 0x13b   : > { %1858 = vmatprep.subr.bf16.mxu0 %v6478_v13  ;;  %1897 = vmatpush2.bf16.msra.mxu1 %v6487_v14  ;;  %v8061_v13 = vld [vmem:[#allocation3 + $0x120] ss:$16 sps:$4 sm:$0xff]   ;;  %v8064_v14 = vld [vmem:[#allocation3 + $0x128] ss:$16 sps:$4 sm:$0xff]  }
 0x13c   : > { %1898 = vmatprep.subr.bf16.mxu1 %v6480_v15  ;;  %v8069_v15 = vld [vmem:[#allocation3 + $0x104] ss:$16 sps:$4 sm:$0xff]  }
 0x13e   : > { %1859 = vmatpush2.bf16.msra.mxu0 %v6477_v16  ;;  %v8072_v16 = vld [vmem:[#allocation3 + $0x10c] ss:$16 sps:$4 sm:$0xff]  }
 0x13f   : > { %1899 = vmatpush2.bf16.msra.mxu1 %v6479_v17  ;;  %2349 = vmatprep.subr.bf16.mxu0 %v7979_v19  ;;  %v8067_v17 = vld [vmem:[#allocation3 + $0x100] ss:$16 sps:$4 sm:$0xff]   ;;  %v9612_v19 = vsub.s32 0, %v9258_v45 }
 0x140   : > { %2390 = vmatprep.subr.bf16.mxu1 %v7982_v21 }
 0x141   : > { %1861 = vmatmul.mubr.bf16.vlgmr.msra.gmra.mxu0 %v9427_v23  ;;  %10683 = vst [vmem:[#allocation33_spill] sm:$0xff] %v9612_v19 }
 0x142   : > { %1901 = vmatmul.mubr.bf16.vlgmr.msra.gmra.mxu1 %v9427_v23  ;;  %2350 = vmatpush1.bf16.msra.mxu0 %v7977_v18  ;;  %v7992_v23 = vld [vmem:[#allocation3 + $0xa8] ss:$16 sps:$4 sm:$0xff]  }
 0x143   : > { %2391 = vmatpush1.bf16.msra.mxu1 %v7980_v20  ;;  %2351 = vmatprep.subr.bf16.mxu0 %v7985_v22  ;;  %v8070_v18 = vld [vmem:[#allocation3 + $0x108] ss:$16 sps:$4 sm:$0xff]   ;;  %v1050_v20 = vld [vmem:[%s10684_s0] sm:$0xff]  ;;  %v1727_v22 = vsub.s32 3, %v9258_v45 }
 0x144   : > { %2392 = vmatprep.subr.bf16.mxu1 %v7988_v24  ;;  %v1720_v21 = vrot.slane %v1050_v20, %v9612_v19 }
 0x146   : > { %2352 = vmatpush1.bf16.msra.mxu0 %v7983_v25 }
 0x147   : > { %2393 = vmatpush1.bf16.msra.mxu1 %v7986_v26  ;;  %2353 = vmatprep.subr.bf16.mxu0 %v7991_v27 }
 0x148   : > { %2394 = vmatprep.subr.bf16.mxu1 %v7994_v28 }
 0x14a   : > { %2354 = vmatpush1.bf16.msra.mxu0 %v7989_v29  ;;  %v1728_v29 = vrot.slane %v1050_v20, %v1727_v22 }
 0x14b   : > { %2395 = vmatpush1.bf16.msra.mxu1 %v7992_v23  ;;  %2355 = vmatprep.subr.bf16.mxu0 %v7997_v54 }
 0x14c   : > { %2396 = vmatprep.subr.bf16.mxu1 %v8000_v58 }
 0x14e   : > { %2356 = vmatpush1.bf16.msra.mxu0 %v7995_v30 }
 0x14f   : > { %2397 = vmatpush1.bf16.msra.mxu1 %v7998_v31  ;;  %2357 = vmatprep.subr.bf16.mxu0 %v8003_v32  ;;  %v1723_v32 = vsub.s32 2, %v9258_v45 }
 0x150   : > { %2398 = vmatprep.subr.bf16.mxu1 %v8006_v33 }
 0x152   : > { %2358 = vmatpush1.bf16.msra.mxu0 %v8001_v34 }
 0x153   : > { %2399 = vmatpush1.bf16.msra.mxu1 %v8004_v35  ;;  %2359 = vmatprep.subr.bf16.mxu0 %v8009_v36  ;;  %v1724_v35 = vrot.slane %v1050_v20, %v1723_v32 }
 0x154   : > { %2400 = vmatprep.subr.bf16.mxu1 %v8012_v37 }
 0x156   : > { %2360 = vmatpush1.bf16.msra.mxu0 %v8007_v38 }
 0x157   : > { %2401 = vmatpush1.bf16.msra.mxu1 %v8010_v39  ;;  %2361 = vmatprep.subr.bf16.mxu0 %v8015_v40 }
 0x158   : > { %2402 = vmatprep.subr.bf16.mxu1 %v8018_v41 }
 0x15a   : > { %2362 = vmatpush1.bf16.msra.mxu0 %v8013_v42 }
 0x15b   : > { %2403 = vmatpush1.bf16.msra.mxu1 %v8016_v43  ;;  %2363 = vmatprep.subr.bf16.mxu0 %v8021_v1 }
 0x15c   : > { %2404 = vmatprep.subr.bf16.mxu1 %v8024_v44 }
 0x15e   : > { %2364 = vmatpush1.bf16.msra.mxu0 %v8019_v46 }
 0x15f   : > { %2405 = vmatpush1.bf16.msra.mxu1 %v8022_v47  ;;  %2365 = vmatprep.subr.bf16.mxu0 %v8027_v48  ;;  %v1731_v47 = vsub.s32 4, %v9258_v45 }
 0x160   : > { %2406 = vmatprep.subr.bf16.mxu1 %v8030_v49 }
 0x161   : > { %v1732_v48 = vrot.slane %v1050_v20, %v1731_v47 }
 0x162   : > { %2366 = vmatpush2.bf16.msra.mxu0 %v8025_v50  ;;  %v1739_v50 = vsub.s32 7, %v9258_v45 }
 0x163   : > { %2407 = vmatpush2.bf16.msra.mxu1 %v8028_v51  ;;  %2367 = vmatprep.subr.bf16.mxu0 %v8033_v52 }
 0x164   : > { %2408 = vmatprep.subr.bf16.mxu1 %v8036_v53 }
 0x166   : > { %2368 = vmatpush2.bf16.msra.mxu0 %v8031_v55 }
 0x167   : > { %2409 = vmatpush2.bf16.msra.mxu1 %v8034_v56  ;;  %2369 = vmatprep.subr.bf16.mxu0 %v8039_v57  ;;  %v1740_v57 = vrot.slane %v1050_v20, %v1739_v50 }
 0x168   : > { %2410 = vmatprep.subr.bf16.mxu1 %v8042_v59 }
 0x16a   : > { %2370 = vmatpush2.bf16.msra.mxu0 %v8037_v60 }
 0x16b   : > { %2411 = vmatpush2.bf16.msra.mxu1 %v8040_v61  ;;  %2371 = vmatprep.subr.bf16.mxu0 %v8045_v62  ;;  %v1735_v62 = vsub.s32 6, %v9258_v45 }
 0x16c   : > { %2412 = vmatprep.subr.bf16.mxu1 %v8048_v63 }
 0x16e   : > { %2372 = vmatpush2.bf16.msra.mxu0 %v8043_v0 }
 0x16f   : > { %2413 = vmatpush2.bf16.msra.mxu1 %v8046_v2  ;;  %2373 = vmatprep.subr.bf16.mxu0 %v8051_v4  ;;  %v1736_v2 = vrot.slane %v1050_v20, %v1735_v62  ;;  %v8075_v20 = vld [vmem:[%s10685_s15 + $0x70] sm:$0xff]  }
 0x170   : > { %2414 = vmatprep.subr.bf16.mxu1 %v8054_v6 }
 0x172   : > { %2374 = vmatpush2.bf16.msra.mxu0 %v8049_v3 }
 0x173   : > { %2415 = vmatpush2.bf16.msra.mxu1 %v8052_v5  ;;  %2375 = vmatprep.subr.bf16.mxu0 %v8057_v7 }
 0x174   : > { %2416 = vmatprep.subr.bf16.mxu1 %v8060_v8 }
 0x176   : > { %2376 = vmatpush2.bf16.msra.mxu0 %v8055_v9 }
 0x177   : > { %2417 = vmatpush2.bf16.msra.mxu1 %v8058_v10  ;;  %2377 = vmatprep.subr.bf16.mxu0 %v8063_v11 }
 0x178   : > { %2418 = vmatprep.subr.bf16.mxu1 %v8066_v12 }
 0x17a   : > { %2378 = vmatpush2.bf16.msra.mxu0 %v8061_v13 }
 0x17b   : > { %2419 = vmatpush2.bf16.msra.mxu1 %v8064_v14  ;;  %2379 = vmatprep.subr.bf16.mxu0 %v8069_v15 }
 0x17c   : > { %2420 = vmatprep.subr.bf16.mxu1 %v8072_v16 }
 0x17e   : > { %2380 = vmatpush2.bf16.msra.mxu0 %v8067_v17  ;;  %v8073_v17 = vld [vmem:[%s10685_s15 + $0x78] sm:$0xff]  }
 0x17f   : > { %2421 = vmatpush2.bf16.msra.mxu1 %v8070_v18  ;;  %v8074_v18 = vld [vmem:[%s10685_s15 + $0x38] sm:$0xff]   ;;  %6833 = vmatprep.subr.bf16.mxu0 %v8073_v17 }
 0x180   : > { %v8107_v17 = vld [vmem:[#allocation8 + $0x50] ss:$8 sps:$4 sm:$0xff]  }
 0x1c1   : > { %v1781_v24 = vpop.f32.mrf.mxu0  ;;  %v1821_v27 = vpop.f32.mrf.mxu1 }
 0x1c2   : > { %v1782_v25 = vadd.f32 %v1781_v24, %v1720_v21  ;;  %v1822_v36 = vadd.f32 %v1821_v27, %v1724_v35  ;;  %v8076_v21 = vld [vmem:[%s10685_s15 + $0x30] sm:$0xff]   ;;  %v8077_v24 = vld [vmem:[%s10685_s15 + $0x68] sm:$0xff]   ;;  %v8080_v27 = vld [vmem:[%s10685_s15 + $0x20] sm:$0xff]  }
 0x1c3   : > { %v1783_v26 = vpop.f32.mrf.mxu0  ;;  %v1823_v54 = vpop.f32.mrf.mxu1  ;;  %v8091_v35 = vld [vmem:[%s914_s12 + $0x4] ss:$8 sps:$4 sm:$0xff]  }
 0x1c4   : > { %v6537_v28 = vmul.f32 -1.442695, %v1782_v25  ;;  %v1824_v31 = vadd.f32 %v1823_v54, %v1728_v29  ;;  %v8078_v25 = vld [vmem:[%s10685_s15 + $0x28] sm:$0xff]   ;;  %v8079_v26 = vld [vmem:[%s10685_s15 + $0x60] sm:$0xff]   ;;  %v8082_v29 = vld [vmem:[%s10685_s15 + $0x18] sm:$0xff]  }
 0x1c5   : > { %v1784_v23 = vpop.f32.mrf.mxu0  ;;  %v1825_v30 = vpop.f32.mrf.mxu1  ;;  %v8084_v54 = vld [vmem:[%s10685_s15 + $0x10] sm:$0xff]  }
 0x1c6   : > { %8249 = vpow2.f32 %v6537_v28  ;;  %v6538_v34 = vmul.f32 -1.442695, %v1824_v31  ;;  %v8081_v28 = vld [vmem:[%s10685_s15 + $0x58] sm:$0xff]   ;;  %v8083_v23 = vld [vmem:[%s10685_s15 + $0x50] sm:$0xff]   ;;  %v8086_v30 = vld [vmem:[%s10685_s15 + $0x8] sm:$0xff]  }
 0x1c7   : > { %v1785_v58 = vpop.f32.mrf.mxu0  ;;  %v1826_v33 = vpop.f32.mrf.mxu1  ;;  %v8087_v31 = vld [vmem:[%s10685_s15 + $0x40] sm:$0xff]  }
 0x1c8   : > { %8251 = vpow2.f32 %v6538_v34  ;;  %v8085_v58 = vld [vmem:[%s10685_s15 + $0x48] sm:$0xff]   ;;  %v8088_v33 = vld [vmem:[%s10685_s15] sm:$0xff]  }
 0x1c9   : > { %8253 = vtanh.f32 %v1822_v36  ;;  %v8089_v34 = vld [vmem:[%s914_s12] ss:$8 sps:$4 sm:$0xff]   ;;  %v8092_v36 = vld [vmem:[%s914_s12 + $0x14] ss:$8 sps:$4 sm:$0xff]  }
 0x1d3   : > { %v8250_v37 = vpop.eup %8249 }
 0x1d4   : > { %v1912_v38 = vadd.f32 1.0, %v8250_v37  ;;  %v8094_v37 = vld [vmem:[%s914_s12 + $0x10] ss:$8 sps:$4 sm:$0xff]  }
 0x1d5   : > { %v8252_v39 = vpop.eup %8251 }
 0x1d6   : > { %8255 = vrcp.f32 %v1912_v38  ;;  %v1919_v40 = vadd.f32 1.0, %v8252_v39  ;;  %v8254_v41 = vpop.eup %8253  ;;  %v8095_v38 = vld [vmem:[%s914_s12 + $0x24] ss:$8 sps:$4 sm:$0xff]   ;;  %v8097_v39 = vld [vmem:[%s914_s12 + $0x20] ss:$8 sps:$4 sm:$0xff]  }
 0x1d8   : > { %8257 = vrcp.f32 %v1919_v40  ;;  %v8098_v40 = vld [vmem:[%s914_s12 + $0x34] ss:$8 sps:$4 sm:$0xff]  }
 0x1e3   : > { %v8256_v42 = vpop.eup %8255 }
 0x1e4   : > { %v1922_v43 = vmul.f32 %v8256_v42, %v8254_v41  ;;  %v8100_v41 = vld [vmem:[%s914_s12 + $0x30] ss:$8 sps:$4 sm:$0xff]   ;;  %v2007_v42 = vld [vmem:[%s10687_s29] sm:$0xf]  ;;  %s8868_s12 = smov [#allocation20]  }
 0x1e5   : > { %v8258_v1 = vpop.eup %8257  ;;  %s8765_s5 = sshll.u32 %s8868_s12, 4  ;;  %s8766_s5 = int_to_ptr.vmem [resolvable:$false] %s8765_s5 }
 0x1e6   : > { %8259 = vtanh.f32 %v1922_v43  ;;  %v2332_v43 = vrot.slane %v2007_v42, %v9612_v19  ;;  %s8767_s6 = scalar_lea.vmem %s8766_s5, 32 }
 0x1f3   : > { %v8260_v44 = vpop.eup %8259 }
 0x1f4   : > { %v1924_v46 = vmul.f32 %v8260_v44, %v8258_v1  ;;  %v2340_v1 = vrot.slane %v2007_v42, %v1723_v32  ;;  %v2344_v32 = vrot.slane %v2007_v42, %v1727_v22 }
 0x1f6   : > { %v2005_v16 = vpack.c.bf16 %v1924_v46, %v1924_v46 }
 0x201   : > { %v1862_v49 = vpop.f32.mrf.mxu0 }
 0x202   : > { %v1863_v51 = vadd.f32 %v1862_v49, %v1732_v48  ;;  %v1902_v53 = vpop.f32.mrf.mxu1 }
 0x203   : > { %v1864_v52 = vpop.f32.mrf.mxu0  ;;  %v1903_v4 = vadd.f32 %v1902_v53, %v1736_v2 }
 0x204   : > { %v6539_v55 = vmul.f32 -1.442695, %v1863_v51  ;;  %v1904_v59 = vpop.f32.mrf.mxu1 }
 0x205   : > { %v1865_v56 = vpop.f32.mrf.mxu0  ;;  %v1905_v63 = vadd.f32 %v1904_v59, %v1740_v57  ;;  %v2335_v59 = vsub.s32 1, %v9258_v45 }
 0x206   : > { %8261 = vpow2.f32 %v6539_v55  ;;  %v1906_v61 = vpop.f32.mrf.mxu1 }
 0x207   : > { %v1866_v60 = vpop.f32.mrf.mxu0  ;;  %v6540_v3 = vmul.f32 -1.442695, %v1905_v63 }
 0x208   : > { %v1907_v0 = vpop.f32.mrf.mxu1  ;;  %v2336_v60 = vrot.slane %v2007_v42, %v2335_v59  ;;  %v8143_v42 = vld [vmem:[#allocation6 + $0x10] ss:$8 sps:$4 sm:$0xff]  }
 0x209   : > { %8263 = vpow2.f32 %v6540_v3 }
 0x20a   : > { %8265 = vtanh.f32 %v1903_v4 }
 0x213   : > { %v8262_v5 = vpop.eup %8261 }
 0x214   : > { %v1928_v6 = vadd.f32 1.0, %v8262_v5 }
 0x216   : > { %8267 = vrcp.f32 %v1928_v6  ;;  %v8264_v7 = vpop.eup %8263 }
 0x217   : > { %v1935_v8 = vadd.f32 1.0, %v8264_v7  ;;  %v8266_v9 = vpop.eup %8265 }
 0x219   : > { %8269 = vrcp.f32 %v1935_v8 }
 0x223   : > { %v8268_v10 = vpop.eup %8267 }
 0x224   : > { %v1938_v11 = vmul.f32 %v8268_v10, %v8266_v9  ;;  %v8101_v9 = vld [vmem:[#allocation8 + $0x70] ss:$8 sps:$4 sm:$0xff]   ;;  %v8103_v10 = vld [vmem:[#allocation8 + $0x74] ss:$8 sps:$4 sm:$0xff]  }
 0x226   : > { %8271 = vtanh.f32 %v1938_v11  ;;  %v8270_v12 = vpop.eup %8269  ;;  %v8106_v11 = vld [vmem:[#allocation8 + $0x64] ss:$8 sps:$4 sm:$0xff]  }
 0x233   : > { %v8272_v13 = vpop.eup %8271 }
 0x234   : > { %v1940_v14 = vmul.f32 %v8272_v13, %v8270_v12  ;;  %v8104_v12 = vld [vmem:[#allocation8 + $0x60] ss:$8 sps:$4 sm:$0xff]   ;;  %v8109_v13 = vld [vmem:[#allocation8 + $0x54] ss:$8 sps:$4 sm:$0xff]  }
 0x236   : > { %v2006_v15 = vpack.c.bf16 %v1940_v14, %v1940_v14  ;;  %v8122_v14 = vld [vmem:[#allocation6 + $0x70] ss:$8 sps:$4 sm:$0xff]  }
 0x238   : > { %2381 = vmatprep.mubr.bf16.mxu0 %v2006_v15  ;;  %2422 = vmatprep.mubr.bf16.mxu1 %v2006_v15  ;;  %v8124_v15 = vld [vmem:[#allocation6 + $0x74] ss:$8 sps:$4 sm:$0xff]  }
 0x239   : > { %2382 = vmatmul.mubr.bf16.vlgmr.msra.gmra.mxu0 %v2005_v16  ;;  %2423 = vmatmul.mubr.bf16.vlgmr.msra.gmra.mxu1 %v2005_v16  ;;  %v8130_v16 = vld [vmem:[#allocation6 + $0x64] ss:$8 sps:$4 sm:$0xff]  }
 0x23a   : > { %6834 = vmatpush3.bf16.msra.mxu0 %v8074_v18  ;;  %2692 = vmatprep.mubr.bf16.mxu0 %v8091_v35  ;;  %v8137_v35 = vld [vmem:[#allocation6 + $0x30] ss:$8 sps:$4 sm:$0xff]  }
 0x23b   : > { %6835 = vmatprep.subr.bf16.mxu0 %v8075_v20  ;;  %2850 = vmatprep.subr.bf16.mxu1 %v8124_v15  ;;  %v8112_v20 = vld [vmem:[#allocation8 + $0x44] ss:$8 sps:$4 sm:$0xff]  }
 0x23c   : > { %2851 = vmatpush1.bf16.msra.mxu1 %v8122_v14 }
 0x23d   : > { %2852 = vmatprep.subr.bf16.mxu1 %v8130_v16 }
 0x23e   : > { %6836 = vmatpush3.bf16.msra.mxu0 %v8076_v21  ;;  %v8128_v21 = vld [vmem:[#allocation6 + $0x60] ss:$8 sps:$4 sm:$0xff]  }
 0x23f   : > { %6837 = vmatprep.subr.bf16.mxu0 %v8077_v24  ;;  %v8133_v24 = vld [vmem:[#allocation6 + $0x54] ss:$8 sps:$4 sm:$0xff]  }
 0x240   : > { %2853 = vmatpush1.bf16.msra.mxu1 %v8128_v21 }
 0x241   : > { %2854 = vmatprep.subr.bf16.mxu1 %v8133_v24 }
 0x242   : > { %6838 = vmatpush3.bf16.msra.mxu0 %v8078_v25  ;;  %v8865_v25 = vmov 0  }
 0x243   : > { %6839 = vmatprep.subr.bf16.mxu0 %v8079_v26  ;;  %2882 = vmatprep.mubr.bf16.mxu1 %v8865_v25  ;;  %v8110_v26 = vld [vmem:[#allocation8 + $0x40] ss:$8 sps:$4 sm:$0xff]  }
 0x244   : > { %7975 = vset.pattern.permute.xlu1 %v8865_v25  ;;  %7976 = vset.pattern.permute.xlu0 %v8865_v25 }
 0x246   : > { %6840 = vmatpush3.bf16.msra.mxu0 %v8080_v27 }
 0x247   : > { %6841 = vmatprep.subr.bf16.mxu0 %v8081_v28  ;;  %v8115_v28 = vld [vmem:[#allocation8 + $0x34] ss:$8 sps:$4 sm:$0xff]  }
 0x24a   : > { %6842 = vmatpush3.bf16.msra.mxu0 %v8082_v29  ;;  %v8131_v29 = vld [vmem:[#allocation6 + $0x50] ss:$8 sps:$4 sm:$0xff]  }
 0x24b   : > { %6843 = vmatprep.subr.bf16.mxu0 %v8083_v23  ;;  %v8136_v23 = vld [vmem:[#allocation6 + $0x44] ss:$8 sps:$4 sm:$0xff]   ;;  %2855 = vmatpush1.bf16.msra.mxu1 %v8131_v29 }
 0x24c   : > { %2856 = vmatprep.subr.bf16.mxu1 %v8136_v23 }
 0x24e   : > { %6844 = vmatpush3.bf16.msra.mxu0 %v8084_v54  ;;  %v8113_v54 = vld [vmem:[#allocation8 + $0x30] ss:$8 sps:$4 sm:$0xff]  }
 0x24f   : > { %6845 = vmatprep.subr.bf16.mxu0 %v8085_v58  ;;  %v8118_v58 = vld [vmem:[#allocation8 + $0x24] ss:$8 sps:$4 sm:$0xff]  }
 0x252   : > { %6846 = vmatpush3.bf16.msra.mxu0 %v8086_v30  ;;  %v8134_v30 = vld [vmem:[#allocation6 + $0x40] ss:$8 sps:$4 sm:$0xff]  }
 0x253   : > { %6847 = vmatprep.subr.bf16.mxu0 %v8087_v31  ;;  %v8139_v31 = vld [vmem:[#allocation6 + $0x34] ss:$8 sps:$4 sm:$0xff]   ;;  %2857 = vmatpush1.bf16.msra.mxu1 %v8134_v30 }
 0x254   : > { %2858 = vmatprep.subr.bf16.mxu1 %v8139_v31 }
 0x256   : > { %6848 = vmatpush3.bf16.msra.mxu0 %v8088_v33  ;;  %v8116_v33 = vld [vmem:[#allocation8 + $0x20] ss:$8 sps:$4 sm:$0xff]  }
 0x257   : > { %2979 = vmatprep.subr.bf16.mxu0 %v8103_v10  ;;  %2859 = vmatpush1.bf16.msra.mxu1 %v8137_v35 }
 0x259   : > { %2693 = vmatmul.mubr.bf16.vlgmr.msra.gmra.mxu0 %v8089_v34  ;;  %v8121_v34 = vld [vmem:[#allocation8 + $0x14] ss:$8 sps:$4 sm:$0xff]  }
 0x25a   : > { %2700 = vmatprep.mubr.bf16.mxu0 %v8092_v36  ;;  %2980 = vmatpush1.bf16.msra.mxu0 %v8101_v9  ;;  %v8142_v36 = vld [vmem:[#allocation6 + $0x24] ss:$8 sps:$4 sm:$0xff]  }
 0x25b   : > { %2981 = vmatprep.subr.bf16.mxu0 %v8106_v11  ;;  %2860 = vmatprep.subr.bf16.mxu1 %v8142_v36 }
 0x25e   : > { %2982 = vmatpush1.bf16.msra.mxu0 %v8104_v12 }
 0x25f   : > { %2983 = vmatprep.subr.bf16.mxu0 %v8109_v13 }
 0x261   : > { %2701 = vmatmul.mubr.bf16.gmra.mxu0 %v8094_v37  ;;  %v8119_v37 = vld [vmem:[#allocation8 + $0x10] ss:$8 sps:$4 sm:$0xff]  }
 0x262   : > { %2708 = vmatprep.mubr.bf16.mxu0 %v8095_v38  ;;  %2984 = vmatpush1.bf16.msra.mxu0 %v8107_v17  ;;  %v8127_v38 = vld [vmem:[#allocation8 + $0x4] ss:$8 sps:$4 sm:$0xff]  }
 0x263   : > { %2985 = vmatprep.subr.bf16.mxu0 %v8112_v20 }
 0x266   : > { %2986 = vmatpush1.bf16.msra.mxu0 %v8110_v26 }
 0x267   : > { %2987 = vmatprep.subr.bf16.mxu0 %v8115_v28 }
 0x269   : > { %2709 = vmatmul.mubr.bf16.gmra.mxu0 %v8097_v39  ;;  %v8140_v39 = vld [vmem:[#allocation6 + $0x20] ss:$8 sps:$4 sm:$0xff]  }
 0x26a   : > { %2716 = vmatprep.mubr.bf16.mxu0 %v8098_v40  ;;  %2988 = vmatpush1.bf16.msra.mxu0 %v8113_v54  ;;  %v8145_v40 = vld [vmem:[#allocation6 + $0x14] ss:$8 sps:$4 sm:$0xff]  }
 0x26b   : > { %2989 = vmatprep.subr.bf16.mxu0 %v8118_v58  ;;  %2861 = vmatpush1.bf16.msra.mxu1 %v8140_v39 }
 0x26c   : > { %2862 = vmatprep.subr.bf16.mxu1 %v8145_v40 }
 0x26e   : > { %2990 = vmatpush1.bf16.msra.mxu0 %v8116_v33 }
 0x26f   : > { %2991 = vmatprep.subr.bf16.mxu0 %v8121_v34  ;;  %2863 = vmatpush1.bf16.msra.mxu1 %v8143_v42 }
 0x271   : > { %2717 = vmatmul.mubr.bf16.gmra.mxu0 %v8100_v41  ;;  %v8125_v41 = vld [vmem:[#allocation8] ss:$8 sps:$4 sm:$0xff]  }
 0x272   : > { %3011 = vmatprep.mubr.bf16.mxu0 %v8865_v25  ;;  %2992 = vmatpush1.bf16.msra.mxu0 %v8119_v37  ;;  %v8149_v37 = vld [vmem:[#allocation9 + $0x78] sm:$0xff]  }
 0x273   : > { %2993 = vmatprep.subr.bf16.mxu0 %v8127_v38 }
 0x276   : > { %2994 = vmatpush1.bf16.msra.mxu0 %v8125_v41 }
 0x2f9   : > { %v2383_v44 = vpop.f32.mrf.mxu0  ;;  %v2424_v46 = vpop.f32.mrf.mxu1 }
 0x2fa   : > { %v2384_v47 = vadd.f32 %v2383_v44, %v2332_v43  ;;  %v2425_v48 = vadd.f32 %v2424_v46, %v2340_v1  ;;  %v8148_v43 = vld [vmem:[#allocation6 + $0x4] ss:$8 sps:$4 sm:$0xff]   ;;  %v8146_v1 = vld [vmem:[#allocation6] ss:$8 sps:$4 sm:$0xff]   ;;  %v6609_v46 = vld [vmem:[%s10688_s8] ss:$0 sm:$0xff] }
 0x2fb   : > { %v2385_v49 = vpop.f32.mrf.mxu0  ;;  %v2426_v50 = vpop.f32.mrf.mxu1  ;;  %2864 = vmatprep.subr.bf16.mxu1 %v8148_v43  ;;  %s905_s8 = scalar_lea.vmem [#allocation20], %s904_s9 }
 0x2fc   : > { %v6605_v51 = vmul.f32 -1.442695, %v2384_v47  ;;  %v6607_v52 = vmul.f32 -1.442695, %v2425_v48  ;;  %v9690_v61 = vadd.f32 %v2385_v49, %v2336_v60  ;;  %v9692_v2 = vadd.f32 %v2426_v50, %v2344_v32  ;;  %2865 = vmatpush1.bf16.msra.mxu1 %v8146_v1  ;;  %s6203_s0 = sshll.u32 %s905_s8, 4  ;;  %s10482_s0 = int_to_ptr.vmem [resolvable:$true] %s6203_s0 }
 0x2fd   : > { %v2387_v53 = vpop.f32.mrf.mxu0  ;;  %v2428_v55 = vpop.f32.mrf.mxu1  ;;  %6873 = vmatprep.subr.bf16.mxu1 %v8149_v37  ;;  %s8761_s23 = scalar_lea.vmem %s10482_s0, 16  ;;  %p8768_p4 = scmp.lt.s32.totalorder %s10482_s0, %s8766_s5 }
 0x2fe   : > { %8273 = vpow2.f32 %v6605_v51  ;;  %v6608_v38 = vmul.f32 -1.442695, %v9692_v2  ;;  %p8762_p13 = scmp.ne.s32.totalorder %s10482_s0, %s8761_s23  ;;  %p8769_p7 = scmp.lt.s32.totalorder %s8767_s6, %s8761_s23 }
 0x2ff   : > { %8275 = vpow2.f32 %v6607_v52  ;;  %v2388_v56 = vpop.f32.mrf.mxu0  ;;  %v2429_v57 = vpop.f32.mrf.mxu1  ;;  %v6606_v52 = vmul.f32 -1.442695, %v9690_v61 }
 0x300   : > { %8277 = vtanh.f32 %v9690_v61  ;;  %p8763_p6 = pnand %p8762_p13, %p9035_p5  ;;  %p8770_p12 = por %p8769_p7, %p8768_p4 }
 0x302   : > { %p8764_p9 = pneg %p8763_p6 }
 0x304   : > { %p8771_p10 = pnand %p8770_p12, %p8764_p9 }
 0x30b   : > { %v8274_v62 = vpop.eup %8273 }
 0x30c   : > { %v8276_v63 = vpop.eup %8275  ;;  %v2434_v0 = vadd.f32 1.0, %v8274_v62 }
 0x30d   : > { %v2454_v3 = vadd.f32 1.0, %v8276_v63  ;;  %v8278_v4 = vpop.eup %8277 }
 0x30e   : > { %8279 = vrcp.f32 %v2434_v0 }
 0x30f   : > { %8281 = vrcp.f32 %v2454_v3 }
 0x310   : > { %8283 = vtanh.f32 %v9692_v2  ;;  %v8153_v2 = vld [vmem:[#allocation9 + $0x68] sm:$0xff]  }
 0x319   : > { %v6849_v44 = vpop.f32.mrf.mxu0 }
 0x31b   : > { %v8280_v5 = vpop.eup %8279  ;;  %v6850_v47 = vpop.f32.mrf.mxu0 }
 0x31c   : > { %v8282_v6 = vpop.eup %8281  ;;  %v2444_v7 = vmul.f32 %v8280_v5, %v8278_v4  ;;  %v6851_v48 = vadd.f32 %v6850_v47, %v6849_v44  ;;  %v8150_v44 = vld [vmem:[#allocation9 + $0x38] sm:$0xff]   ;;  %v8151_v47 = vld [vmem:[#allocation9 + $0x70] sm:$0xff]  }
 0x31d   : > { %v8284_v8 = vpop.eup %8283  ;;  %v6852_v49 = vpop.f32.mrf.mxu0 }
 0x31e   : > { %v2464_v22 = vmul.f32 %v8284_v8, %v8282_v6  ;;  %8285 = vtanh.f32 %v2444_v7  ;;  %v2695_v50 = vadd.f32 %v6851_v48, %v6609_v46  ;;  %v8152_v48 = vld [vmem:[#allocation9 + $0x30] sm:$0xff]  }
 0x31f   : > { %v6853_v51 = vpop.f32.mrf.mxu0 }
 0x320   : > { %8287 = vtanh.f32 %v2464_v22  ;;  %v6854_v53 = vadd.f32 %v6853_v51, %v6852_v49  ;;  %v2725_v56 = vmax.f32 %v2695_v50, 0.0  ;;  %v8154_v49 = vld [vmem:[#allocation9 + $0x28] sm:$0xff]   ;;  %v8155_v50 = vld [vmem:[#allocation9 + $0x60] sm:$0xff]  }
 0x321   : > { %v6855_v55 = vpop.f32.mrf.mxu0  ;;  %8289 = vpow2.f32 %v6606_v52  ;;  %v8156_v51 = vld [vmem:[#allocation9 + $0x20] sm:$0xff]   ;;  %v8157_v52 = vld [vmem:[#allocation9 + $0x58] sm:$0xff]  }
 0x322   : > { %v2698_v57 = vadd.f32 %v6854_v53, %v6609_v46  ;;  %v8158_v53 = vld [vmem:[#allocation9 + $0x18] sm:$0xff]  }
 0x323   : > { %v6856_v60 = vpop.f32.mrf.mxu0 }
 0x324   : > { %v2726_v32 = vmax.f32 %v2698_v57, 0.0  ;;  %v6857_v62 = vadd.f32 %v6856_v60, %v6855_v55  ;;  %v8159_v55 = vld [vmem:[#allocation9 + $0x50] sm:$0xff]   ;;  %v8161_v57 = vld [vmem:[#allocation9 + $0x48] sm:$0xff]  }
 0x325   : > { %v6858_v63 = vpop.f32.mrf.mxu0  ;;  %v8162_v60 = vld [vmem:[#allocation9 + $0x8] sm:$0xff]  }
 0x326   : > { %v2749_v0 = vpack.c.bf16 %v2726_v32, %v2725_v56  ;;  %v2703_v3 = vadd.f32 %v6857_v62, %v6609_v46  ;;  %v8160_v56 = vld [vmem:[#allocation9 + $0x10] sm:$0xff]   ;;  %v8163_v32 = vld [vmem:[#allocation9 + $0x40] sm:$0xff]  }
 0x327   : > { %v6859_v4 = vpop.f32.mrf.mxu0  ;;  %v8164_v62 = vld [vmem:[#allocation9] sm:$0xff]  }
 0x328   : > { %v6860_v5 = vadd.f32 %v6859_v4, %v6858_v63  ;;  %3012 = vmatmul.mubr.bf16.vlgmr.msra.gmra.mxu0 %v2749_v0  ;;  %v2727_v7 = vmax.f32 %v2703_v3, 0.0 }
 0x329   : > { %v6861_v6 = vpop.f32.mrf.mxu0  ;;  %3021 = vmatprep.mubr.bf16.mxu0 %v8865_v25 }
 0x32a   : > { %v2706_v8 = vadd.f32 %v6860_v5, %v6609_v46 }
 0x32b   : > { %v8286_v18 = vpop.eup %8285  ;;  %v6862_v61 = vpop.f32.mrf.mxu0 }
 0x32c   : > { %2447 = vrot.lane.b32.xlu0 %v8286_v18, %s8864_s27  ;;  %v2728_v22 = vmax.f32 %v2706_v8, 0.0  ;;  %v6863_v9 = vadd.f32 %v6862_v61, %v6861_v6 }
 0x32d   : > { %v8288_v27 = vpop.eup %8287  ;;  %v6864_v10 = vpop.f32.mrf.mxu0 }
 0x32e   : > { %v2711_v11 = vadd.f32 %v6863_v9, %v6609_v46  ;;  %v2750_v12 = vpack.c.bf16 %v2728_v22, %v2727_v7  ;;  %v8290_v15 = vpop.eup %8289 }
 0x32f   : > { %v6865_v13 = vpop.f32.mrf.mxu0  ;;  %v2441_v21 = vadd.f32 1.0, %v8290_v15 }
 0x330   : > { %2467 = vrot.lane.b32.xlu0 %v8288_v27, %s8864_s27  ;;  %v6866_v14 = vadd.f32 %v6865_v13, %v6864_v10  ;;  %3022 = vmatmul.mubr.bf16.gmra.mxu0 %v2750_v12  ;;  %v2729_v17 = vmax.f32 %v2711_v11, 0.0  ;;  %v3052_v11 = vld [vmem:[%s10532_s11] sm:$0x3] }
 0x331   : > { %v6867_v16 = vpop.f32.mrf.mxu0  ;;  %3031 = vmatprep.mubr.bf16.mxu0 %v8865_v25  ;;  %8291 = vrcp.f32 %v2441_v21 }
 0x332   : > { %v2714_v18 = vadd.f32 %v6866_v14, %v6609_v46  ;;  %8293 = vpow2.f32 %v6608_v38  ;;  %v9720_v14 = vrot.slane %v3052_v11, %v9612_v19 }
 0x333   : > { %v6868_v20 = vpop.f32.mrf.mxu0 }
 0x334   : > { %v2730_v24 = vmax.f32 %v2714_v18, 0.0  ;;  %v6869_v26 = vadd.f32 %v6868_v20, %v6867_v16 }
 0x335   : > { %v6870_v27 = vpop.f32.mrf.mxu0 }
 0x336   : > { %v2719_v28 = vadd.f32 %v6869_v26, %v6609_v46  ;;  %v2751_v29 = vpack.c.bf16 %v2730_v24, %v2729_v17  ;;  %v3061_v17 = vrot.slane %v3052_v11, %v2335_v59 }
 0x337   : > { %v6871_v23 = vpop.f32.mrf.mxu0 }
 0x338   : > { %v6872_v54 = vadd.f32 %v6871_v23, %v6870_v27  ;;  %3032 = vmatmul.mubr.bf16.gmra.mxu0 %v2751_v29  ;;  %v2731_v58 = vmax.f32 %v2719_v28, 0.0 }
 0x339   : > { %3041 = vmatprep.mubr.bf16.mxu0 %v8865_v25 }
 0x33a   : > { %v2722_v30 = vadd.f32 %v6872_v54, %v6609_v46 }
 0x33c   : > { %v2732_v31 = vmax.f32 %v2722_v30, 0.0 }
 0x33e   : > { %v2752_v33 = vpack.c.bf16 %v2732_v31, %v2731_v58  ;;  %v8292_v34 = vpop.eup %8291 }
 0x33f   : > { %v8294_v39 = vpop.eup %8293 }
 0x340   : > { %3042 = vmatmul.mubr.bf16.gmra.mxu0 %v2752_v33  ;;  %v2461_v40 = vadd.f32 1.0, %v8294_v39 }
 0x342   : > { %8295 = vrcp.f32 %v2461_v40 }
 0x34f   : > { %v8296_v25 = vpop.eup %8295 }
 0x39e   : > { %v2448_v35 = vpop.permute.xlu0 %2447 }
 0x39f   : > { %v2450_v36 = vmul.f32 %v8292_v34, %v2448_v35 }
 0x3a1   : > { %2472 = vrot.lane.b32.xlu1 %v2450_v36, %s8864_s27 }
 0x3a2   : > { %v2468_v41 = vpop.permute.xlu0 %2467 }
 0x3a3   : > { %v2470_v42 = vmul.f32 %v8296_v25, %v2468_v41 }
 0x3e8   : > { %v3013_v63 = vpop.f32.mrf.mxu0 }
 0x3ea   : > { %v3015_v0 = vpop.f32.mrf.mxu0 }
 0x3ec   : > { %v3017_v3 = vpop.f32.mrf.mxu0 }
 0x3ee   : > { %v3019_v4 = vpop.f32.mrf.mxu0 }
 0x3f0   : > { %v3023_v5 = vpop.f32.mrf.mxu0 }
 0x3f2   : > { %v3025_v6 = vpop.f32.mrf.mxu0 }
 0x3f4   : > { %v3027_v7 = vpop.f32.mrf.mxu0 }
 0x3f6   : > { %v3029_v8 = vpop.f32.mrf.mxu0 }
 0x3f8   : > { %v3033_v61 = vpop.f32.mrf.mxu0 }
 0x3fa   : > { %v3035_v22 = vpop.f32.mrf.mxu0 }
 0x3fc   : > { %v3037_v9 = vpop.f32.mrf.mxu0 }
 0x3fe   : > { %v3039_v10 = vpop.f32.mrf.mxu0 }
 0x400   : > { %v3043_v15 = vpop.f32.mrf.mxu0 }
 0x402   : > { %v3045_v28 = vpop.f32.mrf.mxu0 }
 0x404   : > { %v3047_v40 = vpop.f32.mrf.mxu0 }
 0x413   : > { %v2473_v43 = vpop.permute.xlu1 %2472 }
 0x414   : > { %v2476_v1 = vsel %vm2475_vm0, %v2473_v43, %v2470_v42 }
 0x415   : > { %v9712_v46 = vpack.c.bf16 %v2476_v1, %v2476_v1 }
 0x417   : > { %10689 = vst [vmem:[#allocation34_spill] sm:$0xff] %v9712_v46  ;;  %2883 = vmatmul.mubr.bf16.vlgmr.msra.gmra.mxu1 %v9712_v46  ;;  %v9978_v46 = vld [vmem:[#allocation14] sm:$0xff]  }
 0x418   : > { %6874 = vmatpush3.bf16.msra.mxu1 %v8150_v44  ;;  %10718 = vst [vmem:[#allocation63_spill] sm:$0xff] %v9978_v46 }
 0x419   : > { %6875 = vmatprep.subr.bf16.mxu1 %v8151_v47 }
 0x41c   : > { %6876 = vmatpush3.bf16.msra.mxu1 %v8152_v48 }
 0x41d   : > { %6877 = vmatprep.subr.bf16.mxu1 %v8153_v2 }
 0x420   : > { %6878 = vmatpush3.bf16.msra.mxu1 %v8154_v49 }
 0x421   : > { %6879 = vmatprep.subr.bf16.mxu1 %v8155_v50 }
 0x424   : > { %6880 = vmatpush3.bf16.msra.mxu1 %v8156_v51  ;;  %v3049_v51 = vpop.f32.mrf.mxu0 }
 0x425   : > { %6881 = vmatprep.subr.bf16.mxu1 %v8157_v52 }
 0x428   : > { %6882 = vmatpush3.bf16.msra.mxu1 %v8158_v53 }
 0x429   : > { %6883 = vmatprep.subr.bf16.mxu1 %v8159_v55 }
 0x42c   : > { %6884 = vmatpush3.bf16.msra.mxu1 %v8160_v56 }
 0x42d   : > { %6885 = vmatprep.subr.bf16.mxu1 %v8161_v57 }
 0x430   : > { %6886 = vmatpush3.bf16.msra.mxu1 %v8162_v60 }
 0x431   : > { %6887 = vmatprep.subr.bf16.mxu1 %v8163_v32 }
 0x434   : > { %6888 = vmatpush3.bf16.msra.mxu1 %v8164_v62 }
 0x4d7   : > { %v2884_v12 = vpop.f32.mrf.mxu1 }
 0x4d8   : > { %v2894_v13 = vrot.slane %v2884_v12, %v9612_v19 }
 0x4d9   : > { %v2886_v16 = vpop.f32.mrf.mxu1 }
 0x4da   : > { %v2898_v18 = vrot.slane %v2886_v16, %v9612_v19  ;;  %v3014_v20 = vadd.f32 %v3013_v63, %v2894_v13  ;;  %v3018_v21 = vadd.f32 %v3017_v3, %v2894_v13  ;;  %v3024_v34 = vadd.f32 %v3023_v5, %v2894_v13  ;;  %v9975_v19 = vld [vmem:[#allocation11 + $0xe0] sm:$0xff]  }
 0x4db   : > { %v2888_v24 = vpop.f32.mrf.mxu1  ;;  %v3028_v45 = vadd.f32 %v3027_v7, %v2894_v13  ;;  %v3034_v55 = vadd.f32 %v3033_v61, %v2894_v13  ;;  %v3038_v56 = vadd.f32 %v3037_v9, %v2894_v13  ;;  %v3048_v7 = vadd.f32 %v3047_v40, %v2894_v13  ;;  %10717 = vst [vmem:[#allocation62_spill] sm:$0xff] %v9975_v19 }
 0x4dc   : > { %v3016_v26 = vadd.f32 %v3015_v0, %v2898_v18  ;;  %v3020_v27 = vadd.f32 %v3019_v4, %v2898_v18  ;;  %v3064_v23 = vadd.f32 %v9720_v14, %v3014_v20  ;;  %v3066_v54 = vadd.f32 %v9720_v14, %v3018_v21  ;;  %v9734_v24 = vld [vmem:[%s9535_s3] sm:$0xff]  }
 0x4dd   : > { %v2889_v29 = vpop.f32.mrf.mxu1  ;;  %v3026_v58 = vadd.f32 %v3025_v6, %v2898_v18  ;;  %v3030_v30 = vadd.f32 %v3029_v8, %v2898_v18  ;;  %v3036_v43 = vadd.f32 %v3035_v22, %v2898_v18  ;;  %v3040_v1 = vadd.f32 %v3039_v10, %v2898_v18  ;;  %7223 = vmatprep.mubr.msk.bf16.mxu0 %vm2475_vm0, %v9734_v24 }
 0x4de   : > { %v3065_v31 = vadd.f32 %v3061_v17, %v3016_v26  ;;  %v3067_v33 = vadd.f32 %v3061_v17, %v3020_v27  ;;  %v3080_v59 = vmax.f32 %v3064_v23, 0.0  ;;  %v3082_v35 = vmax.f32 %v3066_v54, 0.0  ;;  %v9749_v26 = vld [vmem:[#allocation11 + $0x60] sm:$0xff]   ;;  %v9753_v27 = vld [vmem:[#allocation11 + $0x58] sm:$0xff]  }
 0x4df   : > { %v3069_v36 = vadd.f32 %v3061_v17, %v3026_v58  ;;  %v3071_v37 = vadd.f32 %v3061_v17, %v3030_v30  ;;  %v3068_v47 = vadd.f32 %v9720_v14, %v3024_v34  ;;  %v3070_v48 = vadd.f32 %v9720_v14, %v3028_v45 }
 0x4e0   : > { %v3081_v38 = vmax.f32 %v3065_v31, 0.0  ;;  %v3083_v39 = vmax.f32 %v3067_v33, 0.0  ;;  %v3128_v44 = vpack.c.bf16 %v3082_v35, %v3080_v59  ;;  %v3073_v49 = vadd.f32 %v3061_v17, %v3036_v43 }
 0x4e1   : > { %v3085_v41 = vmax.f32 %v3069_v36, 0.0  ;;  %v3087_v25 = vmax.f32 %v3071_v37, 0.0  ;;  %v3075_v50 = vadd.f32 %v3061_v17, %v3040_v1  ;;  %v3084_v52 = vmax.f32 %v3068_v47, 0.0 }
 0x4e2   : > { %v3129_v42 = vpack.c.bf16 %v3083_v39, %v3081_v38  ;;  %v3086_v53 = vmax.f32 %v3070_v48, 0.0  ;;  %v3050_v57 = vadd.f32 %v3049_v51, %v2898_v18  ;;  %v3089_v60 = vmax.f32 %v3073_v49, 0.0 }
 0x4e3   : > { %v3131_v2 = vpack.c.bf16 %v3087_v25, %v3085_v41  ;;  %v3091_v32 = vmax.f32 %v3075_v50, 0.0  ;;  %v3046_v62 = vadd.f32 %v3045_v28, %v2898_v18  ;;  %v3072_v0 = vadd.f32 %v9720_v14, %v3034_v55  ;;  %v9757_v28 = vld [vmem:[#allocation11 + $0x50] sm:$0xff]  }
 0x4e4   : > { %3271 = vmatprep.mubr.bf16.mxu1 %v3129_v42  ;;  %v3130_v63 = vpack.c.bf16 %v3086_v53, %v3084_v52  ;;  %v3074_v3 = vadd.f32 %v9720_v14, %v3038_v56  ;;  %v3079_v4 = vadd.f32 %v3061_v17, %v3050_v57  ;;  %v3044_v61 = vadd.f32 %v3043_v15, %v2894_v13  ;;  %v9738_v13 = vld [vmem:[#allocation11 + $0x78] sm:$0xff]   ;;  %v9740_v15 = vld [vmem:[#allocation11 + $0x70] sm:$0xff]  }
 0x4e5   : > { %3272 = vmatmul.mubr.bf16.vlgmr.msra.gmra.mxu1 %v3128_v44  ;;  %v3133_v5 = vpack.c.bf16 %v3091_v32, %v3089_v60  ;;  %v3077_v6 = vadd.f32 %v3061_v17, %v3046_v62  ;;  %v3088_v8 = vmax.f32 %v3072_v0, 0.0  ;;  %v3078_v11 = vadd.f32 %v9720_v14, %v3048_v7  ;;  %7247 = vmatprep.subr.bf16.mxu1 %v9738_v13  ;;  %v6666_v42 = vld [vmem:[%s10534_s13] ss:$0 sm:$0xff] }
 0x4e6   : > { %3279 = vmatprep.mubr.bf16.mxu1 %v3131_v2  ;;  %v3090_v22 = vmax.f32 %v3074_v3, 0.0  ;;  %v3095_v9 = vmax.f32 %v3079_v4, 0.0  ;;  %v3076_v16 = vadd.f32 %v9720_v14, %v3044_v61  ;;  %7248 = vmatpush3.bf16.msra.mxu1 %v9738_v13  ;;  %v9745_v14 = vld [vmem:[#allocation11 + $0x68] sm:$0xff]   ;;  %v9804_v61 = vld [vmem:[#allocation11 + $0xb8] sm:$0xff]  }
 0x4e7   : > { %v3093_v10 = vmax.f32 %v3077_v6, 0.0  ;;  %v3094_v20 = vmax.f32 %v3078_v11, 0.0  ;;  %7249 = vmatprep.subr.bf16.mxu1 %v9740_v15  ;;  %v9814_v11 = vld [vmem:[#allocation11 + $0xb0] sm:$0xff]  }
 0x4e8   : > { %v3132_v12 = vpack.c.bf16 %v3090_v22, %v3088_v8  ;;  %v3092_v21 = vmax.f32 %v3076_v16, 0.0  ;;  %10690 = vst [vmem:[#allocation35_spill] sm:$0xff] %v9814_v11  ;;  %v9826_v16 = vld [vmem:[%s9535_s3 + $0x20] sm:$0xff]  }
 0x4e9   : > { %v3135_v18 = vpack.c.bf16 %v3095_v9, %v3093_v10  ;;  %v9807_v9 = vld [vmem:[%s9535_s3 + $0x8] sm:$0xff]   ;;  %v9811_v10 = vld [vmem:[%s9535_s3 + $0x10] sm:$0xff]  }
 0x4ea   : > { %v3134_v17 = vpack.c.bf16 %v3094_v20, %v3092_v21  ;;  %7250 = vmatpush3.bf16.msra.mxu1 %v9740_v15  ;;  %v9837_v20 = vld [vmem:[%s9535_s3 + $0x30] sm:$0xff]   ;;  %v9844_v21 = vld [vmem:[%s9535_s3 + $0x38] sm:$0xff]  }
 0x4eb   : > { %7251 = vmatprep.subr.bf16.mxu1 %v9745_v14  ;;  %10692 = vst [vmem:[#allocation37_spill] sm:$0xff] %v9837_v20  ;;  %10693 = vst [vmem:[#allocation38_spill] sm:$0xff] %v9844_v21 }
 0x4ed   : > { %3280 = vmatmul.mubr.bf16.gmra.mxu1 %v3130_v63 }
 0x4ee   : > { %3287 = vmatprep.mubr.bf16.mxu1 %v3133_v5  ;;  %7252 = vmatpush3.bf16.msra.mxu1 %v9745_v14 }
 0x4ef   : > { %7253 = vmatprep.subr.bf16.mxu1 %v9749_v26 }
 0x4f2   : > { %7254 = vmatpush3.bf16.msra.mxu1 %v9749_v26 }
 0x4f3   : > { %7255 = vmatprep.subr.bf16.mxu1 %v9753_v27 }
 0x4f5   : > { %3288 = vmatmul.mubr.bf16.gmra.mxu1 %v3132_v12  ;;  %v9823_v12 = vld [vmem:[%s9535_s3 + $0x18] sm:$0xff]  }
 0x4f6   : > { %3295 = vmatprep.mubr.bf16.mxu1 %v3135_v18  ;;  %7256 = vmatpush3.bf16.msra.mxu1 %v9753_v27  ;;  %v9834_v18 = vld [vmem:[%s9535_s3 + $0x28] sm:$0xff]  }
 0x4f7   : > { %7257 = vmatprep.subr.bf16.mxu1 %v9757_v28  ;;  %10691 = vst [vmem:[#allocation36_spill] sm:$0xff] %v9834_v18 }
 0x4fa   : > { %7258 = vmatpush3.bf16.msra.mxu1 %v9757_v28 }
 0x4fd   : > { %3296 = vmatmul.mubr.bf16.gmra.mxu1 %v3134_v17  ;;  %v9847_v17 = vld [vmem:[%s9535_s3 + $0x40] sm:$0xff]  }
 0x4fe   : > { %10694 = vst [vmem:[#allocation39_spill] sm:$0xff] %v9847_v17 }
 0x5a5   : > { %v6889_v29 = vpop.f32.mrf.mxu1 }
 0x5a7   : > { %v6890_v23 = vpop.f32.mrf.mxu1 }
 0x5a8   : > { %v6891_v57 = vadd.f32 %v6890_v23, %v6889_v29  ;;  %v9854_v29 = vld [vmem:[%s9535_s3 + $0x48] sm:$0xff]   ;;  %v9857_v23 = vld [vmem:[%s9535_s3 + $0x50] sm:$0xff]  }
 0x5a9   : > { %v6892_v54 = vpop.f32.mrf.mxu1  ;;  %10695 = vst [vmem:[#allocation40_spill] sm:$0xff] %v9854_v29  ;;  %10696 = vst [vmem:[#allocation41_spill] sm:$0xff] %v9857_v23 }
 0x5aa   : > { %v3274_v4 = vadd.f32 %v6891_v57, %v6666_v42 }
 0x5ab   : > { %v6893_v58 = vpop.f32.mrf.mxu1 }
 0x5ac   : > { %v6894_v51 = vadd.f32 %v6893_v58, %v6892_v54  ;;  %v9795_v8 = vmax.f32 %v3274_v4, 0.0  ;;  %v9864_v54 = vld [vmem:[%s9535_s3 + $0x58] sm:$0xff]   ;;  %v9868_v58 = vld [vmem:[#allocation11 + $0x48] sm:$0xff]  }
 0x5ad   : > { %v6895_v30 = vpop.f32.mrf.mxu1  ;;  %10697 = vst [vmem:[#allocation42_spill] sm:$0xff] %v9864_v54  ;;  %7259 = vmatprep.subr.bf16.mxu1 %v9868_v58 }
 0x5ae   : > { %v3277_v63 = vadd.f32 %v6894_v51, %v6666_v42  ;;  %7260 = vmatpush3.bf16.msra.mxu1 %v9868_v58 }
 0x5af   : > { %v6896_v31 = vpop.f32.mrf.mxu1 }
 0x5b0   : > { %v6897_v2 = vadd.f32 %v6896_v31, %v6895_v30  ;;  %v9788_v6 = vmax.f32 %v3277_v63, 0.0  ;;  %v9870_v30 = vld [vmem:[#allocation11 + $0xa8] sm:$0xff]   ;;  %v9876_v31 = vld [vmem:[#allocation11 + $0x40] sm:$0xff]   ;;  %v9919_v63 = vld [vmem:[#allocation11 + $0x18] sm:$0xff]  }
 0x5b1   : > { %v6898_v33 = vpop.f32.mrf.mxu1  ;;  %10698 = vst [vmem:[#allocation43_spill] sm:$0xff] %v9870_v30  ;;  %7261 = vmatprep.subr.bf16.mxu1 %v9876_v31 }
 0x5b2   : > { %v3282_v60 = vadd.f32 %v6897_v2, %v6666_v42  ;;  %v9800_v22 = vpack.c.bf16 %v9788_v6, %v9795_v8  ;;  %7262 = vmatpush3.bf16.msra.mxu1 %v9876_v31 }
 0x5b3   : > { %v6899_v34 = vpop.f32.mrf.mxu1 }
 0x5b4   : > { %v6900_v1 = vadd.f32 %v6899_v34, %v6898_v33  ;;  %v9785_v5 = vmax.f32 %v3282_v60, 0.0  ;;  %v9878_v33 = vld [vmem:[#allocation11 + $0xa0] sm:$0xff]   ;;  %v9884_v34 = vld [vmem:[#allocation11 + $0x38] sm:$0xff]  }
 0x5b5   : > { %v6901_v45 = vpop.f32.mrf.mxu1  ;;  %10699 = vst [vmem:[#allocation44_spill] sm:$0xff] %v9878_v33  ;;  %7271 = vmatprep.subr.bf16.mxu1 %v9884_v34 }
 0x5b6   : > { %v3285_v52 = vadd.f32 %v6900_v1, %v6666_v42  ;;  %v9906_v1 = vld [vmem:[#allocation11 + $0x30] sm:$0xff]  }
 0x5b7   : > { %v6902_v59 = vpop.f32.mrf.mxu1 }
 0x5b8   : > { %v6903_v25 = vadd.f32 %v6902_v59, %v6901_v45  ;;  %v9777_v0 = vmax.f32 %v3285_v52, 0.0  ;;  %v9886_v45 = vld [vmem:[#allocation11 + $0x98] sm:$0xff]   ;;  %v9891_v59 = vld [vmem:[#allocation11 + $0x90] sm:$0xff]   ;;  %v9914_v52 = vld [vmem:[#allocation11 + $0x20] sm:$0xff]  }
 0x5b9   : > { %v6904_v35 = vpop.f32.mrf.mxu1  ;;  %10700 = vst [vmem:[#allocation45_spill] sm:$0xff] %v9886_v45  ;;  %10701 = vst [vmem:[#allocation46_spill] sm:$0xff] %v9891_v59 }
 0x5ba   : > { %v3290_v49 = vadd.f32 %v6903_v25, %v6666_v42  ;;  %v9792_v7 = vpack.c.bf16 %v9777_v0, %v9785_v5 }
 0x5bb   : > { %v6905_v36 = vpop.f32.mrf.mxu1 }
 0x5bc   : > { %v6906_v39 = vadd.f32 %v6905_v36, %v6904_v35  ;;  %v9771_v32 = vmax.f32 %v3290_v49, 0.0  ;;  %v9895_v35 = vld [vmem:[#allocation11 + $0x88] sm:$0xff]   ;;  %v9899_v36 = vld [vmem:[#allocation11 + $0x80] sm:$0xff]  }
 0x5bd   : > { %v6907_v37 = vpop.f32.mrf.mxu1  ;;  %10702 = vst [vmem:[#allocation47_spill] sm:$0xff] %v9895_v35  ;;  %10703 = vst [vmem:[#allocation48_spill] sm:$0xff] %v9899_v36 }
 0x5be   : > { %v3293_v44 = vadd.f32 %v6906_v39, %v6666_v42 }
 0x5bf   : > { %v6908_v38 = vpop.f32.mrf.mxu1 }
 0x5c0   : > { %v6909_v40 = vadd.f32 %v6908_v38, %v6907_v37  ;;  %v9765_v53 = vmax.f32 %v3293_v44, 0.0  ;;  %v9903_v37 = vld [vmem:[#allocation14 + $0x38] sm:$0xff]  }
 0x5c1   : > { %v6910_v41 = vpop.f32.mrf.mxu1  ;;  %10704 = vst [vmem:[#allocation49_spill] sm:$0xff] %v9903_v37 }
 0x5c2   : > { %v3298_v47 = vadd.f32 %v6909_v40, %v6666_v42  ;;  %v9782_v3 = vpack.c.bf16 %v9765_v53, %v9771_v32 }
 0x5c3   : > { %v6911_v43 = vpop.f32.mrf.mxu1 }
 0x5c4   : > { %v6912_v48 = vadd.f32 %v6911_v43, %v6910_v41  ;;  %v9767_v55 = vmax.f32 %v3298_v47, 0.0 }
 0x5c6   : > { %v3301_v50 = vadd.f32 %v6912_v48, %v6666_v42  ;;  %v9910_v48 = vld [vmem:[#allocation11 + $0x28] sm:$0xff]  }
 0x5c8   : > { %v9769_v56 = vmax.f32 %v3301_v50, 0.0 }
 0x5ca   : > { %v9775_v62 = vpack.c.bf16 %v9769_v56, %v9767_v55 }
 0x5cc   : > { %7215 = vmatprep.subr.bf16.mxu0 %v9775_v62 }
 0x5cd   : > { %7216 = vmatpush3.bf16.msra.mxu0 %v9775_v62 }
 0x5ce   : > { %7217 = vmatprep.subr.bf16.mxu0 %v9782_v3 }
 0x5d1   : > { %7218 = vmatpush3.bf16.msra.mxu0 %v9782_v3 }
 0x5d2   : > { %7219 = vmatprep.subr.bf16.mxu0 %v9792_v7 }
 0x5d5   : > { %7220 = vmatpush3.bf16.msra.mxu0 %v9792_v7 }
 0x5d6   : > { %7221 = vmatprep.subr.bf16.mxu0 %v9800_v22 }
 0x5d9   : > { %7222 = vmatpush3.bf16.msra.mxu0 %v9800_v22 }
 0x5da   : > { %7295 = vmatprep.subr.bf16.mxu0 %v9804_v61 }
 0x5dc   : > { %7224 = vmatmul.mubr.msk.bf16.vlgmr.msra.gmra.mxu0 %vm2475_vm0, %v9807_v9 }
 0x5dd   : > { %7227 = vmatprep.mubr.msk.bf16.mxu0 %vm2475_vm0, %v9811_v10  ;;  %7296 = vmatpush3.bf16.msra.mxu0 %v9804_v61 }
 0x5de   : > { %7297 = vmatprep.subr.bf16.mxu0 %v9814_v11 }
 0x5e1   : > { %7298 = vmatpush3.bf16.msra.mxu0 %v9814_v11 }
 0x5e2   : > { %7299 = vmatprep.subr.bf16.mxu0 %v9870_v30 }
 0x5e4   : > { %7228 = vmatmul.mubr.msk.bf16.gmra.mxu0 %vm2475_vm0, %v9823_v12 }
 0x5e5   : > { %7231 = vmatprep.mubr.msk.bf16.mxu0 %vm2475_vm0, %v9826_v16  ;;  %7300 = vmatpush3.bf16.msra.mxu0 %v9870_v30 }
 0x5e6   : > { %7301 = vmatprep.subr.bf16.mxu0 %v9878_v33 }
 0x5e9   : > { %7302 = vmatpush3.bf16.msra.mxu0 %v9878_v33 }
 0x5ea   : > { %7303 = vmatprep.subr.bf16.mxu0 %v9886_v45 }
 0x5ec   : > { %7232 = vmatmul.mubr.msk.bf16.gmra.mxu0 %vm2475_vm0, %v9834_v18 }
 0x5ed   : > { %7235 = vmatprep.mubr.msk.bf16.mxu0 %vm2475_vm0, %v9837_v20  ;;  %7304 = vmatpush3.bf16.msra.mxu0 %v9886_v45 }
 0x5ee   : > { %7305 = vmatprep.subr.bf16.mxu0 %v9891_v59 }
 0x5f1   : > { %7306 = vmatpush3.bf16.msra.mxu0 %v9891_v59 }
 0x5f2   : > { %7307 = vmatprep.subr.bf16.mxu0 %v9895_v35 }
 0x5f4   : > { %7236 = vmatmul.mubr.msk.bf16.gmra.mxu0 %vm2475_vm0, %v9844_v21 }
 0x5f5   : > { %7239 = vmatprep.mubr.msk.bf16.mxu0 %vm2475_vm0, %v9847_v17  ;;  %7308 = vmatpush3.bf16.msra.mxu0 %v9895_v35 }
 0x5f6   : > { %7309 = vmatprep.subr.bf16.mxu0 %v9899_v36 }
 0x5f9   : > { %7310 = vmatpush3.bf16.msra.mxu0 %v9899_v36 }
 0x5fa   : > { %7343 = vmatprep.subr.bf16.mxu0 %v9903_v37 }
 0x5fc   : > { %7240 = vmatmul.mubr.msk.bf16.gmra.mxu0 %vm2475_vm0, %v9854_v29 }
 0x5fd   : > { %7243 = vmatprep.mubr.msk.bf16.mxu0 %vm2475_vm0, %v9857_v23 }
 0x604   : > { %7244 = vmatmul.mubr.msk.bf16.gmra.mxu0 %vm2475_vm0, %v9864_v54 }
 0x69c   : > { %v7225_v38 = vpop.f32.mrf.mxu0 }
 0x69e   : > { %v3566_v39 = vpop.f32.mrf.mxu0 }
 0x6a0   : > { %v7226_v40 = vpop.f32.mrf.mxu0 }
 0x6a1   : > { %v3662_v42 = vpack.c.bf16 %v7226_v40, %v7225_v38 }
 0x6a2   : > { %v3569_v41 = vpop.f32.mrf.mxu0 }
 0x6a3   : > { %v3661_v25 = vpack.c.bf16 %v3569_v41, %v3566_v39  ;;  %v9923_v41 = vld [vmem:[#allocation11 + $0x10] sm:$0xff]  }
 0x6a4   : > { %v7229_v43 = vpop.f32.mrf.mxu0  ;;  %10705 = vst [vmem:[#allocation50_spill] sm:$0xff] %v9923_v41 }
 0x6a5   : > { %7263 = vmatprep.mubr.bf16.mxu1 %v3661_v25  ;;  %v9925_v25 = vld [vmem:[#allocation14 + $0x30] sm:$0xff]  }
 0x6a6   : > { %v3582_v44 = vpop.f32.mrf.mxu0  ;;  %7264 = vmatmul.mubr.bf16.vlgmr.msra.gmra.mxu1 %v3662_v42  ;;  %10706 = vst [vmem:[#allocation51_spill] sm:$0xff] %v9925_v25 }
 0x6a7   : > { %7272 = vmatpush3.bf16.msra.mxu1 %v9884_v34 }
 0x6a8   : > { %v7230_v47 = vpop.f32.mrf.mxu0  ;;  %7273 = vmatprep.subr.bf16.mxu1 %v9906_v1 }
 0x6a9   : > { %v3664_v2 = vpack.c.bf16 %v7230_v47, %v7229_v43  ;;  %v9933_v47 = vld [vmem:[#allocation14 + $0x28] sm:$0xff]  }
 0x6aa   : > { %v3585_v49 = vpop.f32.mrf.mxu0  ;;  %10708 = vst [vmem:[#allocation53_spill] sm:$0xff] %v9933_v47 }
 0x6ab   : > { %v3663_v50 = vpack.c.bf16 %v3585_v49, %v3582_v44  ;;  %7274 = vmatpush3.bf16.msra.mxu1 %v9906_v1  ;;  %v9931_v44 = vld [vmem:[#allocation11 + $0x8] sm:$0xff]  }
 0x6ac   : > { %v7233_v51 = vpop.f32.mrf.mxu0  ;;  %7275 = vmatprep.subr.bf16.mxu1 %v9910_v48  ;;  %10707 = vst [vmem:[#allocation52_spill] sm:$0xff] %v9931_v44 }
 0x6ad   : > { %7267 = vmatprep.mubr.bf16.mxu1 %v3663_v50 }
 0x6ae   : > { %v3598_v57 = vpop.f32.mrf.mxu0  ;;  %7268 = vmatmul.mubr.bf16.gmra.mxu1 %v3664_v2 }
 0x6af   : > { %7276 = vmatpush3.bf16.msra.mxu1 %v9910_v48  ;;  %7287 = vmatprep.mubr.bf16.mxu1 %v9800_v22 }
 0x6b0   : > { %v7234_v60 = vpop.f32.mrf.mxu0  ;;  %7277 = vmatprep.subr.bf16.mxu1 %v9914_v52 }
 0x6b1   : > { %v3892_v4 = vpack.c.bf16 %v7234_v60, %v7233_v51  ;;  %v9939_v51 = vld [vmem:[#allocation11] sm:$0xff]  }
 0x6b2   : > { %v3601_v38 = vpop.f32.mrf.mxu0  ;;  %10709 = vst [vmem:[#allocation54_spill] sm:$0xff] %v9939_v51  ;;  %v9943_v60 = vld [vmem:[#allocation14 + $0x20] sm:$0xff]  }
 0x6b3   : > { %v3891_v39 = vpack.c.bf16 %v3601_v38, %v3598_v57  ;;  %7278 = vmatpush3.bf16.msra.mxu1 %v9914_v52  ;;  %10710 = vst [vmem:[#allocation55_spill] sm:$0xff] %v9943_v60  ;;  %v9951_v38 = vld [vmem:[#allocation14 + $0x18] sm:$0xff]  }
 0x6b4   : > { %v7237_v40 = vpop.f32.mrf.mxu0  ;;  %7279 = vmatprep.subr.bf16.mxu1 %v9919_v63  ;;  %10712 = vst [vmem:[#allocation57_spill] sm:$0xff] %v9951_v38 }
 0x6b5   : > { %7311 = vmatprep.mubr.bf16.mxu0 %v3891_v39 }
 0x6b6   : > { %v3614_v42 = vpop.f32.mrf.mxu0  ;;  %7312 = vmatmul.mubr.bf16.vlgmr.msra.gmra.mxu0 %v3892_v4  ;;  %v9949_v4 = vld [vmem:[#allocation11 + $0xf8] sm:$0xff]  }
 0x6b7   : > { %7280 = vmatpush3.bf16.msra.mxu1 %v9919_v63  ;;  %7344 = vmatpush3.bf16.msra.mxu0 %v9903_v37  ;;  %10711 = vst [vmem:[#allocation56_spill] sm:$0xff] %v9949_v4 }
 0x6b8   : > { %v7238_v43 = vpop.f32.mrf.mxu0  ;;  %7281 = vmatprep.subr.bf16.mxu1 %v9923_v41  ;;  %7345 = vmatprep.subr.bf16.mxu0 %v9925_v25 }
 0x6b9   : > { %v3894_v2 = vpack.c.bf16 %v7238_v43, %v7237_v40  ;;  %v9958_v40 = vld [vmem:[#allocation11 + $0xf0] sm:$0xff]   ;;  %v9967_v43 = vld [vmem:[#allocation11 + $0xe8] sm:$0xff]  }
 0x6ba   : > { %v3617_v49 = vpop.f32.mrf.mxu0  ;;  %10713 = vst [vmem:[#allocation58_spill] sm:$0xff] %v9958_v40  ;;  %10715 = vst [vmem:[#allocation60_spill] sm:$0xff] %v9967_v43 }
 0x6bb   : > { %v3893_v50 = vpack.c.bf16 %v3617_v49, %v3614_v42  ;;  %7282 = vmatpush3.bf16.msra.mxu1 %v9923_v41  ;;  %7346 = vmatpush3.bf16.msra.mxu0 %v9925_v25  ;;  %v9960_v42 = vld [vmem:[#allocation14 + $0x10] sm:$0xff]   ;;  %v9970_v49 = vld [vmem:[#allocation14 + $0x8] sm:$0xff]   ;;  %v10009_v25 = vld [vmem:[#allocation12 + $0x38] sm:$0xff]  }
 0x6bc   : > { %7283 = vmatprep.subr.bf16.mxu1 %v9931_v44  ;;  %7347 = vmatprep.subr.bf16.mxu0 %v9933_v47  ;;  %v9941_v57 = vpop.f32.mrf.mxu0  ;;  %10714 = vst [vmem:[#allocation59_spill] sm:$0xff] %v9960_v42  ;;  %10716 = vst [vmem:[#allocation61_spill] sm:$0xff] %v9970_v49 }
 0x6bd   : > { %7315 = vmatprep.mubr.bf16.mxu0 %v3893_v50  ;;  %10723 = vst [vmem:[#allocation68_spill] sm:$0xff] %v10009_v25 }
 0x6be   : > { %7316 = vmatmul.mubr.bf16.gmra.mxu0 %v3894_v2  ;;  %v3630_v39 = vpop.f32.mrf.mxu0 }
 0x6bf   : > { %7284 = vmatpush3.bf16.msra.mxu1 %v9931_v44  ;;  %7348 = vmatpush3.bf16.msra.mxu0 %v9933_v47 }
 0x6c0   : > { %7359 = vmatprep.mubr.bf16.mxu0 %v9800_v22  ;;  %7285 = vmatprep.subr.bf16.mxu1 %v9939_v51  ;;  %v7242_v22 = vpop.f32.mrf.mxu0 }
 0x6c1   : > { %7349 = vmatprep.subr.bf16.mxu0 %v9943_v60 }
 0x6c2   : > { %v3633_v2 = vpop.f32.mrf.mxu0 }
 0x6c3   : > { %7286 = vmatpush3.bf16.msra.mxu1 %v9939_v51  ;;  %7350 = vmatpush3.bf16.msra.mxu0 %v9943_v60  ;;  %v4016_v50 = vpack.c.bf16 %v3633_v2, %v3630_v39  ;;  %v9984_v39 = vld [vmem:[#allocation11 + $0xd8] sm:$0xff]   ;;  %v9990_v2 = vld [vmem:[#allocation11 + $0xd0] sm:$0xff]   ;;  %v4017_v60 = vpack.c.bf16 %v7242_v22, %v9941_v57  ;;  %v10020_v57 = vld [vmem:[#allocation12 + $0x20] sm:$0xff]  }
 0x6c4   : > { %7319 = vmatprep.subr.bf16.mxu1 %v9949_v4  ;;  %7351 = vmatprep.subr.bf16.mxu0 %v9951_v38  ;;  %10719 = vst [vmem:[#allocation64_spill] sm:$0xff] %v9984_v39  ;;  %10720 = vst [vmem:[#allocation65_spill] sm:$0xff] %v9990_v2  ;;  %v10037_v22 = vld [vmem:[#allocation12] sm:$0xff]  }
 0x6c5   : > { %10726 = vst [vmem:[#allocation71_spill] sm:$0xff] %v10020_v57  ;;  %10730 = vst [vmem:[#allocation75_spill] sm:$0xff] %v10037_v22 }
 0x6c6   : > { %7288 = vmatmul.mubr.bf16.vlgmr.msra.gmra.mxu1 %v9792_v7 }
 0x6c7   : > { %7291 = vmatprep.mubr.bf16.mxu1 %v9782_v3  ;;  %7320 = vmatpush3.bf16.msra.mxu1 %v9949_v4 }
 0x6c8   : > { %7352 = vmatpush3.bf16.msra.mxu0 %v9951_v38  ;;  %7321 = vmatprep.subr.bf16.mxu1 %v9958_v40 }
 0x6c9   : > { %7353 = vmatprep.subr.bf16.mxu0 %v9960_v42 }
 0x6cb   : > { %7322 = vmatpush3.bf16.msra.mxu1 %v9958_v40 }
 0x6cc   : > { %7354 = vmatpush3.bf16.msra.mxu0 %v9960_v42  ;;  %7323 = vmatprep.subr.bf16.mxu1 %v9967_v43  ;;  %v7245_v42 = vpop.f32.mrf.mxu0 }
 0x6cd   : > { %7355 = vmatprep.subr.bf16.mxu0 %v9970_v49 }
 0x6ce   : > { %7292 = vmatmul.mubr.bf16.gmra.mxu1 %v9775_v62 }
 0x6cf   : > { %7324 = vmatpush3.bf16.msra.mxu1 %v9967_v43  ;;  %7335 = vmatprep.mubr.bf16.mxu1 %v4016_v50  ;;  %v9996_v50 = vld [vmem:[#allocation11 + $0xc8] sm:$0xff]  }
 0x6d0   : > { %7356 = vmatpush3.bf16.msra.mxu0 %v9970_v49  ;;  %7325 = vmatprep.subr.bf16.mxu1 %v9975_v19  ;;  %10721 = vst [vmem:[#allocation66_spill] sm:$0xff] %v9996_v50  ;;  %v3646_v49 = vpop.f32.mrf.mxu0 }
 0x6d1   : > { %7357 = vmatprep.subr.bf16.mxu0 %v9978_v46 }
 0x6d2   : > { %v7246_v38 = vpop.f32.mrf.mxu0 }
 0x6d3   : > { %7326 = vmatpush3.bf16.msra.mxu1 %v9975_v19  ;;  %v4019_v47 = vpack.c.bf16 %v7246_v38, %v7245_v42  ;;  %v10033_v38 = vld [vmem:[#allocation12 + $0x8] sm:$0xff]  }
 0x6d4   : > { %7358 = vmatpush3.bf16.msra.mxu0 %v9978_v46  ;;  %7327 = vmatprep.subr.bf16.mxu1 %v9984_v39  ;;  %v10000_v46 = vld [vmem:[#allocation11 + $0xc0] sm:$0xff]   ;;  %10729 = vst [vmem:[#allocation74_spill] sm:$0xff] %v10033_v38 }
 0x6d5   : > { %10722 = vst [vmem:[#allocation67_spill] sm:$0xff] %v10000_v46 }
 0x6d7   : > { %7360 = vmatmul.mubr.bf16.vlgmr.msra.gmra.mxu0 %v9792_v7  ;;  %7328 = vmatpush3.bf16.msra.mxu1 %v9984_v39  ;;  %v3649_v7 = vpop.f32.mrf.mxu0 }
 0x6d8   : > { %7363 = vmatprep.mubr.bf16.mxu0 %v9782_v3  ;;  %7329 = vmatprep.subr.bf16.mxu1 %v9990_v2  ;;  %v4018_v3 = vpack.c.bf16 %v3649_v7, %v3646_v49 }
 0x6db   : > { %7330 = vmatpush3.bf16.msra.mxu1 %v9990_v2 }
 0x6dc   : > { %7331 = vmatprep.subr.bf16.mxu1 %v9996_v50 }
 0x6df   : > { %7364 = vmatmul.mubr.bf16.gmra.mxu0 %v9775_v62  ;;  %7332 = vmatpush3.bf16.msra.mxu1 %v9996_v50  ;;  %v10012_v62 = vld [vmem:[#allocation12 + $0x30] sm:$0xff]  }
 0x6e0   : > { %7333 = vmatprep.subr.bf16.mxu1 %v10000_v46  ;;  %7399 = vmatprep.mubr.msk.bf16.mxu0 %vm2475_vm0, %v9734_v24  ;;  %10724 = vst [vmem:[#allocation69_spill] sm:$0xff] %v10012_v62  ;;  %v10016_v24 = vld [vmem:[#allocation12 + $0x28] sm:$0xff]  }
 0x6e1   : > { %10725 = vst [vmem:[#allocation70_spill] sm:$0xff] %v10016_v24 }
 0x6e3   : > { %7334 = vmatpush3.bf16.msra.mxu1 %v10000_v46 }
 0x6e4   : > { %7367 = vmatprep.subr.bf16.mxu1 %v10009_v25 }
 0x6e6   : > { %7336 = vmatmul.mubr.bf16.vlgmr.msra.gmra.mxu1 %v4017_v60  ;;  %v10029_v60 = vld [vmem:[#allocation12 + $0x10] sm:$0xff]  }
 0x6e7   : > { %7339 = vmatprep.mubr.bf16.mxu1 %v4018_v3  ;;  %7368 = vmatpush3.bf16.msra.mxu1 %v10009_v25  ;;  %10728 = vst [vmem:[#allocation73_spill] sm:$0xff] %v10029_v60 }
 0x6e8   : > { %7369 = vmatprep.subr.bf16.mxu1 %v10012_v62 }
 0x6eb   : > { %7370 = vmatpush3.bf16.msra.mxu1 %v10012_v62 }
 0x6ec   : > { %7371 = vmatprep.subr.bf16.mxu1 %v10016_v24 }
 0x6ee   : > { %7340 = vmatmul.mubr.bf16.gmra.mxu1 %v4019_v47  ;;  %v10024_v47 = vld [vmem:[#allocation12 + $0x18] sm:$0xff]  }
 0x6ef   : > { %7372 = vmatpush3.bf16.msra.mxu1 %v10016_v24  ;;  %10727 = vst [vmem:[#allocation72_spill] sm:$0xff] %v10024_v47 }
 0x6f0   : > { %7373 = vmatprep.subr.bf16.mxu1 %v10020_v57 }
 0x6f3   : > { %7374 = vmatpush3.bf16.msra.mxu1 %v10020_v57 }
 0x6f4   : > { %7375 = vmatprep.subr.bf16.mxu1 %v10024_v47 }
 0x6f7   : > { %7376 = vmatpush3.bf16.msra.mxu1 %v10024_v47 }
 0x6f8   : > { %7377 = vmatprep.subr.bf16.mxu1 %v10029_v60 }
 0x6fb   : > { %7378 = vmatpush3.bf16.msra.mxu1 %v10029_v60 }
 0x6fc   : > { %7379 = vmatprep.subr.bf16.mxu1 %v10033_v38 }
 0x6ff   : > { %7380 = vmatpush3.bf16.msra.mxu1 %v10033_v38 }
 0x700   : > { %7381 = vmatprep.subr.bf16.mxu1 %v10037_v22 }
 0x703   : > { %7382 = vmatpush3.bf16.msra.mxu1 %v10037_v22 }
 0x704   : > { %7423 = vmatprep.subr.bf16.mxu1 %v9738_v13 }
 0x766   : > { %v7265_v42 = vpop.f32.mrf.mxu1 }
 0x768   : > { %v3747_v49 = vpop.f32.mrf.mxu1 }
 0x76a   : > { %v7266_v7 = vpop.f32.mrf.mxu1 }
 0x76c   : > { %v3750_v3 = vpop.f32.mrf.mxu1 }
 0x76e   : > { %v7269_v47 = vpop.f32.mrf.mxu1 }
 0x770   : > { %v3763_v60 = vpop.f32.mrf.mxu1 }
 0x772   : > { %v7270_v57 = vpop.f32.mrf.mxu1 }
 0x774   : > { %v3766_v24 = vpop.f32.mrf.mxu1 }
 0x776   : > { %v7313_v35 = vpop.f32.mrf.mxu0 }
 0x778   : > { %v3977_v45 = vpop.f32.mrf.mxu0 }
 0x77a   : > { %v7314_v30 = vpop.f32.mrf.mxu0 }
 0x77c   : > { %v3980_v11 = vpop.f32.mrf.mxu0 }
 0x77e   : > { %v7317_v50 = vpop.f32.mrf.mxu0 }
 0x780   : > { %v3993_v23 = vpop.f32.mrf.mxu0 }
 0x786   : > { %v7289_v62 = vpop.f32.mrf.mxu1 }
 0x787   : > { %v3869_v43 = vadd.f32 %v7289_v62, %v7265_v42 }
 0x788   : > { %v3860_v37 = vpop.f32.mrf.mxu1 }
 0x789   : > { %v3861_v39 = vadd.f32 %v3860_v37, %v3747_v49  ;;  %v4010_v17 = vadd.f32 %v7313_v35, %v3869_v43 }
 0x78a   : > { %v7290_v36 = vpop.f32.mrf.mxu1 }
 0x78b   : > { %v3872_v46 = vadd.f32 %v7290_v36, %v7266_v7  ;;  %v4008_v4 = vadd.f32 %v3977_v45, %v3861_v39  ;;  %v7318_v7 = vpop.f32.mrf.mxu0 }
 0x78c   : > { %v3863_v38 = vpop.f32.mrf.mxu1 }
 0x78d   : > { %v3864_v19 = vadd.f32 %v3863_v38, %v3750_v3  ;;  %v4011_v54 = vadd.f32 %v7314_v30, %v3872_v46 }
 0x78e   : > { %v7293_v59 = vpop.f32.mrf.mxu1 }
 0x78f   : > { %v4009_v51 = vadd.f32 %v3980_v11, %v3864_v19  ;;  %v3885_v30 = vadd.f32 %v7293_v59, %v7269_v47 }
 0x790   : > { %v3876_v33 = vpop.f32.mrf.mxu1 }
 0x791   : > { %v3877_v62 = vadd.f32 %v3876_v33, %v3763_v60 }
 0x792   : > { %v7294_v22 = vpop.f32.mrf.mxu1 }
 0x793   : > { %v3888_v36 = vadd.f32 %v7294_v22, %v7270_v57  ;;  %v4012_v35 = vadd.f32 %v3993_v23, %v3877_v62 }
 0x794   : > { %v3879_v25 = vpop.f32.mrf.mxu1 }
 0x795   : > { %v3880_v38 = vadd.f32 %v3879_v25, %v3766_v24 }
 0x7a6   : > { %v7337_v2 = vpop.f32.mrf.mxu1 }
 0x7a7   : > { %v10048_v18 = vadd.f32 %v7337_v2, %v4010_v17  ;;  %v4014_v17 = vadd.f32 %v7317_v50, %v3885_v30 }
 0x7a8   : > { %v4102_v40 = vpop.f32.mrf.mxu1 }
 0x7a9   : > { %v10044_v41 = vadd.f32 %v4102_v40, %v4008_v4 }
 0x7aa   : > { %v7338_v29 = vpop.f32.mrf.mxu1 }
 0x7ab   : > { %v10042_v21 = vadd.f32 %v7338_v29, %v4011_v54  ;;  %v4015_v29 = vadd.f32 %v7318_v7, %v3888_v36  ;;  %v3996_v54 = vpop.f32.mrf.mxu0 }
 0x7ac   : > { %v4105_v44 = vpop.f32.mrf.mxu1 }
 0x7ad   : > { %v10046_v20 = vadd.f32 %v4105_v44, %v4009_v51  ;;  %v4142_v19 = vpack.c.bf16 %v10042_v21, %v10048_v18  ;;  %v4013_v44 = vadd.f32 %v3996_v54, %v3880_v38 }
 0x7ae   : > { %v7341_v37 = vpop.f32.mrf.mxu1 }
 0x7af   : > { %v4141_v46 = vpack.c.bf16 %v10046_v20, %v10044_v41  ;;  %v10062_v4 = vadd.f32 %v7341_v37, %v4014_v17 }
 0x7b0   : > { %v4118_v11 = vpop.f32.mrf.mxu1 }
 0x7b1   : > { %7383 = vmatprep.mubr.bf16.mxu1 %v4141_v46  ;;  %v10058_v59 = vadd.f32 %v4118_v11, %v4012_v35 }
 0x7b2   : > { %v7342_v45 = vpop.f32.mrf.mxu1  ;;  %7384 = vmatmul.mubr.bf16.vlgmr.msra.gmra.mxu1 %v4142_v19 }
 0x7b3   : > { %7424 = vmatpush3.bf16.msra.mxu1 %v9738_v13  ;;  %v10055_v33 = vadd.f32 %v7342_v45, %v4015_v29 }
 0x7b4   : > { %v4121_v25 = vpop.f32.mrf.mxu1  ;;  %7425 = vmatprep.subr.bf16.mxu1 %v9740_v15 }
 0x7b5   : > { %v10060_v51 = vadd.f32 %v4121_v25, %v4013_v44  ;;  %v4144_v13 = vpack.c.bf16 %v10055_v33, %v10062_v4 }
 0x7b7   : > { %v4143_v40 = vpack.c.bf16 %v10060_v51, %v10058_v59  ;;  %7426 = vmatpush3.bf16.msra.mxu1 %v9740_v15  ;;  %v7361_v15 = vpop.f32.mrf.mxu0 }
 0x7b8   : > { %7427 = vmatprep.subr.bf16.mxu1 %v9745_v14 }
 0x7b9   : > { %7387 = vmatprep.mubr.bf16.mxu1 %v4143_v40 }
 0x7ba   : > { %7388 = vmatmul.mubr.bf16.gmra.mxu1 %v4144_v13 }
 0x7bb   : > { %7428 = vmatpush3.bf16.msra.mxu1 %v9745_v14  ;;  %v4227_v14 = vpop.f32.mrf.mxu0 }
 0x7bc   : > { %7429 = vmatprep.subr.bf16.mxu1 %v9749_v26 }
 0x7bf   : > { %7430 = vmatpush3.bf16.msra.mxu1 %v9749_v26  ;;  %v7362_v26 = vpop.f32.mrf.mxu0 }
 0x7c0   : > { %7431 = vmatprep.subr.bf16.mxu1 %v9753_v27 }
 0x7c1   : > { %v4230_v23 = vpop.f32.mrf.mxu0 }
 0x7c3   : > { %7432 = vmatpush3.bf16.msra.mxu1 %v9753_v27  ;;  %v7365_v27 = vpop.f32.mrf.mxu0 }
 0x7c4   : > { %7433 = vmatprep.subr.bf16.mxu1 %v9757_v28 }
 0x7c7   : > { %7434 = vmatpush3.bf16.msra.mxu1 %v9757_v28  ;;  %v4243_v28 = vpop.f32.mrf.mxu0 }
 0x7c8   : > { %7435 = vmatprep.subr.bf16.mxu1 %v9868_v58 }
 0x7c9   : > { %v7366_v42 = vpop.f32.mrf.mxu0 }
 0x7cb   : > { %7436 = vmatpush3.bf16.msra.mxu1 %v9868_v58  ;;  %v4246_v30 = vpop.f32.mrf.mxu0 }
 0x7cc   : > { %7437 = vmatprep.subr.bf16.mxu1 %v9876_v31 }
 0x7cf   : > { %7438 = vmatpush3.bf16.msra.mxu1 %v9876_v31 }
 0x7d0   : > { %7471 = vmatprep.subr.bf16.mxu1 %v9804_v61 }
 0x872   : > { %v7385_v43 = vpop.f32.mrf.mxu1 }
 0x873   : > { %v4349_v24 = vadd.f32 %v7385_v43, %v7361_v15 }
 0x874   : > { %v4340_v39 = vpop.f32.mrf.mxu1 }
 0x875   : > { %v6757_v31 = vmul.f32 -1.442695, %v4349_v24  ;;  %v4341_v49 = vadd.f32 %v4340_v39, %v4227_v14 }
 0x876   : > { %v7386_v2 = vpop.f32.mrf.mxu1 }
 0x877   : > { %v4352_v50 = vadd.f32 %v7386_v2, %v7362_v26  ;;  %v6755_v19 = vmul.f32 -1.442695, %v4341_v49 }
 0x878   : > { %v4343_v57 = vpop.f32.mrf.mxu1 }
 0x879   : > { %v6758_v47 = vmul.f32 -1.442695, %v4352_v50  ;;  %v4344_v58 = vadd.f32 %v4343_v57, %v4230_v23 }
 0x87a   : > { %v7389_v60 = vpop.f32.mrf.mxu1 }
 0x87b   : > { %v4365_v22 = vadd.f32 %v7389_v60, %v7365_v27  ;;  %8297 = vpow2.f32 %v6758_v47  ;;  %v6756_v37 = vmul.f32 -1.442695, %v4344_v58 }
 0x87c   : > { %v4356_v3 = vpop.f32.mrf.mxu1 }
 0x87d   : > { %v6761_v36 = vmul.f32 -1.442695, %v4365_v22  ;;  %v4357_v7 = vadd.f32 %v4356_v3, %v4243_v28 }
 0x87e   : > { %v7390_v62 = vpop.f32.mrf.mxu1 }
 0x87f   : > { %8299 = vpow2.f32 %v6761_v36  ;;  %v6759_v38 = vmul.f32 -1.442695, %v4357_v7  ;;  %v4368_v46 = vadd.f32 %v7390_v62, %v7366_v42 }
 0x880   : > { %8301 = vpow2.f32 %v6757_v31  ;;  %v4359_v11 = vpop.f32.mrf.mxu1 }
 0x881   : > { %8303 = vpow2.f32 %v6759_v38  ;;  %v6762_v29 = vmul.f32 -1.442695, %v4368_v46  ;;  %v4360_v54 = vadd.f32 %v4359_v11, %v4246_v30 }
 0x882   : > { %8305 = vpow2.f32 %v6756_v37 }
 0x883   : > { %8307 = vpow2.f32 %v6762_v29  ;;  %v6760_v45 = vmul.f32 -1.442695, %v4360_v54 }
 0x884   : > { %8309 = vpow2.f32 %v6755_v19 }
 0x885   : > { %8311 = vpow2.f32 %v6760_v45 }
 0x886   : > { %8313 = vtanh.f32 %v10048_v18 }
 0x887   : > { %8315 = vtanh.f32 %v10042_v21 }
 0x888   : > { %v8298_v35 = vpop.eup %8297  ;;  %8317 = vtanh.f32 %v10046_v20 }
 0x889   : > { %8319 = vtanh.f32 %v10062_v4  ;;  %v4398_v13 = vadd.f32 1.0, %v8298_v35 }
 0x88a   : > { %8321 = vtanh.f32 %v10058_v59 }
 0x88b   : > { %8323 = vtanh.f32 %v10055_v33 }
 0x88c   : > { %v8300_v44 = vpop.eup %8299 }
 0x88d   : > { %v8302_v17 = vpop.eup %8301  ;;  %v4401_v25 = vadd.f32 1.0, %v8300_v44 }
 0x88e   : > { %v8304_v40 = vpop.eup %8303  ;;  %v4397_v21 = vadd.f32 1.0, %v8302_v17 }
 0x88f   : > { %v8306_v15 = vpop.eup %8305  ;;  %8325 = vrcp.f32 %v4401_v25  ;;  %v4399_v14 = vadd.f32 1.0, %v8304_v40 }
 0x890   : > { %v8308_v18 = vpop.eup %8307  ;;  %8327 = vtanh.f32 %v10060_v51  ;;  %v4396_v4 = vadd.f32 1.0, %v8306_v15 }
 0x891   : > { %v8310_v26 = vpop.eup %8309  ;;  %8329 = vrcp.f32 %v4399_v14  ;;  %v4402_v20 = vadd.f32 1.0, %v8308_v18 }
 0x892   : > { %v8312_v23 = vpop.eup %8311  ;;  %8331 = vrcp.f32 %v4398_v13  ;;  %v4395_v43 = vadd.f32 1.0, %v8310_v26  ;;  %v10744_v26 = vld [vmem:[#allocation62_spill] sm:$0xff] }
 0x893   : > { %8333 = vrcp.f32 %v4402_v20  ;;  %v4400_v59 = vadd.f32 1.0, %v8312_v23  ;;  %v8314_v33 = vpop.eup %8313  ;;  %v10745_v20 = vld [vmem:[#allocation64_spill] sm:$0xff]  ;;  %v10746_v23 = vld [vmem:[#allocation65_spill] sm:$0xff] }
 0x894   : > { %8335 = vrcp.f32 %v4397_v21  ;;  %v8316_v27 = vpop.eup %8315  ;;  %v4429_v62 = vsub.f32 %v8314_v33, %v9785_v5  ;;  %v10743_v21 = vld [vmem:[#allocation60_spill] sm:$0xff] }
 0x895   : > { %8337 = vrcp.f32 %v4400_v59  ;;  %v8318_v39 = vpop.eup %8317  ;;  %v4430_v7 = vsub.f32 %v8316_v27, %v9777_v0  ;;  %v10748_v59 = vld [vmem:[#allocation67_spill] sm:$0xff] }
 0x896   : > { %8339 = vtanh.f32 %v10044_v41  ;;  %v8320_v2 = vpop.eup %8319  ;;  %v4428_v54 = vsub.f32 %v8318_v39, %v9788_v6 }
 0x897   : > { %8341 = vrcp.f32 %v4396_v4  ;;  %v8322_v51 = vpop.eup %8321  ;;  %v4433_v57 = vsub.f32 %v8320_v2, %v9767_v55  ;;  %v10747_v4 = vld [vmem:[#allocation66_spill] sm:$0xff] }
 0x898   : > { %8343 = vrcp.f32 %v4395_v43  ;;  %v8324_v50 = vpop.eup %8323  ;;  %v4431_v42 = vsub.f32 %v8322_v51, %v9771_v32  ;;  %v10749_v43 = vld [vmem:[#allocation68_spill] sm:$0xff] }
 0x899   : > { %v4434_v60 = vsub.f32 %v8324_v50, %v9769_v56 }
 0x89c   : > { %v8326_v28 = vpop.eup %8325 }
 0x89d   : > { %v8328_v24 = vpop.eup %8327  ;;  %v4441_v22 = vmul.f32 %v8326_v28, %v4433_v57 }
 0x89e   : > { %v8330_v47 = vpop.eup %8329  ;;  %v4432_v3 = vsub.f32 %v8328_v24, %v9765_v53 }
 0x89f   : > { %v8332_v58 = vpop.eup %8331  ;;  %v4439_v36 = vmul.f32 %v8330_v47, %v4431_v42  ;;  %v10097_v46 = vadd.f32 %v4441_v22, %v9767_v55  ;;  %v10750_v47 = vld [vmem:[#allocation35_spill] sm:$0xff] }
 0x8a0   : > { %v8334_v31 = vpop.eup %8333  ;;  %v4438_v11 = vmul.f32 %v8332_v58, %v4430_v7 }
 0x8a1   : > { %v8336_v41 = vpop.eup %8335  ;;  %v4442_v49 = vmul.f32 %v8334_v31, %v4434_v60  ;;  %v10108_v35 = vadd.f32 %v4439_v36, %v9771_v32  ;;  %v10751_v31 = vld [vmem:[#allocation43_spill] sm:$0xff] }
 0x8a2   : > { %v8338_v37 = vpop.eup %8337  ;;  %v4437_v55 = vmul.f32 %v8336_v41, %v4429_v62  ;;  %v10119_v25 = vadd.f32 %v4438_v11, %v9777_v0 }
 0x8a3   : > { %v8340_v38 = vpop.eup %8339  ;;  %v10100_v30 = vadd.f32 %v4442_v49, %v9769_v56  ;;  %v4440_v19 = vmul.f32 %v8338_v37, %v4432_v3  ;;  %v10752_v3 = vld [vmem:[#allocation44_spill] sm:$0xff]  ;;  %v10753_v37 = vld [vmem:[#allocation45_spill] sm:$0xff] }
 0x8a4   : > { %v8342_v29 = vpop.eup %8341  ;;  %v4427_v40 = vsub.f32 %v8340_v38, %v9795_v8 }
 0x8a5   : > { %v10105_v45 = vpack.c.bf16 %v10100_v30, %v10097_v46  ;;  %v10111_v44 = vadd.f32 %v4440_v19, %v9765_v53  ;;  %v8344_v17 = vpop.eup %8343  ;;  %v4436_v13 = vmul.f32 %v8342_v29, %v4428_v54  ;;  %v10125_v53 = vadd.f32 %v4437_v55, %v9785_v5  ;;  %v10731_v5 = vld [vmem:[#allocation36_spill] sm:$0xff]  ;;  %v10754_v19 = vld [vmem:[#allocation46_spill] sm:$0xff]  ;;  %v10755_v54 = vld [vmem:[#allocation47_spill] sm:$0xff] }
 0x8a6   : > { %v4435_v32 = vmul.f32 %v8344_v17, %v4427_v40  ;;  %v10756_v40 = vld [vmem:[#allocation48_spill] sm:$0xff] }
 0x8a7   : > { %7391 = vmatprep.subr.bf16.mxu0 %v10105_v45  ;;  %v10116_v56 = vpack.c.bf16 %v10111_v44, %v10108_v35  ;;  %v10129_v15 = vpack.c.bf16 %v10119_v25, %v10125_v53  ;;  %v10132_v14 = vadd.f32 %v4436_v13, %v9788_v6  ;;  %v10732_v6 = vld [vmem:[#allocation37_spill] sm:$0xff] }
 0x8a8   : > { %7392 = vmatpush3.bf16.msra.mxu0 %v10105_v45  ;;  %v10137_v0 = vadd.f32 %v4435_v32, %v9795_v8  ;;  %v10733_v8 = vld [vmem:[#allocation50_spill] sm:$0xff] }
 0x8a9   : > { %7393 = vmatprep.subr.bf16.mxu0 %v10116_v56 }
 0x8aa   : > { %v10141_v18 = vpack.c.bf16 %v10132_v14, %v10137_v0 }
 0x8ac   : > { %7394 = vmatpush3.bf16.msra.mxu0 %v10116_v56 }
 0x8ad   : > { %7395 = vmatprep.subr.bf16.mxu0 %v10129_v15 }
 0x8b0   : > { %7396 = vmatpush3.bf16.msra.mxu0 %v10129_v15 }
 0x8b1   : > { %7397 = vmatprep.subr.bf16.mxu0 %v10141_v18 }
 0x8b4   : > { %7398 = vmatpush3.bf16.msra.mxu0 %v10141_v18 }
 0x8b5   : > { %7447 = vmatprep.subr.bf16.mxu0 %v9884_v34 }
 0x8b7   : > { %7400 = vmatmul.mubr.msk.bf16.vlgmr.msra.gmra.mxu0 %vm2475_vm0, %v9807_v9  ;;  %v10734_v9 = vld [vmem:[#allocation52_spill] sm:$0xff] }
 0x8b8   : > { %7403 = vmatprep.mubr.msk.bf16.mxu0 %vm2475_vm0, %v9811_v10  ;;  %7448 = vmatpush3.bf16.msra.mxu0 %v9884_v34  ;;  %v10735_v10 = vld [vmem:[#allocation38_spill] sm:$0xff]  ;;  %v10738_v34 = vld [vmem:[#allocation56_spill] sm:$0xff] }
 0x8b9   : > { %7449 = vmatprep.subr.bf16.mxu0 %v9906_v1 }
 0x8bc   : > { %7450 = vmatpush3.bf16.msra.mxu0 %v9906_v1  ;;  %v10739_v1 = vld [vmem:[#allocation40_spill] sm:$0xff] }
 0x8bd   : > { %7451 = vmatprep.subr.bf16.mxu0 %v9910_v48 }
 0x8bf   : > { %7404 = vmatmul.mubr.msk.bf16.gmra.mxu0 %vm2475_vm0, %v9823_v12  ;;  %v10736_v12 = vld [vmem:[#allocation39_spill] sm:$0xff] }
 0x8c0   : > { %7407 = vmatprep.mubr.msk.bf16.mxu0 %vm2475_vm0, %v9826_v16  ;;  %7452 = vmatpush3.bf16.msra.mxu0 %v9910_v48  ;;  %v10737_v16 = vld [vmem:[#allocation54_spill] sm:$0xff]  ;;  %v10740_v48 = vld [vmem:[#allocation41_spill] sm:$0xff] }
 0x8c1   : > { %7453 = vmatprep.subr.bf16.mxu0 %v9914_v52 }
 0x8c4   : > { %7454 = vmatpush3.bf16.msra.mxu0 %v9914_v52  ;;  %v10741_v52 = vld [vmem:[#allocation42_spill] sm:$0xff] }
 0x8c5   : > { %7455 = vmatprep.subr.bf16.mxu0 %v9919_v63 }
 0x8c7   : > { %7408 = vmatmul.mubr.msk.bf16.gmra.mxu0 %vm2475_vm0, %v10731_v5 }
 0x8c8   : > { %7411 = vmatprep.mubr.msk.bf16.mxu0 %vm2475_vm0, %v10732_v6  ;;  %7456 = vmatpush3.bf16.msra.mxu0 %v9919_v63  ;;  %v10742_v63 = vld [vmem:[#allocation58_spill] sm:$0xff] }
 0x8c9   : > { %7457 = vmatprep.subr.bf16.mxu0 %v10733_v8 }
 0x8cc   : > { %7458 = vmatpush3.bf16.msra.mxu0 %v10733_v8 }
 0x8cd   : > { %7459 = vmatprep.subr.bf16.mxu0 %v10734_v9 }
 0x8cf   : > { %7412 = vmatmul.mubr.msk.bf16.gmra.mxu0 %vm2475_vm0, %v10735_v10 }
 0x8d0   : > { %7415 = vmatprep.mubr.msk.bf16.mxu0 %vm2475_vm0, %v10736_v12  ;;  %7460 = vmatpush3.bf16.msra.mxu0 %v10734_v9  ;;  %v10757_v9 = vld [vmem:[#allocation49_spill] sm:$0xff] }
 0x8d1   : > { %7461 = vmatprep.subr.bf16.mxu0 %v10737_v16 }
 0x8d4   : > { %7462 = vmatpush3.bf16.msra.mxu0 %v10737_v16 }
 0x8d5   : > { %7495 = vmatprep.subr.bf16.mxu0 %v10738_v34 }
 0x8d7   : > { %7416 = vmatmul.mubr.msk.bf16.gmra.mxu0 %vm2475_vm0, %v10739_v1  ;;  %v10759_v1 = vld [vmem:[#allocation69_spill] sm:$0xff] }
 0x8d8   : > { %7419 = vmatprep.mubr.msk.bf16.mxu0 %vm2475_vm0, %v10740_v48 }
 0x8df   : > { %7420 = vmatmul.mubr.msk.bf16.gmra.mxu0 %vm2475_vm0, %v10741_v52 }
 0x8e0   : > { %7463 = vmatprep.mubr.bf16.mxu0 %v10141_v18 }
 0x8e7   : > { %7464 = vmatmul.mubr.bf16.vlgmr.msra.gmra.mxu0 %v10129_v15 }
 0x8e8   : > { %7467 = vmatprep.mubr.bf16.mxu0 %v10116_v56  ;;  %7496 = vmatpush3.bf16.msra.mxu0 %v10738_v34  ;;  %v10758_v34 = vld [vmem:[#allocation51_spill] sm:$0xff] }
 0x8e9   : > { %7497 = vmatprep.subr.bf16.mxu0 %v10742_v63 }
 0x8ec   : > { %7498 = vmatpush3.bf16.msra.mxu0 %v10742_v63 }
 0x8ed   : > { %7499 = vmatprep.subr.bf16.mxu0 %v10743_v21 }
 0x8ef   : > { %7468 = vmatmul.mubr.bf16.gmra.mxu0 %v10105_v45 }
 0x8f0   : > { %7500 = vmatpush3.bf16.msra.mxu0 %v10743_v21 }
 0x8f1   : > { %7501 = vmatprep.subr.bf16.mxu0 %v10744_v26 }
 0x8f4   : > { %7502 = vmatpush3.bf16.msra.mxu0 %v10744_v26  ;;  %v10760_v26 = vld [vmem:[#allocation53_spill] sm:$0xff] }
 0x8f5   : > { %7503 = vmatprep.subr.bf16.mxu0 %v10745_v20 }
 0x8f8   : > { %7504 = vmatpush3.bf16.msra.mxu0 %v10745_v20  ;;  %v10761_v20 = vld [vmem:[#allocation70_spill] sm:$0xff] }
 0x8f9   : > { %7505 = vmatprep.subr.bf16.mxu0 %v10746_v23 }
 0x8fc   : > { %7506 = vmatpush3.bf16.msra.mxu0 %v10746_v23  ;;  %v10762_v23 = vld [vmem:[#allocation55_spill] sm:$0xff] }
 0x8fd   : > { %7507 = vmatprep.subr.bf16.mxu0 %v10747_v4 }
 0x900   : > { %7508 = vmatpush3.bf16.msra.mxu0 %v10747_v4  ;;  %v10763_v4 = vld [vmem:[#allocation71_spill] sm:$0xff] }
 0x901   : > { %7509 = vmatprep.subr.bf16.mxu0 %v10748_v59 }
 0x904   : > { %7510 = vmatpush3.bf16.msra.mxu0 %v10748_v59  ;;  %v10764_v59 = vld [vmem:[#allocation57_spill] sm:$0xff] }
 0x905   : > { %7543 = vmatprep.subr.bf16.mxu0 %v10749_v43 }
 0x977   : > { %v7401_v33 = vpop.f32.mrf.mxu0 }
 0x979   : > { %v4489_v27 = vpop.f32.mrf.mxu0 }
 0x97b   : > { %v7402_v39 = vpop.f32.mrf.mxu0 }
 0x97c   : > { %v4585_v50 = vpack.c.bf16 %v7402_v39, %v7401_v33  ;;  %v10766_v33 = vld [vmem:[#allocation59_spill] sm:$0xff]  ;;  %v10769_v39 = vld [vmem:[#allocation74_spill] sm:$0xff] }
 0x97d   : > { %v4492_v2 = vpop.f32.mrf.mxu0 }
 0x97e   : > { %v4584_v51 = vpack.c.bf16 %v4492_v2, %v4489_v27  ;;  %v10768_v27 = vld [vmem:[#allocation61_spill] sm:$0xff]  ;;  %v10770_v2 = vld [vmem:[#allocation63_spill] sm:$0xff] }
 0x97f   : > { %v7405_v28 = vpop.f32.mrf.mxu0 }
 0x980   : > { %7439 = vmatprep.mubr.bf16.mxu1 %v4584_v51  ;;  %v10771_v51 = vld [vmem:[#allocation75_spill] sm:$0xff] }
 0x981   : > { %v4505_v24 = vpop.f32.mrf.mxu0  ;;  %7440 = vmatmul.mubr.bf16.vlgmr.msra.gmra.mxu1 %v4585_v50  ;;  %v10252_v50 = vld [vmem:[#allocation11 + $0x78] sm:$0xff]  }
 0x982   : > { %7472 = vmatpush3.bf16.msra.mxu1 %v9804_v61 }
 0x983   : > { %v7406_v57 = vpop.f32.mrf.mxu0  ;;  %7473 = vmatprep.subr.bf16.mxu1 %v10750_v47 }
 0x984   : > { %v4587_v22 = vpack.c.bf16 %v7406_v57, %v7405_v28  ;;  %v8442_v28 = vld [vmem:[%s9535_s3] sm:$0xff]  }
 0x985   : > { %v4508_v58 = vpop.f32.mrf.mxu0 }
 0x986   : > { %v4586_v60 = vpack.c.bf16 %v4508_v58, %v4505_v24  ;;  %7474 = vmatpush3.bf16.msra.mxu1 %v10750_v47 }
 0x987   : > { %v7409_v42 = vpop.f32.mrf.mxu0  ;;  %7475 = vmatprep.subr.bf16.mxu1 %v10751_v31 }
 0x988   : > { %7443 = vmatprep.mubr.bf16.mxu1 %v4586_v60 }
 0x989   : > { %v4521_v41 = vpop.f32.mrf.mxu0  ;;  %7444 = vmatmul.mubr.bf16.gmra.mxu1 %v4587_v22 }
 0x98a   : > { %7476 = vmatpush3.bf16.msra.mxu1 %v10751_v31 }
 0x98b   : > { %v7410_v49 = vpop.f32.mrf.mxu0  ;;  %7477 = vmatprep.subr.bf16.mxu1 %v10752_v3 }
 0x98c   : > { %v4719_v5 = vpack.c.bf16 %v7410_v49, %v7409_v42 }
 0x98d   : > { %v4524_v61 = vpop.f32.mrf.mxu0 }
 0x98e   : > { %v4718_v36 = vpack.c.bf16 %v4524_v61, %v4521_v41  ;;  %7478 = vmatpush3.bf16.msra.mxu1 %v10752_v3 }
 0x98f   : > { %v7413_v7 = vpop.f32.mrf.mxu0  ;;  %7479 = vmatprep.subr.bf16.mxu1 %v10753_v37 }
 0x990   : > { %7487 = vmatprep.mubr.bf16.mxu1 %v4718_v36 }
 0x991   : > { %v4537_v62 = vpop.f32.mrf.mxu0 }
 0x992   : > { %7480 = vmatpush3.bf16.msra.mxu1 %v10753_v37 }
 0x993   : > { %v7414_v38 = vpop.f32.mrf.mxu0  ;;  %7481 = vmatprep.subr.bf16.mxu1 %v10754_v19 }
 0x994   : > { %v4721_v63 = vpack.c.bf16 %v7414_v38, %v7413_v7 }
 0x995   : > { %v4540_v11 = vpop.f32.mrf.mxu0 }
 0x996   : > { %7482 = vmatpush3.bf16.msra.mxu1 %v10754_v19  ;;  %v4720_v10 = vpack.c.bf16 %v4540_v11, %v4537_v62 }
 0x997   : > { %v7417_v29 = vpop.f32.mrf.mxu0  ;;  %7483 = vmatprep.subr.bf16.mxu1 %v10755_v54 }
 0x999   : > { %v4553_v55 = vpop.f32.mrf.mxu0 }
 0x99a   : > { %7484 = vmatpush3.bf16.msra.mxu1 %v10755_v54 }
 0x99b   : > { %v7418_v17 = vpop.f32.mrf.mxu0  ;;  %7485 = vmatprep.subr.bf16.mxu1 %v10756_v40 }
 0x99c   : > { %v4796_v6 = vpack.c.bf16 %v7418_v17, %v7417_v29 }
 0x99d   : > { %v4556_v13 = vpop.f32.mrf.mxu0 }
 0x99e   : > { %v4795_v32 = vpack.c.bf16 %v4556_v13, %v4553_v55  ;;  %7486 = vmatpush3.bf16.msra.mxu1 %v10756_v40 }
 0x99f   : > { %v7421_v8 = vpop.f32.mrf.mxu0  ;;  %7519 = vmatprep.subr.bf16.mxu1 %v10757_v9 }
 0x9a0   : > { %7511 = vmatprep.mubr.bf16.mxu0 %v4795_v32 }
 0x9a1   : > { %7488 = vmatmul.mubr.bf16.vlgmr.msra.gmra.mxu1 %v4719_v5  ;;  %v4569_v12 = vpop.f32.mrf.mxu0  ;;  %7512 = vmatmul.mubr.bf16.vlgmr.msra.gmra.mxu0 %v4796_v6 }
 0x9a2   : > { %7520 = vmatpush3.bf16.msra.mxu1 %v10757_v9  ;;  %7491 = vmatprep.mubr.bf16.mxu1 %v4720_v10 }
 0x9a3   : > { %v7422_v16 = vpop.f32.mrf.mxu0  ;;  %7521 = vmatprep.subr.bf16.mxu1 %v10758_v34  ;;  %7544 = vmatpush3.bf16.msra.mxu0 %v10749_v43  ;;  %v10765_v43 = vld [vmem:[#allocation72_spill] sm:$0xff] }
 0x9a4   : > { %7545 = vmatprep.subr.bf16.mxu0 %v10759_v1  ;;  %v4798_v21 = vpack.c.bf16 %v7422_v16, %v7421_v8 }
 0x9a5   : > { %v4572_v48 = vpop.f32.mrf.mxu0 }
 0x9a6   : > { %v4797_v52 = vpack.c.bf16 %v4572_v48, %v4569_v12  ;;  %7522 = vmatpush3.bf16.msra.mxu1 %v10758_v34 }
 0x9a7   : > { %7523 = vmatprep.subr.bf16.mxu1 %v10760_v26  ;;  %7546 = vmatpush3.bf16.msra.mxu0 %v10759_v1  ;;  %v7465_v24 = vpop.f32.mrf.mxu0 }
 0x9a8   : > { %7515 = vmatprep.mubr.bf16.mxu0 %v4797_v52  ;;  %7547 = vmatprep.subr.bf16.mxu0 %v10761_v20 }
 0x9a9   : > { %7492 = vmatmul.mubr.bf16.gmra.mxu1 %v4721_v63  ;;  %7516 = vmatmul.mubr.bf16.gmra.mxu0 %v4798_v21  ;;  %v4687_v47 = vpop.f32.mrf.mxu0 }
 0x9aa   : > { %7524 = vmatpush3.bf16.msra.mxu1 %v10760_v26  ;;  %7535 = vmatprep.mubr.bf16.mxu1 %v10141_v18  ;;  %v10767_v18 = vld [vmem:[#allocation73_spill] sm:$0xff] }
 0x9ab   : > { %7525 = vmatprep.subr.bf16.mxu1 %v10762_v23  ;;  %7548 = vmatpush3.bf16.msra.mxu0 %v10761_v20  ;;  %v7466_v60 = vpop.f32.mrf.mxu0 }
 0x9ac   : > { %7549 = vmatprep.subr.bf16.mxu0 %v10763_v4 }
 0x9ad   : > { %v4690_v42 = vpop.f32.mrf.mxu0 }
 0x9ae   : > { %7526 = vmatpush3.bf16.msra.mxu1 %v10762_v23 }
 0x9af   : > { %7527 = vmatprep.subr.bf16.mxu1 %v10764_v59  ;;  %7550 = vmatpush3.bf16.msra.mxu0 %v10763_v4  ;;  %v7469_v41 = vpop.f32.mrf.mxu0 }
 0x9b0   : > { %7551 = vmatprep.subr.bf16.mxu0 %v10765_v43 }
 0x9b1   : > { %v4703_v3 = vpop.f32.mrf.mxu0 }
 0x9b2   : > { %7528 = vmatpush3.bf16.msra.mxu1 %v10764_v59 }
 0x9b3   : > { %7529 = vmatprep.subr.bf16.mxu1 %v10766_v33  ;;  %7552 = vmatpush3.bf16.msra.mxu0 %v10765_v43 }
 0x9b4   : > { %7553 = vmatprep.subr.bf16.mxu0 %v10767_v18 }
 0x9b6   : > { %7530 = vmatpush3.bf16.msra.mxu1 %v10766_v33 }
 0x9b7   : > { %7531 = vmatprep.subr.bf16.mxu1 %v10768_v27  ;;  %7554 = vmatpush3.bf16.msra.mxu0 %v10767_v18 }
 0x9b8   : > { %7555 = vmatprep.subr.bf16.mxu0 %v10769_v39 }
 0x9ba   : > { %7532 = vmatpush3.bf16.msra.mxu1 %v10768_v27 }
 0x9bb   : > { %7533 = vmatprep.subr.bf16.mxu1 %v10770_v2  ;;  %7556 = vmatpush3.bf16.msra.mxu0 %v10769_v39 }
 0x9bc   : > { %7557 = vmatprep.subr.bf16.mxu0 %v10771_v51 }
 0x9be   : > { %7534 = vmatpush3.bf16.msra.mxu1 %v10770_v2 }
 0x9bf   : > { %7558 = vmatpush3.bf16.msra.mxu0 %v10771_v51 }
 0x9c0   : > { %7599 = vmatprep.subr.bf16.mxu0 %v10252_v50 }
 0x9c1   : > { %7536 = vmatmul.mubr.bf16.vlgmr.msra.gmra.mxu1 %v10129_v15  ;;  %v7470_v15 = vpop.f32.mrf.mxu0 }
 0x9c2   : > { %7539 = vmatprep.mubr.bf16.mxu1 %v10116_v56 }
 0x9c3   : > { %v4706_v56 = vpop.f32.mrf.mxu0 }
 0x9c9   : > { %7540 = vmatmul.mubr.bf16.gmra.mxu1 %v10105_v45 }
 0x9ca   : > { %7575 = vmatprep.mubr.msk.bf16.mxu1 %vm2475_vm0, %v8442_v28 }
 0xa41   : > { %v7441_v57 = vpop.f32.mrf.mxu1 }
 0xa42   : > { %v4696_v29 = vadd.f32 %v7465_v24, %v7441_v57  ;;  %v8443_v24 = vld [vmem:[#allocation11 + $0x70] sm:$0xff]  }
 0xa43   : > { %v4622_v58 = vpop.f32.mrf.mxu1 }
 0xa44   : > { %v4688_v19 = vadd.f32 %v4687_v47, %v4622_v58 }
 0xa45   : > { %v7442_v22 = vpop.f32.mrf.mxu1 }
 0xa46   : > { %v4699_v11 = vadd.f32 %v7466_v60, %v7442_v22 }
 0xa47   : > { %v4625_v31 = vpop.f32.mrf.mxu1 }
 0xa48   : > { %v4691_v17 = vadd.f32 %v4690_v42, %v4625_v31  ;;  %v8444_v42 = vld [vmem:[#allocation11 + $0x68] sm:$0xff]   ;;  %v8446_v31 = vld [vmem:[#allocation11 + $0x58] sm:$0xff]  }
 0xa49   : > { %v7445_v49 = vpop.f32.mrf.mxu1 }
 0xa4a   : > { %v4712_v20 = vadd.f32 %v7469_v41, %v7445_v49  ;;  %v8447_v41 = vld [vmem:[#allocation11 + $0x50] sm:$0xff]   ;;  %v8448_v49 = vld [vmem:[#allocation11 + $0x48] sm:$0xff]  }
 0xa4b   : > { %v4638_v61 = vpop.f32.mrf.mxu1 }
 0xa4c   : > { %v4704_v63 = vadd.f32 %v4703_v3, %v4638_v61  ;;  %v8449_v3 = vld [vmem:[#allocation11 + $0x40] sm:$0xff]   ;;  %v10285_v61 = vld [vmem:[#allocation11 + $0xb8] sm:$0xff]  }
 0xa4d   : > { %v7446_v36 = vpop.f32.mrf.mxu1 }
 0xa4e   : > { %v4715_v21 = vadd.f32 %v7470_v15, %v7446_v36 }
 0xa4f   : > { %v4641_v7 = vpop.f32.mrf.mxu1 }
 0xa50   : > { %v4707_v43 = vadd.f32 %v4706_v56, %v4641_v7 }
 0xa61   : > { %v7489_v45 = vpop.f32.mrf.mxu1  ;;  %v7513_v37 = vpop.f32.mrf.mxu0 }
 0xa62   : > { %v4789_v32 = vadd.f32 %v7489_v45, %v4696_v29 }
 0xa63   : > { %v4756_v62 = vpop.f32.mrf.mxu1  ;;  %v4833_v38 = vpop.f32.mrf.mxu0 }
 0xa64   : > { %v4787_v40 = vadd.f32 %v4756_v62, %v4688_v19  ;;  %v10266_v1 = vadd.f32 %v7513_v37, %v4789_v32 }
 0xa65   : > { %v7490_v54 = vpop.f32.mrf.mxu1  ;;  %v7514_v55 = vpop.f32.mrf.mxu0 }
 0xa66   : > { %v4790_v13 = vadd.f32 %v7490_v54, %v4699_v11  ;;  %v10262_v16 = vadd.f32 %v4833_v38, %v4787_v40 }
 0xa67   : > { %v4759_v5 = vpop.f32.mrf.mxu1  ;;  %v4836_v6 = vpop.f32.mrf.mxu0 }
 0xa68   : > { %v4788_v8 = vadd.f32 %v4759_v5, %v4691_v17  ;;  %v10260_v9 = vadd.f32 %v7514_v55, %v4790_v13 }
 0xa69   : > { %v7493_v10 = vpop.f32.mrf.mxu1  ;;  %v7517_v12 = vpop.f32.mrf.mxu0 }
 0xa6a   : > { %v10264_v34 = vadd.f32 %v4836_v6, %v4788_v8  ;;  %v4873_v23 = vpack.c.bf16 %v10260_v9, %v10266_v1  ;;  %v4793_v27 = vadd.f32 %v7493_v10, %v4712_v20 }
 0xa6b   : > { %v4772_v48 = vpop.f32.mrf.mxu1  ;;  %v4849_v52 = vpop.f32.mrf.mxu0 }
 0xa6c   : > { %v4872_v26 = vpack.c.bf16 %v10264_v34, %v10262_v16  ;;  %v4791_v33 = vadd.f32 %v4772_v48, %v4704_v63  ;;  %v10279_v58 = vadd.f32 %v7517_v12, %v4793_v27 }
 0xa6d   : > { %v7494_v4 = vpop.f32.mrf.mxu1  ;;  %v7518_v59 = vpop.f32.mrf.mxu0 }
 0xa6e   : > { %v4794_v18 = vadd.f32 %v7494_v4, %v4715_v21  ;;  %7559 = vmatprep.mubr.bf16.mxu0 %v4872_v26  ;;  %v10275_v57 = vadd.f32 %v4849_v52, %v4791_v33 }
 0xa6f   : > { %v4775_v39 = vpop.f32.mrf.mxu1  ;;  %7560 = vmatmul.mubr.bf16.vlgmr.msra.gmra.mxu0 %v4873_v23  ;;  %v4852_v2 = vpop.f32.mrf.mxu0 }
 0xa70   : > { %v4792_v51 = vadd.f32 %v4775_v39, %v4707_v43  ;;  %7600 = vmatpush3.bf16.msra.mxu0 %v10252_v50  ;;  %v10273_v28 = vadd.f32 %v7518_v59, %v4794_v18  ;;  %v8445_v50 = vld [vmem:[#allocation11 + $0x60] sm:$0xff]  }
 0xa71   : > { %7601 = vmatprep.subr.bf16.mxu0 %v8443_v24 }
 0xa72   : > { %v10277_v47 = vadd.f32 %v4852_v2, %v4792_v51  ;;  %v4875_v22 = vpack.c.bf16 %v10273_v28, %v10279_v58 }
 0xa74   : > { %v4874_v60 = vpack.c.bf16 %v10277_v47, %v10275_v57  ;;  %7602 = vmatpush3.bf16.msra.mxu0 %v8443_v24 }
 0xa75   : > { %7603 = vmatprep.subr.bf16.mxu0 %v8444_v42 }
 0xa76   : > { %7563 = vmatprep.mubr.bf16.mxu0 %v4874_v60 }
 0xa77   : > { %7564 = vmatmul.mubr.bf16.gmra.mxu0 %v4875_v22 }
 0xa78   : > { %7604 = vmatpush3.bf16.msra.mxu0 %v8444_v42 }
 0xa79   : > { %7605 = vmatprep.subr.bf16.mxu0 %v8445_v50 }
 0xa7c   : > { %7606 = vmatpush3.bf16.msra.mxu0 %v8445_v50 }
 0xa7d   : > { %7607 = vmatprep.subr.bf16.mxu0 %v8446_v31 }
 0xa80   : > { %7608 = vmatpush3.bf16.msra.mxu0 %v8446_v31 }
 0xa81   : > { %7609 = vmatprep.subr.bf16.mxu0 %v8447_v41  ;;  %v7537_v15 = vpop.f32.mrf.mxu1 }
 0xa83   : > { %v4910_v36 = vpop.f32.mrf.mxu1 }
 0xa84   : > { %7610 = vmatpush3.bf16.msra.mxu0 %v8447_v41 }
 0xa85   : > { %7611 = vmatprep.subr.bf16.mxu0 %v8448_v49  ;;  %v7538_v56 = vpop.f32.mrf.mxu1 }
 0xa87   : > { %v4913_v7 = vpop.f32.mrf.mxu1 }
 0xa88   : > { %7612 = vmatpush3.bf16.msra.mxu0 %v8448_v49 }
 0xa89   : > { %7613 = vmatprep.subr.bf16.mxu0 %v8449_v3  ;;  %v7541_v37 = vpop.f32.mrf.mxu1 }
 0xa8b   : > { %v4926_v11 = vpop.f32.mrf.mxu1 }
 0xa8c   : > { %7614 = vmatpush3.bf16.msra.mxu0 %v8449_v3 }
 0xa8d   : > { %7647 = vmatprep.subr.bf16.mxu0 %v10285_v61  ;;  %v7542_v32 = vpop.f32.mrf.mxu1 }
 0xa8f   : > { %v4929_v26 = vpop.f32.mrf.mxu1 }
 0xb2f   : > { %v7561_v45 = vpop.f32.mrf.mxu0 }
 0xb30   : > { %v4984_v29 = vadd.f32 %v7561_v45, %v7537_v15 }
 0xb31   : > { %v4975_v62 = vpop.f32.mrf.mxu0 }
 0xb32   : > { %v6777_v5 = vmul.f32 -1.442695, %v4984_v29  ;;  %v4976_v6 = vadd.f32 %v4975_v62, %v4910_v36 }
 0xb33   : > { %v7562_v38 = vpop.f32.mrf.mxu0 }
 0xb34   : > { %v4987_v19 = vadd.f32 %v7562_v38, %v7538_v56  ;;  %v6775_v20 = vmul.f32 -1.442695, %v4976_v6 }
 0xb35   : > { %v4978_v54 = vpop.f32.mrf.mxu0 }
 0xb36   : > { %v6778_v55 = vmul.f32 -1.442695, %v4987_v19  ;;  %v4979_v17 = vadd.f32 %v4978_v54, %v4913_v7 }
 0xb37   : > { %v7565_v40 = vpop.f32.mrf.mxu0 }
 0xb38   : > { %v5000_v13 = vadd.f32 %v7565_v40, %v7541_v37  ;;  %8345 = vpow2.f32 %v6778_v55  ;;  %v6776_v48 = vmul.f32 -1.442695, %v4979_v17 }
 0xb39   : > { %v4991_v8 = vpop.f32.mrf.mxu0 }
 0xb3a   : > { %v6781_v10 = vmul.f32 -1.442695, %v5000_v13  ;;  %v4992_v12 = vadd.f32 %v4991_v8, %v4926_v11 }
 0xb3b   : > { %v7566_v52 = vpop.f32.mrf.mxu0 }
 0xb3c   : > { %8347 = vpow2.f32 %v6781_v10  ;;  %v6779_v63 = vmul.f32 -1.442695, %v4992_v12  ;;  %v5003_v21 = vadd.f32 %v7566_v52, %v7542_v32 }
 0xb3d   : > { %8349 = vpow2.f32 %v6777_v5  ;;  %v4994_v23 = vpop.f32.mrf.mxu0 }
 0xb3e   : > { %8351 = vpow2.f32 %v6779_v63  ;;  %v6782_v4 = vmul.f32 -1.442695, %v5003_v21  ;;  %v4995_v59 = vadd.f32 %v4994_v23, %v4929_v26 }
 0xb3f   : > { %8353 = vpow2.f32 %v6776_v48 }
 0xb40   : > { %8355 = vpow2.f32 %v6782_v4  ;;  %v6780_v43 = vmul.f32 -1.442695, %v4995_v59 }
 0xb41   : > { %8357 = vpow2.f32 %v6775_v20 }
 0xb42   : > { %8359 = vpow2.f32 %v6780_v43 }
 0xb43   : > { %8361 = vtanh.f32 %v10266_v1 }
 0xb44   : > { %8363 = vtanh.f32 %v10260_v9 }
 0xb45   : > { %v8346_v33 = vpop.eup %8345  ;;  %8365 = vtanh.f32 %v10264_v34 }
 0xb46   : > { %8367 = vtanh.f32 %v10279_v58  ;;  %v5033_v51 = vadd.f32 1.0, %v8346_v33  ;;  %v8453_v33 = vld [vmem:[%s9535_s3 + $0x10] sm:$0xff]  }
 0xb47   : > { %8369 = vtanh.f32 %v10275_v57 }
 0xb48   : > { %8371 = vtanh.f32 %v10273_v28 }
 0xb49   : > { %v8348_v18 = vpop.eup %8347 }
 0xb4a   : > { %v8350_v27 = vpop.eup %8349  ;;  %v5036_v39 = vadd.f32 1.0, %v8348_v18  ;;  %v8455_v18 = vld [vmem:[#allocation11 + $0x28] sm:$0xff]  }
 0xb4b   : > { %v8352_v2 = vpop.eup %8351  ;;  %v5032_v9 = vadd.f32 1.0, %v8350_v27  ;;  %v8456_v27 = vld [vmem:[%s9535_s3 + $0x18] sm:$0xff]  }
 0xb4c   : > { %v8354_v24 = vpop.eup %8353  ;;  %8373 = vrcp.f32 %v5036_v39  ;;  %v5034_v60 = vadd.f32 1.0, %v8352_v2  ;;  %v8457_v39 = vld [vmem:[%s9535_s3 + $0x20] sm:$0xff]  }
 0xb4d   : > { %v8356_v1 = vpop.eup %8355  ;;  %8375 = vtanh.f32 %v10277_v47  ;;  %v5031_v58 = vadd.f32 1.0, %v8354_v24  ;;  %v8458_v2 = vld [vmem:[#allocation11 + $0x20] sm:$0xff]  }
 0xb4e   : > { %v8358_v22 = vpop.eup %8357  ;;  %8377 = vrcp.f32 %v5034_v60  ;;  %v5037_v34 = vadd.f32 1.0, %v8356_v1  ;;  %v8460_v24 = vld [vmem:[%s9535_s3 + $0x28] sm:$0xff]   ;;  %v8461_v60 = vld [vmem:[%s9535_s3 + $0x30] sm:$0xff]  }
 0xb4f   : > { %v8360_v42 = vpop.eup %8359  ;;  %8379 = vrcp.f32 %v5033_v51  ;;  %v5030_v50 = vadd.f32 1.0, %v8358_v22  ;;  %v8459_v51 = vld [vmem:[#allocation11 + $0x18] sm:$0xff]   ;;  %v8462_v1 = vld [vmem:[#allocation11 + $0x10] sm:$0xff]  }
 0xb50   : > { %8381 = vrcp.f32 %v5037_v34  ;;  %v5035_v57 = vadd.f32 1.0, %v8360_v42  ;;  %v8362_v28 = vpop.eup %8361  ;;  %v8464_v22 = vld [vmem:[%s9535_s3 + $0x38] sm:$0xff]   ;;  %v8465_v34 = vld [vmem:[%s9535_s3 + $0x40] sm:$0xff]  }
 0xb51   : > { %8383 = vrcp.f32 %v5032_v9  ;;  %v8364_v31 = vpop.eup %8363  ;;  %v5064_v40 = vsub.f32 %v8362_v28, %v10125_v53  ;;  %v8463_v9 = vld [vmem:[#allocation11 + $0x8] sm:$0xff]   ;;  %v8466_v42 = vld [vmem:[#allocation11] sm:$0xff]   ;;  %v8470_v28 = vld [vmem:[%s9535_s3 + $0x58] sm:$0xff]  }
 0xb52   : > { %8385 = vrcp.f32 %v5035_v57  ;;  %v8366_v41 = vpop.eup %8365  ;;  %v5065_v55 = vsub.f32 %v8364_v31, %v10119_v25  ;;  %v8468_v57 = vld [vmem:[%s9535_s3 + $0x48] sm:$0xff]   ;;  %v8471_v31 = vld [vmem:[#allocation11 + $0xf0] sm:$0xff]  }
 0xb53   : > { %8387 = vtanh.f32 %v10262_v16  ;;  %v8368_v49 = vpop.eup %8367  ;;  %v5063_v12 = vsub.f32 %v8366_v41, %v10132_v14  ;;  %v8472_v41 = vld [vmem:[#allocation11 + $0xe8] sm:$0xff]  }
 0xb54   : > { %8389 = vrcp.f32 %v5031_v58  ;;  %v8370_v47 = vpop.eup %8369  ;;  %v5068_v56 = vsub.f32 %v8368_v49, %v10097_v46  ;;  %v8467_v58 = vld [vmem:[#allocation11 + $0xf8] sm:$0xff]   ;;  %v8473_v49 = vld [vmem:[#allocation11 + $0xe0] sm:$0xff]  }
 0xb55   : > { %8391 = vrcp.f32 %v5030_v50  ;;  %v8372_v3 = vpop.eup %8371  ;;  %v5066_v38 = vsub.f32 %v8370_v47, %v10108_v35  ;;  %v8469_v50 = vld [vmem:[%s9535_s3 + $0x50] sm:$0xff]   ;;  %v8474_v47 = vld [vmem:[#allocation11 + $0xd8] sm:$0xff]  }
 0xb56   : > { %v5069_v37 = vsub.f32 %v8372_v3, %v10100_v30  ;;  %v8475_v3 = vld [vmem:[#allocation11 + $0xd0] sm:$0xff]  }
 0xb59   : > { %v8374_v15 = vpop.eup %8373 }
 0xb5a   : > { %v8376_v36 = vpop.eup %8375  ;;  %v5076_v62 = vmul.f32 %v8374_v15, %v5068_v56  ;;  %v8476_v15 = vld [vmem:[#allocation11 + $0xc8] sm:$0xff]   ;;  %v10378_v56 = vld [vmem:[#allocation12 + $0x38] sm:$0xff]  }
 0xb5b   : > { %v8378_v7 = vpop.eup %8377  ;;  %v5067_v29 = vsub.f32 %v8376_v36, %v10111_v44  ;;  %v8477_v36 = vld [vmem:[#allocation11 + $0xc0] sm:$0xff]  }
 0xb5c   : > { %v8380_v45 = vpop.eup %8379  ;;  %v5074_v54 = vmul.f32 %v8378_v7, %v5066_v38  ;;  %v10303_v32 = vadd.f32 %v5076_v62, %v10097_v46 }
 0xb5d   : > { %v8382_v19 = vpop.eup %8381  ;;  %v5073_v8 = vmul.f32 %v8380_v45, %v5065_v55 }
 0xb5e   : > { %v8384_v16 = vpop.eup %8383  ;;  %v5077_v11 = vmul.f32 %v8382_v19, %v5069_v37  ;;  %v10314_v52 = vadd.f32 %v5074_v54, %v10108_v35  ;;  %v8479_v54 = vld [vmem:[#allocation11 + $0xb0] sm:$0xff]  }
 0xb5f   : > { %v8386_v17 = vpop.eup %8385  ;;  %v5072_v46 = vmul.f32 %v8384_v16, %v5064_v40  ;;  %v10325_v26 = vadd.f32 %v5073_v8, %v10119_v25 }
 0xb60   : > { %v8388_v13 = vpop.eup %8387  ;;  %v10306_v5 = vadd.f32 %v5077_v11, %v10100_v30  ;;  %v5075_v6 = vmul.f32 %v8386_v17, %v5067_v29 }
 0xb61   : > { %v8390_v10 = vpop.eup %8389  ;;  %v5062_v20 = vsub.f32 %v8388_v13, %v10137_v0  ;;  %v10331_v35 = vadd.f32 %v5072_v46, %v10125_v53  ;;  %v8451_v53 = vld [vmem:[#allocation11 + $0x38] sm:$0xff]  }
 0xb62   : > { %v10311_v48 = vpack.c.bf16 %v10306_v5, %v10303_v32  ;;  %v10317_v63 = vadd.f32 %v5075_v6, %v10111_v44  ;;  %v8392_v21 = vpop.eup %8391  ;;  %v5071_v23 = vmul.f32 %v8390_v10, %v5063_v12  ;;  %v8480_v6 = vld [vmem:[#allocation11 + $0xa8] sm:$0xff]   ;;  %v8481_v12 = vld [vmem:[#allocation11 + $0xa0] sm:$0xff]  }
 0xb63   : > { %v5070_v44 = vmul.f32 %v8392_v21, %v5062_v20  ;;  %v10335_v4 = vpack.c.bf16 %v10325_v26, %v10331_v35  ;;  %v8482_v20 = vld [vmem:[#allocation11 + $0x98] sm:$0xff]  }
 0xb64   : > { %7567 = vmatprep.subr.bf16.mxu1 %v10311_v48  ;;  %v10322_v30 = vpack.c.bf16 %v10317_v63, %v10314_v52  ;;  %v10338_v25 = vadd.f32 %v5071_v23, %v10132_v14  ;;  %v8452_v14 = vld [vmem:[%s9535_s3 + $0x8] sm:$0xff]   ;;  %s6191_s3 = scalar_lea.sflag [#allocation5], %s904_s9 }
 0xb65   : > { %7568 = vmatpush3.bf16.msra.mxu1 %v10311_v48  ;;  %v10343_v59 = vadd.f32 %v5070_v44, %v10137_v0  ;;  %v8454_v0 = vld [vmem:[#allocation11 + $0x30] sm:$0xff]  }
 0xb66   : > { %7569 = vmatprep.subr.bf16.mxu1 %v10322_v30 }
 0xb67   : > { %v10347_v43 = vpack.c.bf16 %v10338_v25, %v10343_v59 }
 0xb69   : > { %7570 = vmatpush3.bf16.msra.mxu1 %v10322_v30 }
 0xb6a   : > { %7571 = vmatprep.subr.bf16.mxu1 %v10335_v4 }
 0xb6d   : > { %7572 = vmatpush3.bf16.msra.mxu1 %v10335_v4 }
 0xb6e   : > { %7573 = vmatprep.subr.bf16.mxu1 %v10347_v43 }
 0xb71   : > { %7574 = vmatpush3.bf16.msra.mxu1 %v10347_v43 }
 0xb72   : > { %7623 = vmatprep.subr.bf16.mxu1 %v8451_v53 }
 0xb74   : > { %7576 = vmatmul.mubr.msk.bf16.vlgmr.msra.gmra.mxu1 %vm2475_vm0, %v8452_v14 }
 0xb75   : > { %7579 = vmatprep.mubr.msk.bf16.mxu1 %vm2475_vm0, %v8453_v33  ;;  %7624 = vmatpush3.bf16.msra.mxu1 %v8451_v53  ;;  %v8483_v53 = vld [vmem:[#allocation11 + $0x90] sm:$0xff]  }
 0xb76   : > { %7625 = vmatprep.subr.bf16.mxu1 %v8454_v0 }
 0xb79   : > { %7626 = vmatpush3.bf16.msra.mxu1 %v8454_v0  ;;  %v8484_v0 = vld [vmem:[#allocation11 + $0x88] sm:$0xff]  }
 0xb7a   : > { %7627 = vmatprep.subr.bf16.mxu1 %v8455_v18 }
 0xb7c   : > { %7580 = vmatmul.mubr.msk.bf16.gmra.mxu1 %vm2475_vm0, %v8456_v27 }
 0xb7d   : > { %7583 = vmatprep.mubr.msk.bf16.mxu1 %vm2475_vm0, %v8457_v39  ;;  %7628 = vmatpush3.bf16.msra.mxu1 %v8455_v18  ;;  %v8485_v39 = vld [vmem:[#allocation11 + $0x80] sm:$0xff]  }
 0xb7e   : > { %7629 = vmatprep.subr.bf16.mxu1 %v8458_v2 }
 0xb81   : > { %7630 = vmatpush3.bf16.msra.mxu1 %v8458_v2 }
 0xb82   : > { %7631 = vmatprep.subr.bf16.mxu1 %v8459_v51 }
 0xb84   : > { %7584 = vmatmul.mubr.msk.bf16.gmra.mxu1 %vm2475_vm0, %v8460_v24 }
 0xb85   : > { %7587 = vmatprep.mubr.msk.bf16.mxu1 %vm2475_vm0, %v8461_v60  ;;  %7632 = vmatpush3.bf16.msra.mxu1 %v8459_v51 }
 0xb86   : > { %7633 = vmatprep.subr.bf16.mxu1 %v8462_v1 }
 0xb89   : > { %7634 = vmatpush3.bf16.msra.mxu1 %v8462_v1 }
 0xb8a   : > { %7635 = vmatprep.subr.bf16.mxu1 %v8463_v9 }
 0xb8c   : > { %7588 = vmatmul.mubr.msk.bf16.gmra.mxu1 %vm2475_vm0, %v8464_v22 }
 0xb8d   : > { %7591 = vmatprep.mubr.msk.bf16.mxu1 %vm2475_vm0, %v8465_v34  ;;  %7636 = vmatpush3.bf16.msra.mxu1 %v8463_v9  ;;  %v8486_v9 = vld [vmem:[#allocation14 + $0x38] sm:$0xff]  }
 0xb8e   : > { %7637 = vmatprep.subr.bf16.mxu1 %v8466_v42 }
 0xb91   : > { %7638 = vmatpush3.bf16.msra.mxu1 %v8466_v42 }
 0xb92   : > { %7671 = vmatprep.subr.bf16.mxu1 %v8467_v58 }
 0xb94   : > { %7592 = vmatmul.mubr.msk.bf16.gmra.mxu1 %vm2475_vm0, %v8468_v57  ;;  %v8488_v57 = vld [vmem:[#allocation12 + $0x30] sm:$0xff]  }
 0xb95   : > { %7595 = vmatprep.mubr.msk.bf16.mxu1 %vm2475_vm0, %v8469_v50 }
 0xb9c   : > { %7596 = vmatmul.mubr.msk.bf16.gmra.mxu1 %vm2475_vm0, %v8470_v28 }
 0xb9d   : > { %7639 = vmatprep.mubr.bf16.mxu1 %v10347_v43 }
 0xba4   : > { %7640 = vmatmul.mubr.bf16.vlgmr.msra.gmra.mxu1 %v10335_v4 }
 0xba5   : > { %7643 = vmatprep.mubr.bf16.mxu1 %v10322_v30  ;;  %7672 = vmatpush3.bf16.msra.mxu1 %v8467_v58  ;;  %v8487_v58 = vld [vmem:[#allocation14 + $0x30] sm:$0xff]  }
 0xba6   : > { %7673 = vmatprep.subr.bf16.mxu1 %v8471_v31 }
 0xba9   : > { %7674 = vmatpush3.bf16.msra.mxu1 %v8471_v31 }
 0xbaa   : > { %7675 = vmatprep.subr.bf16.mxu1 %v8472_v41 }
 0xbac   : > { %7644 = vmatmul.mubr.bf16.gmra.mxu1 %v10311_v48 }
 0xbad   : > { %7676 = vmatpush3.bf16.msra.mxu1 %v8472_v41 }
 0xbae   : > { %7677 = vmatprep.subr.bf16.mxu1 %v8473_v49 }
 0xbb1   : > { %7678 = vmatpush3.bf16.msra.mxu1 %v8473_v49  ;;  %v8489_v49 = vld [vmem:[#allocation14 + $0x28] sm:$0xff]  }
 0xbb2   : > { %7679 = vmatprep.subr.bf16.mxu1 %v8474_v47 }
 0xbb5   : > { %7680 = vmatpush3.bf16.msra.mxu1 %v8474_v47  ;;  %v8490_v47 = vld [vmem:[#allocation12 + $0x28] sm:$0xff]  }
 0xbb6   : > { %7681 = vmatprep.subr.bf16.mxu1 %v8475_v3 }
 0xbb9   : > { %7682 = vmatpush3.bf16.msra.mxu1 %v8475_v3  ;;  %v8491_v3 = vld [vmem:[#allocation14 + $0x20] sm:$0xff]  }
 0xbba   : > { %7683 = vmatprep.subr.bf16.mxu1 %v8476_v15 }
 0xbbd   : > { %7684 = vmatpush3.bf16.msra.mxu1 %v8476_v15  ;;  %v8492_v15 = vld [vmem:[#allocation12 + $0x20] sm:$0xff]  }
 0xbbe   : > { %7685 = vmatprep.subr.bf16.mxu1 %v8477_v36 }
 0xbc1   : > { %7686 = vmatpush3.bf16.msra.mxu1 %v8477_v36  ;;  %v8493_v36 = vld [vmem:[#allocation14 + $0x18] sm:$0xff]  }
 0xbc2   : > { %7719 = vmatprep.subr.bf16.mxu1 %v10378_v56 }
 0xc34   : > { %v7577_v7 = vpop.f32.mrf.mxu1 }
 0xc36   : > { %v5124_v45 = vpop.f32.mrf.mxu1 }
 0xc38   : > { %v7578_v37 = vpop.f32.mrf.mxu1 }
 0xc39   : > { %v5220_v19 = vpack.c.bf16 %v7578_v37, %v7577_v7  ;;  %v8495_v7 = vld [vmem:[#allocation14 + $0x10] sm:$0xff]   ;;  %v8497_v37 = vld [vmem:[#allocation14 + $0x8] sm:$0xff]  }
 0xc3a   : > { %v5127_v62 = vpop.f32.mrf.mxu1 }
 0xc3b   : > { %v5219_v38 = vpack.c.bf16 %v5127_v62, %v5124_v45  ;;  %v8496_v45 = vld [vmem:[#allocation12 + $0x10] sm:$0xff]   ;;  %v8499_v62 = vld [vmem:[#allocation14] sm:$0xff]  }
 0xc3c   : > { %v7581_v16 = vpop.f32.mrf.mxu1 }
 0xc3d   : > { %7615 = vmatprep.mubr.bf16.mxu0 %v5219_v38  ;;  %v8500_v38 = vld [vmem:[#allocation12] sm:$0xff]  }
 0xc3e   : > { %v5140_v11 = vpop.f32.mrf.mxu1  ;;  %7616 = vmatmul.mubr.bf16.vlgmr.msra.gmra.mxu0 %v5220_v19  ;;  %v8225_v19 = vld [vmem:[#allocation15 + $0x38] sm:$0xff]  }
 0xc3f   : > { %7648 = vmatpush3.bf16.msra.mxu0 %v10285_v61 }
 0xc40   : > { %v7582_v29 = vpop.f32.mrf.mxu1  ;;  %7649 = vmatprep.subr.bf16.mxu0 %v8479_v54 }
 0xc41   : > { %v5222_v40 = vpack.c.bf16 %v7582_v29, %v7581_v16  ;;  %v8866_v16 = vmov 0.0   ;;  %v8227_v29 = vld [vmem:[#allocation15 + $0x28] sm:$0xff]  }
 0xc42   : > { %v5143_v55 = vpop.f32.mrf.mxu1 }
 0xc43   : > { %v5221_v17 = vpack.c.bf16 %v5143_v55, %v5140_v11  ;;  %7650 = vmatpush3.bf16.msra.mxu0 %v8479_v54  ;;  %v8226_v11 = vld [vmem:[#allocation15 + $0x30] sm:$0xff]   ;;  %v8228_v54 = vld [vmem:[#allocation15 + $0x20] sm:$0xff]   ;;  %v8231_v55 = vld [vmem:[#allocation15 + $0x8] sm:$0xff]  }
 0xc44   : > { %v7585_v13 = vpop.f32.mrf.mxu1  ;;  %7651 = vmatprep.subr.bf16.mxu0 %v8480_v6 }
 0xc45   : > { %7619 = vmatprep.mubr.bf16.mxu0 %v5221_v17  ;;  %v10772_v17 = vld [vmem:[#allocation34_spill] sm:$0xff] }
 0xc46   : > { %v5156_v8 = vpop.f32.mrf.mxu1  ;;  %7620 = vmatmul.mubr.bf16.gmra.mxu0 %v5222_v40 }
 0xc47   : > { %7652 = vmatpush3.bf16.msra.mxu0 %v8480_v6 }
 0xc48   : > { %v7586_v10 = vpop.f32.mrf.mxu1  ;;  %7653 = vmatprep.subr.bf16.mxu0 %v8481_v12 }
 0xc49   : > { %v5354_v24 = vpack.c.bf16 %v7586_v10, %v7585_v13 }
 0xc4a   : > { %v5159_v46 = vpop.f32.mrf.mxu1 }
 0xc4b   : > { %v5353_v21 = vpack.c.bf16 %v5159_v46, %v5156_v8  ;;  %7654 = vmatpush3.bf16.msra.mxu0 %v8481_v12 }
 0xc4c   : > { %v7589_v61 = vpop.f32.mrf.mxu1  ;;  %7655 = vmatprep.subr.bf16.mxu0 %v8482_v20 }
 0xc4d   : > { %7663 = vmatprep.mubr.bf16.mxu0 %v5353_v21 }
 0xc4e   : > { %v5172_v23 = vpop.f32.mrf.mxu1 }
 0xc4f   : > { %7656 = vmatpush3.bf16.msra.mxu0 %v8482_v20 }
 0xc50   : > { %v7590_v44 = vpop.f32.mrf.mxu1  ;;  %7657 = vmatprep.subr.bf16.mxu0 %v8483_v53 }
 0xc51   : > { %v5356_v31 = vpack.c.bf16 %v7590_v44, %v7589_v61 }
 0xc52   : > { %v5175_v14 = vpop.f32.mrf.mxu1 }
 0xc53   : > { %7658 = vmatpush3.bf16.msra.mxu0 %v8483_v53  ;;  %v5355_v22 = vpack.c.bf16 %v5175_v14, %v5172_v23 }
 0xc54   : > { %v7593_v33 = vpop.f32.mrf.mxu1  ;;  %7659 = vmatprep.subr.bf16.mxu0 %v8484_v0 }
 0xc56   : > { %v5188_v18 = vpop.f32.mrf.mxu1 }
 0xc57   : > { %7660 = vmatpush3.bf16.msra.mxu0 %v8484_v0 }
 0xc58   : > { %v7594_v27 = vpop.f32.mrf.mxu1  ;;  %7661 = vmatprep.subr.bf16.mxu0 %v8485_v39 }
 0xc59   : > { %v5431_v60 = vpack.c.bf16 %v7594_v27, %v7593_v33 }
 0xc5a   : > { %v5191_v2 = vpop.f32.mrf.mxu1 }
 0xc5b   : > { %v5430_v51 = vpack.c.bf16 %v5191_v2, %v5188_v18  ;;  %7662 = vmatpush3.bf16.msra.mxu0 %v8485_v39 }
 0xc5c   : > { %v7597_v1 = vpop.f32.mrf.mxu1  ;;  %7695 = vmatprep.subr.bf16.mxu0 %v8486_v9 }
 0xc5d   : > { %7687 = vmatprep.mubr.bf16.mxu1 %v5430_v51 }
 0xc5e   : > { %7664 = vmatmul.mubr.bf16.vlgmr.msra.gmra.mxu0 %v5354_v24  ;;  %v5204_v34 = vpop.f32.mrf.mxu1  ;;  %7688 = vmatmul.mubr.bf16.vlgmr.msra.gmra.mxu1 %v5431_v60 }
 0xc5f   : > { %7696 = vmatpush3.bf16.msra.mxu0 %v8486_v9  ;;  %7667 = vmatprep.mubr.bf16.mxu0 %v5355_v22 }
 0xc60   : > { %v7598_v42 = vpop.f32.mrf.mxu1  ;;  %7697 = vmatprep.subr.bf16.mxu0 %v8487_v58  ;;  %7720 = vmatpush3.bf16.msra.mxu1 %v10378_v56  ;;  %v8494_v56 = vld [vmem:[#allocation12 + $0x18] sm:$0xff]  }
 0xc61   : > { %7721 = vmatprep.subr.bf16.mxu1 %v8488_v57  ;;  %v5433_v41 = vpack.c.bf16 %v7598_v42, %v7597_v1 }
 0xc62   : > { %v5207_v50 = vpop.f32.mrf.mxu1 }
 0xc63   : > { %v5432_v28 = vpack.c.bf16 %v5207_v50, %v5204_v34  ;;  %7698 = vmatpush3.bf16.msra.mxu0 %v8487_v58 }
 0xc64   : > { %7699 = vmatprep.subr.bf16.mxu0 %v8489_v49  ;;  %7722 = vmatpush3.bf16.msra.mxu1 %v8488_v57  ;;  %v7641_v40 = vpop.f32.mrf.mxu1 }
 0xc65   : > { %7691 = vmatprep.mubr.bf16.mxu1 %v5432_v28  ;;  %7723 = vmatprep.subr.bf16.mxu1 %v8490_v47 }
 0xc66   : > { %7668 = vmatmul.mubr.bf16.gmra.mxu0 %v5356_v31  ;;  %7692 = vmatmul.mubr.bf16.gmra.mxu1 %v5433_v41  ;;  %v5322_v6 = vpop.f32.mrf.mxu1 }
 0xc67   : > { %7700 = vmatpush3.bf16.msra.mxu0 %v8489_v49  ;;  %7711 = vmatprep.mubr.bf16.mxu0 %v10347_v43  ;;  %v8498_v43 = vld [vmem:[#allocation12 + $0x8] sm:$0xff]  }
 0xc68   : > { %7701 = vmatprep.subr.bf16.mxu0 %v8491_v3  ;;  %7724 = vmatpush3.bf16.msra.mxu1 %v8490_v47  ;;  %v7642_v10 = vpop.f32.mrf.mxu1 }
 0xc69   : > { %7725 = vmatprep.subr.bf16.mxu1 %v8492_v15 }
 0xc6a   : > { %v5325_v46 = vpop.f32.mrf.mxu1 }
 0xc6b   : > { %7702 = vmatpush3.bf16.msra.mxu0 %v8491_v3 }
 0xc6c   : > { %7703 = vmatprep.subr.bf16.mxu0 %v8493_v36  ;;  %7726 = vmatpush3.bf16.msra.mxu1 %v8492_v15  ;;  %v7645_v61 = vpop.f32.mrf.mxu1 }
 0xc6d   : > { %7727 = vmatprep.subr.bf16.mxu1 %v8494_v56 }
 0xc6e   : > { %v5338_v23 = vpop.f32.mrf.mxu1 }
 0xc6f   : > { %7704 = vmatpush3.bf16.msra.mxu0 %v8493_v36 }
 0xc70   : > { %7705 = vmatprep.subr.bf16.mxu0 %v8495_v7  ;;  %7728 = vmatpush3.bf16.msra.mxu1 %v8494_v56  ;;  %v7646_v53 = vpop.f32.mrf.mxu1 }
 0xc71   : > { %7729 = vmatprep.subr.bf16.mxu1 %v8496_v45 }
 0xc72   : > { %v5341_v33 = vpop.f32.mrf.mxu1 }
 0xc73   : > { %7706 = vmatpush3.bf16.msra.mxu0 %v8495_v7 }
 0xc74   : > { %7707 = vmatprep.subr.bf16.mxu0 %v8497_v37  ;;  %7730 = vmatpush3.bf16.msra.mxu1 %v8496_v45 }
 0xc75   : > { %7731 = vmatprep.subr.bf16.mxu1 %v8498_v43 }
 0xc77   : > { %7708 = vmatpush3.bf16.msra.mxu0 %v8497_v37 }
 0xc78   : > { %7709 = vmatprep.subr.bf16.mxu0 %v8499_v62  ;;  %7732 = vmatpush3.bf16.msra.mxu1 %v8498_v43 }
 0xc79   : > { %7733 = vmatprep.subr.bf16.mxu1 %v8500_v38 }
 0xc7b   : > { %7710 = vmatpush3.bf16.msra.mxu0 %v8499_v62 }
 0xc7c   : > { %7743 = vmatprep.subr.bf16.mxu0 %v8866_v16  ;;  %7734 = vmatpush3.bf16.msra.mxu1 %v8500_v38 }
 0xc7e   : > { %7712 = vmatmul.mubr.bf16.vlgmr.msra.gmra.mxu0 %v10335_v4  ;;  %v8230_v4 = vld [vmem:[#allocation15 + $0x10] sm:$0xff]  }
 0xc7f   : > { %7715 = vmatprep.mubr.bf16.mxu0 %v10322_v30  ;;  %7744 = vmatpush3.bf16.msra.mxu0 %v8225_v19  ;;  %v8229_v30 = vld [vmem:[#allocation15 + $0x18] sm:$0xff]  }
 0xc80   : > { %7745 = vmatprep.subr.bf16.mxu0 %v8866_v16 }
 0xc83   : > { %7746 = vmatpush3.bf16.msra.mxu0 %v8226_v11 }
 0xc84   : > { %7747 = vmatprep.subr.bf16.mxu0 %v8866_v16 }
 0xc86   : > { %7716 = vmatmul.mubr.bf16.gmra.mxu0 %v10311_v48  ;;  %v8232_v48 = vld [vmem:[#allocation15] sm:$0xff]  }
 0xc87   : > { %7748 = vmatpush3.bf16.msra.mxu0 %v8227_v29  ;;  %7759 = vmatprep.mubr.msk.bf16.mxu0 %vm8867_vm1, %v8866_v16 }
 0xc88   : > { %7749 = vmatprep.subr.bf16.mxu0 %v8866_v16 }
 0xc8b   : > { %7750 = vmatpush3.bf16.msra.mxu0 %v8228_v54 }
 0xc8c   : > { %7751 = vmatprep.subr.bf16.mxu0 %v8866_v16 }
 0xc8f   : > { %7752 = vmatpush3.bf16.msra.mxu0 %v8229_v30 }
 0xc90   : > { %7753 = vmatprep.subr.bf16.mxu0 %v8866_v16 }
 0xc93   : > { %7754 = vmatpush3.bf16.msra.mxu0 %v8230_v4 }
 0xc94   : > { %7755 = vmatprep.subr.bf16.mxu0 %v8866_v16 }
 0xc97   : > { %7756 = vmatpush3.bf16.msra.mxu0 %v8231_v55 }
 0xc98   : > { %7757 = vmatprep.subr.bf16.mxu0 %v8866_v16 }
 0xc9b   : > { %7758 = vmatpush3.bf16.msra.mxu0 %v8232_v48 }
 0xc9e   : > { %7760 = vmatmul.mubr.bf16.vlgmr.msra.gmra.mxu0 %v10772_v17 }
 0xcfe   : > { %v7617_v13 = vpop.f32.mrf.mxu0 }
 0xcff   : > { %v5331_v60 = vadd.f32 %v7641_v40, %v7617_v13 }
 0xd00   : > { %v5257_v8 = vpop.f32.mrf.mxu0 }
 0xd01   : > { %v5323_v51 = vadd.f32 %v5322_v6, %v5257_v8 }
 0xd02   : > { %v7618_v12 = vpop.f32.mrf.mxu0 }
 0xd03   : > { %v5334_v24 = vadd.f32 %v7642_v10, %v7618_v12 }
 0xd04   : > { %v5260_v21 = vpop.f32.mrf.mxu0 }
 0xd05   : > { %v5326_v22 = vadd.f32 %v5325_v46, %v5260_v21 }
 0xd06   : > { %v7621_v20 = vpop.f32.mrf.mxu0 }
 0xd07   : > { %v5347_v43 = vadd.f32 %v7645_v61, %v7621_v20 }
 0xd08   : > { %v5273_v44 = vpop.f32.mrf.mxu0 }
 0xd09   : > { %v5339_v7 = vadd.f32 %v5338_v23, %v5273_v44 }
 0xd0a   : > { %v7622_v14 = vpop.f32.mrf.mxu0 }
 0xd0b   : > { %v5350_v45 = vadd.f32 %v7646_v53, %v7622_v14 }
 0xd0c   : > { %v5276_v0 = vpop.f32.mrf.mxu0 }
 0xd0d   : > { %v5342_v11 = vadd.f32 %v5341_v33, %v5276_v0 }
 0xd1e   : > { %v7665_v18 = vpop.f32.mrf.mxu0  ;;  %v7689_v27 = vpop.f32.mrf.mxu1 }
 0xd1f   : > { %v5424_v58 = vadd.f32 %v7665_v18, %v5331_v60  ;;  %v8238_v60 = vld [vmem:[#allocation17 + $0x10] sm:$0xff]  }
 0xd20   : > { %v5391_v39 = vpop.f32.mrf.mxu0  ;;  %v5468_v2 = vpop.f32.mrf.mxu1 }
 0xd21   : > { %v5422_v34 = vadd.f32 %v5391_v39, %v5323_v51  ;;  %v10404_v15 = vadd.f32 %v7689_v27, %v5424_v58  ;;  %v8233_v27 = vld [vmem:[#allocation17 + $0x38] sm:$0xff]   ;;  %v8234_v39 = vld [vmem:[#allocation17 + $0x30] sm:$0xff]   ;;  %v8236_v51 = vld [vmem:[#allocation17 + $0x20] sm:$0xff]  }
 0xd22   : > { %v7666_v1 = vpop.f32.mrf.mxu0  ;;  %v7690_v9 = vpop.f32.mrf.mxu1  ;;  %7763 = vmatprep.subr.bf16.mxu1 %v8233_v27  ;;  %v8244_v58 = vld [vmem:[#allocation18 + $0x20] sm:$0xff]  }
 0xd23   : > { %v5425_v42 = vadd.f32 %v7666_v1, %v5334_v24  ;;  %v10400_v47 = vadd.f32 %v5468_v2, %v5422_v34  ;;  %v8235_v2 = vld [vmem:[#allocation17 + $0x28] sm:$0xff]   ;;  %v8237_v24 = vld [vmem:[#allocation17 + $0x18] sm:$0xff]   ;;  %v8242_v34 = vld [vmem:[#allocation18 + $0x30] sm:$0xff]  }
 0xd24   : > { %v5394_v57 = vpop.f32.mrf.mxu0  ;;  %v5471_v50 = vpop.f32.mrf.mxu1  ;;  %v8239_v1 = vld [vmem:[#allocation17 + $0x8] sm:$0xff]  }
 0xd25   : > { %v5423_v28 = vadd.f32 %v5394_v57, %v5326_v22  ;;  %v10398_v31 = vadd.f32 %v7690_v9, %v5425_v42  ;;  %v8240_v9 = vld [vmem:[#allocation17] sm:$0xff]   ;;  %v8241_v22 = vld [vmem:[#allocation18 + $0x38] sm:$0xff]   ;;  %v8243_v42 = vld [vmem:[#allocation18 + $0x28] sm:$0xff]  }
 0xd26   : > { %v7669_v41 = vpop.f32.mrf.mxu0  ;;  %v7693_v49 = vpop.f32.mrf.mxu1  ;;  %7787 = vmatprep.subr.bf16.mxu0 %v8241_v22 }
 0xd27   : > { %v10402_v3 = vadd.f32 %v5471_v50, %v5423_v28  ;;  %v5508_v62 = vpack.c.bf16 %v10398_v31, %v10404_v15  ;;  %v5428_v30 = vadd.f32 %v7669_v41, %v5347_v43  ;;  %7788 = vmatpush3.bf16.msra.mxu0 %v8241_v22 }
 0xd28   : > { %v5407_v36 = vpop.f32.mrf.mxu0  ;;  %v5484_v56 = vpop.f32.mrf.mxu1  ;;  %7789 = vmatprep.subr.bf16.mxu0 %v8242_v34 }
 0xd29   : > { %v5507_v37 = vpack.c.bf16 %v10402_v3, %v10400_v47  ;;  %v5426_v29 = vadd.f32 %v5407_v36, %v5339_v7  ;;  %v10416_v6 = vadd.f32 %v7693_v49, %v5428_v30 }
 0xd2a   : > { %v7670_v38 = vpop.f32.mrf.mxu0  ;;  %v7694_v19 = vpop.f32.mrf.mxu1 }
 0xd2b   : > { %v5429_v54 = vadd.f32 %v7670_v38, %v5350_v45  ;;  %7735 = vmatprep.mubr.bf16.mxu1 %v5507_v37  ;;  %v10412_v40 = vadd.f32 %v5484_v56, %v5426_v29  ;;  %7790 = vmatpush3.bf16.msra.mxu0 %v8242_v34 }
 0xd2c   : > { %v5410_v4 = vpop.f32.mrf.mxu0  ;;  %7736 = vmatmul.mubr.bf16.vlgmr.msra.gmra.mxu1 %v5508_v62  ;;  %v5487_v55 = vpop.f32.mrf.mxu1  ;;  %7791 = vmatprep.subr.bf16.mxu0 %v8243_v42 }
 0xd2d   : > { %v5427_v48 = vadd.f32 %v5410_v4, %v5342_v11  ;;  %v10410_v17 = vadd.f32 %v7694_v19, %v5429_v54  ;;  %7764 = vmatpush3.bf16.msra.mxu1 %v8233_v27 }
 0xd2e   : > { %7765 = vmatprep.subr.bf16.mxu1 %v8234_v39 }
 0xd2f   : > { %v10414_v13 = vadd.f32 %v5487_v55, %v5427_v48  ;;  %v5510_v10 = vpack.c.bf16 %v10410_v17, %v10416_v6  ;;  %7792 = vmatpush3.bf16.msra.mxu0 %v8243_v42 }
 0xd30   : > { %7793 = vmatprep.subr.bf16.mxu0 %v8244_v58 }
 0xd31   : > { %v5509_v8 = vpack.c.bf16 %v10414_v13, %v10412_v40  ;;  %7766 = vmatpush3.bf16.msra.mxu1 %v8234_v39 }
 0xd32   : > { %7767 = vmatprep.subr.bf16.mxu1 %v8235_v2 }
 0xd33   : > { %7739 = vmatprep.mubr.bf16.mxu1 %v5509_v8  ;;  %7794 = vmatpush3.bf16.msra.mxu0 %v8244_v58 }
 0xd34   : > { %7740 = vmatmul.mubr.bf16.gmra.mxu1 %v5510_v10 }
 0xd35   : > { %7768 = vmatpush3.bf16.msra.mxu1 %v8235_v2 }
 0xd36   : > { %7769 = vmatprep.subr.bf16.mxu1 %v8236_v51 }
 0xd39   : > { %7770 = vmatpush3.bf16.msra.mxu1 %v8236_v51 }
 0xd3a   : > { %7771 = vmatprep.subr.bf16.mxu1 %v8237_v24 }
 0xd3d   : > { %7772 = vmatpush3.bf16.msra.mxu1 %v8237_v24 }
 0xd3e   : > { %v7713_v12 = vpop.f32.mrf.mxu0  ;;  %7773 = vmatprep.subr.bf16.mxu1 %v8238_v60 }
 0xd40   : > { %v5545_v46 = vpop.f32.mrf.mxu0 }
 0xd41   : > { %7774 = vmatpush3.bf16.msra.mxu1 %v8238_v60 }
 0xd42   : > { %v7714_v21 = vpop.f32.mrf.mxu0  ;;  %7775 = vmatprep.subr.bf16.mxu1 %v8239_v1 }
 0xd44   : > { %v5548_v61 = vpop.f32.mrf.mxu0 }
 0xd45   : > { %7776 = vmatpush3.bf16.msra.mxu1 %v8239_v1 }
 0xd46   : > { %v7717_v20 = vpop.f32.mrf.mxu0  ;;  %7777 = vmatprep.subr.bf16.mxu1 %v8240_v9 }
 0xd48   : > { %v10422_v23 = vpop.f32.mrf.mxu0 }
 0xd49   : > { %7778 = vmatpush3.bf16.msra.mxu1 %v8240_v9 }
 0xd4a   : > { %v10424_v44 = vpop.f32.mrf.mxu0  ;;  %7811 = vmatprep.subr.bf16.mxu1 %v8866_v16 }
 0xd4c   : > { %v10426_v53 = vpop.f32.mrf.mxu0 }
 0xd5e   : > { %v10428_v14 = vpop.f32.mrf.mxu0 }
 0xd60   : > { %v7761_v33 = vpop.f32.mrf.mxu0 }
 0xd62   : > { %v5842_v0 = vpop.f32.mrf.mxu0 }
 0xd64   : > { %v7762_v18 = vpop.f32.mrf.mxu0 }
 0xdec   : > { %v7737_v57 = vpop.f32.mrf.mxu1 }
 0xded   : > { %v5619_v50 = vadd.f32 %v7737_v57, %v7713_v12 }
 0xdee   : > { %v5610_v28 = vpop.f32.mrf.mxu1 }
 0xdef   : > { %v6797_v41 = vmul.f32 -1.442695, %v5619_v50  ;;  %v5611_v49 = vadd.f32 %v5610_v28, %v5545_v46 }
 0xdf0   : > { %v7738_v36 = vpop.f32.mrf.mxu1 }
 0xdf1   : > { %8393 = vpow2.f32 %v6797_v41  ;;  %v6795_v56 = vmul.f32 -1.442695, %v5611_v49  ;;  %v5622_v7 = vadd.f32 %v7738_v36, %v7714_v21 }
 0xdf2   : > { %v5613_v45 = vpop.f32.mrf.mxu1 }
 0xdf3   : > { %8395 = vpow2.f32 %v6795_v56  ;;  %v6798_v37 = vmul.f32 -1.442695, %v5622_v7  ;;  %v5614_v43 = vadd.f32 %v5613_v45, %v5548_v61 }
 0xdf4   : > { %v7741_v62 = vpop.f32.mrf.mxu1 }
 0xdf5   : > { %8397 = vpow2.f32 %v6798_v37  ;;  %v6796_v38 = vmul.f32 -1.442695, %v5614_v43  ;;  %v5635_v19 = vadd.f32 %v7741_v62, %v7717_v20 }
 0xdf6   : > { %v5626_v11 = vpop.f32.mrf.mxu1 }
 0xdf7   : > { %8399 = vpow2.f32 %v6796_v38  ;;  %v6801_v29 = vmul.f32 -1.442695, %v5635_v19  ;;  %v5627_v54 = vadd.f32 %v5626_v11, %v10422_v23 }
 0xdf8   : > { %v7742_v30 = vpop.f32.mrf.mxu1 }
 0xdf9   : > { %8401 = vpow2.f32 %v6801_v29  ;;  %v6799_v4 = vmul.f32 -1.442695, %v5627_v54  ;;  %v5638_v55 = vadd.f32 %v7742_v30, %v10424_v44 }
 0xdfa   : > { %v5629_v48 = vpop.f32.mrf.mxu1 }
 0xdfb   : > { %8403 = vpow2.f32 %v6799_v4  ;;  %v6802_v8 = vmul.f32 -1.442695, %v5638_v55  ;;  %v5630_v10 = vadd.f32 %v5629_v48, %v10426_v53 }
 0xdfc   : > { %8405 = vtanh.f32 %v10404_v15 }
 0xdfd   : > { %8407 = vpow2.f32 %v6802_v8  ;;  %v6800_v12 = vmul.f32 -1.442695, %v5630_v10 }
 0xdfe   : > { %v8394_v46 = vpop.eup %8393  ;;  %8409 = vtanh.f32 %v10400_v47 }
 0xdff   : > { %v5667_v21 = vadd.f32 1.0, %v8394_v46  ;;  %8411 = vpow2.f32 %v6800_v12 }
 0xe00   : > { %v8396_v61 = vpop.eup %8395  ;;  %8413 = vtanh.f32 %v10398_v31 }
 0xe01   : > { %8415 = vrcp.f32 %v5667_v21  ;;  %v5665_v20 = vadd.f32 1.0, %v8396_v61  ;;  %v8245_v61 = vld [vmem:[#allocation18 + $0x18] sm:$0xff]  }
 0xe02   : > { %v8398_v23 = vpop.eup %8397  ;;  %8417 = vtanh.f32 %v10402_v3  ;;  %7795 = vmatprep.subr.bf16.mxu0 %v8245_v61 }
 0xe03   : > { %8419 = vrcp.f32 %v5665_v20  ;;  %v5668_v44 = vadd.f32 1.0, %v8398_v23  ;;  %7796 = vmatpush3.bf16.msra.mxu0 %v8245_v61  ;;  %v8246_v20 = vld [vmem:[#allocation18 + $0x10] sm:$0xff]  }
 0xe04   : > { %v8400_v53 = vpop.eup %8399  ;;  %8421 = vtanh.f32 %v10416_v6  ;;  %7797 = vmatprep.subr.bf16.mxu0 %v8246_v20 }
 0xe05   : > { %8423 = vrcp.f32 %v5668_v44  ;;  %v5666_v15 = vadd.f32 1.0, %v8400_v53 }
 0xe06   : > { %v8402_v33 = vpop.eup %8401  ;;  %8425 = vtanh.f32 %v10412_v40 }
 0xe07   : > { %8427 = vrcp.f32 %v5666_v15  ;;  %v5671_v47 = vadd.f32 1.0, %v8402_v33  ;;  %7798 = vmatpush3.bf16.msra.mxu0 %v8246_v20 }
 0xe08   : > { %v8404_v0 = vpop.eup %8403  ;;  %8429 = vtanh.f32 %v10410_v17 }
 0xe09   : > { %v8406_v31 = vpop.eup %8405  ;;  %8431 = vrcp.f32 %v5671_v47  ;;  %v5669_v18 = vadd.f32 1.0, %v8404_v0  ;;  %v6819_v47 = vld [vmem:[%s10540_s19] ss:$0 sm:$0xff] }
 0xe0a   : > { %v8408_v27 = vpop.eup %8407  ;;  %8433 = vtanh.f32 %v10414_v13  ;;  %v5699_v60 = vsub.f32 %v8406_v31, %v10331_v35 }
 0xe0b   : > { %v8410_v3 = vpop.eup %8409  ;;  %8435 = vrcp.f32 %v5669_v18  ;;  %v5672_v39 = vadd.f32 1.0, %v8408_v27 }
 0xe0c   : > { %v8412_v6 = vpop.eup %8411  ;;  %v5697_v34 = vsub.f32 %v8410_v3, %v10343_v59 }
 0xe0d   : > { %v8414_v2 = vpop.eup %8413  ;;  %8437 = vrcp.f32 %v5672_v39  ;;  %v5670_v51 = vadd.f32 1.0, %v8412_v6 }
 0xe0e   : > { %v8416_v24 = vpop.eup %8415  ;;  %v5700_v9 = vsub.f32 %v8414_v2, %v10325_v26 }
 0xe0f   : > { %v8418_v40 = vpop.eup %8417  ;;  %8439 = vrcp.f32 %v5670_v51  ;;  %v5707_v22 = vmul.f32 %v8416_v24, %v5699_v60 }
 0xe10   : > { %v8420_v1 = vpop.eup %8419  ;;  %v5698_v57 = vsub.f32 %v8418_v40, %v10338_v25 }
 0xe11   : > { %v8422_v17 = vpop.eup %8421  ;;  %v5705_v50 = vmul.f32 %v8420_v1, %v5697_v34  ;;  %v5715_v36 = vadd.f32 %v5707_v22, %v10331_v35 }
 0xe12   : > { %v8424_v13 = vpop.eup %8423  ;;  %v5703_v38 = vsub.f32 %v8422_v17, %v10303_v32 }
 0xe13   : > { %v8426_v42 = vpop.eup %8425  ;;  %v5708_v58 = vmul.f32 %v8424_v13, %v5700_v9  ;;  %v5713_v37 = vadd.f32 %v5705_v50, %v10343_v59 }
 0xe14   : > { %v8428_v28 = vpop.eup %8427  ;;  %v5701_v29 = vsub.f32 %v8426_v42, %v10314_v52 }
 0xe15   : > { %v8430_v41 = vpop.eup %8429  ;;  %v5706_v49 = vmul.f32 %v8428_v28, %v5698_v57  ;;  %v5716_v56 = vadd.f32 %v5708_v58, %v10325_v26 }
 0xe16   : > { %v8432_v7 = vpop.eup %8431  ;;  %v5704_v54 = vsub.f32 %v8430_v41, %v10306_v5 }
 0xe17   : > { %v8434_v45 = vpop.eup %8433  ;;  %v5714_v43 = vadd.f32 %v5706_v49, %v10338_v25  ;;  %v5738_v62 = vpack.c.bf16 %v5716_v56, %v5715_v36  ;;  %v5711_v30 = vmul.f32 %v8432_v7, %v5703_v38 }
 0xe18   : > { %v8436_v19 = vpop.eup %8435  ;;  %v5702_v26 = vsub.f32 %v8434_v45, %v10317_v63 }
 0xe19   : > { %v5737_v11 = vpack.c.bf16 %v5714_v43, %v5713_v37  ;;  %v5709_v35 = vmul.f32 %v8436_v19, %v5701_v29  ;;  %v5719_v25 = vadd.f32 %v5711_v30, %v10303_v32  ;;  %v8247_v32 = vld [vmem:[#allocation18 + $0x8] sm:$0xff]   ;;  %v6138_v43 = vld [vmem:[#allocation2] sm:$0x1] }
 0xe1a   : > { %v8438_v4 = vpop.eup %8437  ;;  %7799 = vmatprep.subr.bf16.mxu0 %v8247_v32  ;;  %6141 = vperm.xlu1 %7975, %v6138_v43  }
 0xe1b   : > { %7779 = vmatprep.mubr.bf16.mxu1 %v5737_v11  ;;  %v5712_v55 = vmul.f32 %v8438_v4, %v5704_v54  ;;  %v5717_v10 = vadd.f32 %v5709_v35, %v10314_v52  ;;  %7800 = vmatpush3.bf16.msra.mxu0 %v8247_v32  ;;  %v6820_v54 = vld [vmem:[%s10542_s21] ss:$0 sm:$0xff] }
 0xe1c   : > { %v8440_v48 = vpop.eup %8439  ;;  %7780 = vmatmul.mubr.bf16.vlgmr.msra.gmra.mxu1 %v5738_v62 }
 0xe1d   : > { %v5710_v59 = vmul.f32 %v8440_v48, %v5702_v26  ;;  %v5720_v8 = vadd.f32 %v5712_v55, %v10306_v5  ;;  %v8248_v5 = vld [vmem:[#allocation18] sm:$0xff]  }
 0xe1e   : > { %7801 = vmatprep.subr.bf16.mxu0 %v8248_v5 }
 0xe1f   : > { %v5718_v12 = vadd.f32 %v5710_v59, %v10317_v63  ;;  %v5740_v46 = vpack.c.bf16 %v5720_v8, %v5719_v25  ;;  %7802 = vmatpush3.bf16.msra.mxu0 %v8248_v5  ;;  %v10773_v63 = vld [vmem:[#allocation33_spill] sm:$0xff] }
 0xe20   : > { %v5848_v23 = vrot.slane %v10428_v14, %v10773_v63 }
 0xe21   : > { %v5739_v21 = vpack.c.bf16 %v5718_v12, %v5717_v10 }
 0xe23   : > { %7783 = vmatprep.mubr.bf16.mxu1 %v5739_v21 }
 0xe24   : > { %7784 = vmatmul.mubr.bf16.gmra.mxu1 %v5740_v46 }
 0xe25   : > { %7819 = vmatprep.mubr.msk.bf16.mxu1 %vm8867_vm1, %v8866_v16 }
 0xedc   : > { %v7781_v52 = vpop.f32.mrf.mxu1 }
 0xedd   : > { %v5940_v15 = vadd.f32 %v7781_v52, %v5848_v23 }
 0xede   : > { %v5931_v44 = vpop.f32.mrf.mxu1 }
 0xedf   : > { %v5932_v53 = vadd.f32 %v5931_v44, %v5848_v23  ;;  %v5971_v39 = vadd.f32 %v6819_v47, %v5940_v15 }
 0xee0   : > { %v7782_v33 = vpop.f32.mrf.mxu1 }
 0xee1   : > { %v5943_v0 = vadd.f32 %v7782_v33, %v5848_v23  ;;  %v5969_v18 = vadd.f32 %v6819_v47, %v5932_v53  ;;  %v5979_v1 = vmax.f32 %v5971_v39, 0.0 }
 0xee2   : > { %v5934_v31 = vpop.f32.mrf.mxu1 }
 0xee3   : > { %v5972_v27 = vadd.f32 %v6819_v47, %v5943_v0  ;;  %v5935_v3 = vadd.f32 %v5934_v31, %v5848_v23  ;;  %v5977_v40 = vmax.f32 %v5969_v18, 0.0  ;;  %v6142_v0 = vpop.permute.xlu1 %6141 }
 0xee4   : > { %v7785_v6 = vpop.f32.mrf.mxu1  ;;  %v6147_v31 = vrot.slane %v6142_v0, %v10773_v63 }
 0xee5   : > { %v5970_v2 = vadd.f32 %v6819_v47, %v5935_v3  ;;  %v5980_v51 = vmax.f32 %v5972_v27, 0.0  ;;  %v5956_v17 = vadd.f32 %v7785_v6, %v5848_v23 }
 0xee6   : > { %v5947_v24 = vpop.f32.mrf.mxu1 }
 0xee7   : > { %v5978_v14 = vmax.f32 %v5970_v2, 0.0  ;;  %v5948_v60 = vadd.f32 %v5947_v24, %v5848_v23  ;;  %v6002_v13 = vpack.c.bf16 %v5980_v51, %v5979_v1  ;;  %v5975_v28 = vadd.f32 %v6819_v47, %v5956_v17 }
 0xee8   : > { %v7786_v9 = vpop.f32.mrf.mxu1 }
 0xee9   : > { %v5959_v22 = vadd.f32 %v7786_v9, %v5848_v23  ;;  %v6001_v34 = vpack.c.bf16 %v5978_v14, %v5977_v40  ;;  %v5973_v58 = vadd.f32 %v6819_v47, %v5948_v60  ;;  %v5983_v7 = vmax.f32 %v5975_v28, 0.0 }
 0xeea   : > { %v5950_v42 = vpop.f32.mrf.mxu1 }
 0xeeb   : > { %v5976_v57 = vadd.f32 %v6819_v47, %v5959_v22  ;;  %v5951_v50 = vadd.f32 %v5950_v42, %v5848_v23  ;;  %7803 = vmatprep.mubr.bf16.mxu0 %v6001_v34  ;;  %v5981_v36 = vmax.f32 %v5973_v58, 0.0 }
 0xeec   : > { %7804 = vmatmul.mubr.bf16.vlgmr.msra.gmra.mxu0 %v6002_v13 }
 0xeed   : > { %v5974_v41 = vadd.f32 %v6819_v47, %v5951_v50  ;;  %v5984_v49 = vmax.f32 %v5976_v57, 0.0  ;;  %v6133_v47 = vld [vmem:[%s10543_s22] sm:$0x1] }
 0xeef   : > { %v5982_v56 = vmax.f32 %v5974_v41, 0.0  ;;  %v6004_v37 = vpack.c.bf16 %v5984_v49, %v5983_v7 }
 0xef1   : > { %v6003_v45 = vpack.c.bf16 %v5982_v56, %v5981_v36 }
 0xef3   : > { %7807 = vmatprep.mubr.bf16.mxu0 %v6003_v45 }
 0xef4   : > { %7808 = vmatmul.mubr.bf16.gmra.mxu0 %v6004_v37 }
 0xfac   : > { %v7805_v62 = vpop.f32.mrf.mxu0 }
 0xfad   : > { %v6103_v20 = vadd.f32 %v7805_v62, %v6820_v54 }
 0xfae   : > { %v6094_v38 = vpop.f32.mrf.mxu0 }
 0xfaf   : > { %v6127_v5 = vmax.f32 %v6103_v20, 0.0  ;;  %v6095_v44 = vadd.f32 %v6820_v54, %v6094_v38 }
 0xfb0   : > { %v7806_v19 = vpop.f32.mrf.mxu0 }
 0xfb1   : > { %v6106_v21 = vadd.f32 %v7806_v19, %v6820_v54  ;;  %v6125_v15 = vmax.f32 %v6095_v44, 0.0 }
 0xfb2   : > { %v6097_v11 = vpop.f32.mrf.mxu0 }
 0xfb3   : > { %v6128_v32 = vmax.f32 %v6106_v21, 0.0  ;;  %v6098_v23 = vadd.f32 %v6820_v54, %v6097_v11 }
 0xfb4   : > { %v7809_v29 = vpop.f32.mrf.mxu0 }
 0xfb5   : > { %v6119_v4 = vadd.f32 %v7809_v29, %v6820_v54  ;;  %v6135_v52 = vpack.c.bf16 %v6128_v32, %v6127_v5  ;;  %v6126_v53 = vmax.f32 %v6098_v23, 0.0 }
 0xfb6   : > { %v6110_v30 = vpop.f32.mrf.mxu0 }
 0xfb7   : > { %v6131_v48 = vmax.f32 %v6119_v4, 0.0  ;;  %v6111_v10 = vadd.f32 %v6820_v54, %v6110_v30  ;;  %v6134_v33 = vpack.c.bf16 %v6126_v53, %v6125_v15 }
 0xfb8   : > { %v7810_v26 = vpop.f32.mrf.mxu0 }
 0xfb9   : > { %v6122_v35 = vadd.f32 %v7810_v26, %v6820_v54  ;;  %v6129_v46 = vmax.f32 %v6111_v10, 0.0 }
 0xfba   : > { %v6113_v55 = vpop.f32.mrf.mxu0 }
 0xfbb   : > { %v6132_v59 = vmax.f32 %v6122_v35, 0.0  ;;  %v6114_v8 = vadd.f32 %v6820_v54, %v6113_v55 }
 0xfbd   : > { %v6137_v25 = vpack.c.bf16 %v6132_v59, %v6131_v48  ;;  %v6130_v12 = vmax.f32 %v6114_v8, 0.0 }
 0xfbf   : > { %7812 = vmatpush3.bf16.xpose.msra.mxu1 %v6137_v25  ;;  %v6136_v61 = vpack.c.bf16 %v6130_v12, %v6129_v46 }
 0xfc0   : > { %7813 = vmatprep.subr.bf16.mxu1 %v8866_v16 }
 0xfc7   : > { %7814 = vmatpush3.bf16.xpose.msra.mxu1 %v6136_v61 }
 0xfc8   : > { %7815 = vmatprep.subr.bf16.mxu1 %v8866_v16 }
 0xfcf   : > { %7816 = vmatpush3.bf16.xpose.msra.mxu1 %v6135_v52 }
 0xfd0   : > { %7817 = vmatprep.subr.bf16.mxu1 %v8866_v16 }
 0xfd7   : > { %7818 = vmatpush3.bf16.xpose.msra.mxu1 %v6134_v33 }
 0xfde   : > { %7820 = vmatmul.mubr.bf16.vlgmr.msra.gmra.mxu1 %v6133_v47 }
0x109e   : > { %v6182_v18 = vpop.f32.mrf.mxu1 }
0x109f   : > { %v6183_v16 = vadd.f32 %v6182_v18, %v6147_v31 }
0x10a0   : > { %v7821_v27 = vpop.f32.mrf.mxu1 }
0x10a1   : > { %6189 = vst.msk [vmem:[%s905_s8] sm:$0x1] %vm6188_vm2, %v6183_v16 }
0x10a2   : > { %v6185_v3 = vpop.f32.mrf.mxu1 }
0x10a3   : > { %8774 = shalt.err (!%p8771_p10)
}
0x10a4   : > { %s8775_s29 = scalar_lea.hbm %s10480_s1, 16  ;;  %s8779_s7 = scalar_lea.hbm %s10545_s24, 64 }
0x10a5   : > { %p8776_p8 = scmp.ne.s32.totalorder %s10480_s1, %s8775_s29  ;;  %p8780_p0 = scmp.lt.s32.totalorder %s10480_s1, %s10545_s24 }
0x10a6   : > { %p8781_p3 = scmp.lt.s32.totalorder %s8779_s7, %s8775_s29 }
0x10a7   : > { %p8777_p11 = pnand %p8776_p8, %p9035_p5 }
0x10a8   : > { %p8782_p2 = por %p8781_p3, %p8780_p0 }
0x10a9   : > { %p8778_p1 = pneg %p8777_p11 }
0x10ab   : > { %p8783_p13 = pnand %p8782_p2, %p8778_p1 }
0x10ad   : > { %8786 = shalt.err (!%p8783_p13)
}
0x10ae   : > { %7864 = dma.vmem_to_hbm [thread:$0]  (%p9035_p5), %s10482_s0, 16, %s10480_s1, %s6191_s3   ;;  %v7822_v63 = vpop.f32.mrf.mxu1 }
0x10af PF: > { %s10774_s26 = sld [smem:[#allocation28_spill]]  ;;  %p7921_p6 = scmp.ge.s32.totalorder %s8845_s2, 2 }
0x10b0   : > { %s10775_s23 = sld [smem:[#allocation32_spill]] }
0x10b5   : > { %s6215_s12 = sand.u32 1, %s10774_s26  }
0x10b6   : > { %p10776_p9 = scmp.ne.s32.totalorder %s10775_s23, 0  ;;  %s6216_s5 = scalar_lea.sflag [#allocation5], %s6215_s12 }
0x10b8   : > { %p7898_p4 = pnand %p7921_p6, %p10776_p9 }
0x10ba   : > { %p7899_p7 = pneg %p7898_p4 }
0x10bc   : > { %8828 = dma.done.wait (%p7899_p7), %s6216_s5, 16  }
0x10bd   : > { %8830 = vsyncadd (%p7899_p7), %s6216_s5, 4294967280  ;;  %s10777_s2 = sld [smem:[#allocation30_spill]]  ;;  %s10780_s27 = smov %s8837_s28 }
0x10be   : > { %s10778_s6 = sld [smem:[#allocation29_spill]] }
0x10bf   : > { %s10779_s25 = sld [smem:[#allocation31_spill]] }
0x10c3   : > { %p42_p12 = scmp.ge.s32.totalorder %s10777_s2, 6  }
0x10c4   : > { %s10781_s28 = smov %s10778_s6 }
0x10c5   : > { %s10782_s6 = smov %s10779_s25  ;;  %44 = sbr.rel (!%p42_p12) target bundleno = 22 (0x16), region = 198 }
0x10ca   :  { %6220 = vsyncpa [#allocation4], 1 }
0x10cb   :  { %6222 = vsyncpa [#allocation4 + $0x1], 1 }
0x10cc   :  { %6223 = vsyncpa [#allocation7], 1 }
0x10cd   :  { %6224 = vsyncpa [#allocation10], 1 }
0x10ce   :  { %6225 = vsyncpa [#allocation13], 1 }
0x10cf   :  { %6226 = vsyncpa [#allocation16], 1 }
0x10d0   :  { %6227 = vsyncpa [#allocation19], 1 }
0x10d1   :  { %6228 = vsyncpa [#allocation5], 1 }
0x10d2   :  { %6230 = vsyncpa [#allocation5 + $0x1], 1 }

</bundles_post_ra>
